<compile_context>
chip_gen: v7x
topology: tpu7x:2x2x1
jax: 0.10.0
libtpu: 0.0.40
codegen_flags: <defaults>
</compile_context>

<pallas_src>
import jax
import jax.numpy as jnp
from jax import lax
from jax.experimental import pallas as pl
from jax.experimental.pallas import tpu as pltpu


# ----------------------------------------------------------------------------
# Fused kernel: [2-stream, L-layer LSTM] -> [P predictors] -> [NCE scalar]
# ----------------------------------------------------------------------------
def make_m2m_cpc_kernel(*, L, T, B, C, E, P):
    B2 = 2 * B
    C2 = 2 * C          # padded state lanes
    G = 8 * C           # padded gate lanes: [i_e,i_y,f_e,f_y,g_e,g_y,o_e,o_y]
    PE = P * E

    def kernel(*refs):
        slen_ref = refs[0]                      # (1,) int32 scalar prefetch (SMEM)
        x_ref = refs[1]                         # (T, 2B, 2E) block-diag padded input
        lstm_refs = refs[2:2 + 3 * L]           # per layer: wih_blk, whh_blk, b_row
        enc_ref = refs[2 + 3 * L]               # (P, 2B, E)
        wpred_ref = refs[3 + 3 * L]             # (2C, 2*P*E)
        pb_ref = refs[4 + 3 * L]                # (2B, P*E)
        out_ref = refs[5 + 3 * L]               # (1, 1) SMEM scalar
        xp_scr = refs[6 + 3 * L]                # (T, 2B, 8C) VMEM scratch

        f32 = jnp.float32
        seqlen = slen_ref[0]                    # true forward length (t_samples + 1)

        # Hoisted stream-row mask (rows < B are the eeg stream) -- only used
        # once, after the recurrence, for the predictor lane select.
        is_eeg_row = lax.broadcasted_iota(jnp.int32, (B2, 1), 0) < B

        # ---------- layer-0 input projection hoisted over the sequence ----------
        wih0_ref, _, b0_ref = lstm_refs[0:3]
        xf = x_ref[...].reshape(T * B2, 2 * E)
        xp0 = jnp.dot(xf, wih0_ref[...], preferred_element_type=f32)
        xp_scr[...] = xp0.reshape(T, B2, G) + b0_ref[...][None]

        def cell(xp, h_pad, c_pad, whh_ref):
            # One merged MXU push per step; block-structured weights keep the
            # "wrong-stream" lanes exactly zero, so no select is needed.
            gates = xp + jnp.dot(h_pad, whh_ref[...], preferred_element_type=f32)
            sg = jax.nn.sigmoid(gates)          # one EUP pass over all gate lanes
            tg = jnp.tanh(gates)                # one EUP pass over all gate lanes
            i_g = sg[:, 0:C2]
            f_g = sg[:, C2:2 * C2]
            g_g = tg[:, 2 * C2:3 * C2]
            o_g = sg[:, 3 * C2:4 * C2]
            c_new = f_g * c_pad + i_g * g_g
            h_new = o_g * jnp.tanh(c_new)
            return h_new, c_new

        # ------------- wavefront-interleaved stacked LSTM recurrence ------------
        h = [jnp.zeros((B2, C2), f32) for _ in range(L)]
        c = [jnp.zeros((B2, C2), f32) for _ in range(L)]
        for t in range(T):
            # Padded (t >= seqlen) steps freeze the state -> one compile for all
            # t_samples draws.
            valid = jnp.full((B2, 1), t, jnp.int32) < seqlen
            for l in range(L):
                wih_ref, whh_ref, b_ref = lstm_refs[3 * l: 3 * l + 3]
                if l == 0:
                    xp = xp_scr[t]
                else:
                    xp = (jnp.dot(h[l - 1], wih_ref[...],
                                  preferred_element_type=f32) + b_ref[...])
                h_new, c_new = cell(xp, h[l], c[l], whh_ref)
                h[l] = jnp.where(valid, h_new, h[l])
                c[l] = jnp.where(valid, c_new, c[l])

        # -------- predictors: all P steps / both streams in one matmul ----------
        ctx_pad = h[L - 1]                                          # (2B, 2C) padded
        # Every row becomes [ctx_eeg_r | ctx_eye_r] (XLU roll + VPU add).
        ctx_full = ctx_pad + pltpu.roll(ctx_pad, shift=B, axis=0)
        pred_both = jnp.dot(ctx_full, wpred_ref[...], preferred_element_type=f32)
        pred = (jnp.where(is_eeg_row, pred_both[:, 0:PE], pred_both[:, PE:2 * PE])
                + pb_ref[...])                                      # (2B, P*E)

        # ---------------------------------- NCE ---------------------------------
        rows = lax.broadcasted_iota(jnp.int32, (B2, B2), 0)
        cols = lax.broadcasted_iota(jnp.int32, (B2, B2), 1)
        same_idx = (rows == cols) | (rows == cols + B) | (cols == rows + B)
        same_grp = (rows < B) == (cols < B)
        diag_w = jnp.where(same_idx,
                           jnp.where(same_grp, f32(0.1), f32(1.0)),
                           f32(0.0))                                # (2B, 2B)
        w_blk0 = jnp.where(is_eeg_row, f32(0.1), f32(1.0))          # cols [0:B)
        w_blk1 = jnp.where(is_eeg_row, f32(1.0), f32(0.1))          # cols [B:2B)

        nce = f32(0.0)
        for i in range(P):
            enc_i = enc_ref[i]                                      # (2B, E)
            pred_i = pred[:, i * E:(i + 1) * E]                     # (2B, E)
            # enc @ pred^T without materializing a transpose.
            s = lax.dot_general(enc_i, pred_i,
                                dimension_numbers=(((1,), (1,)), ((), ())),
                                preferred_element_type=f32)         # (2B, 2B)
            s0 = s[:, 0:B]
            s1 = s[:, B:B2]
            m0 = jnp.max(s0, axis=1, keepdims=True)
            m1 = jnp.max(s1, axis=1, keepdims=True)
            lse0 = m0 + jnp.log(jnp.sum(jnp.exp(s0 - m0), axis=1, keepdims=True))
            lse1 = m1 + jnp.log(jnp.sum(jnp.exp(s1 - m1), axis=1, keepdims=True))
            # sum(diag(log_softmax(total))) == trace(total) - sum_rows logsumexp
            nce = nce + jnp.sum(s * diag_w) - jnp.sum(lse0 * w_blk0 + lse1 * w_blk1)

        out_ref[0, 0] = nce

    return kernel


def _full_spec(shape):
    zeros = (0,) * len(shape)
    return pl.BlockSpec(shape, lambda i, slen, _z=zeros: _z)


def m2m_cpc_pallas(seqlen, x_pad, lstm_packed, enc, wpred, pb_row,
                   *, B, C, E, P, L, T_max):
    B2 = 2 * B
    kernel = make_m2m_cpc_kernel(L=L, T=T_max, B=B, C=C, E=E, P=P)

    operands = [x_pad]
    for (wih, whh, b_row) in lstm_packed:
        operands += [wih, whh, b_row]
    operands += [enc, wpred, pb_row]

    out = pl.pallas_call(
        kernel,
        out_shape=jax.ShapeDtypeStruct((1, 1), jnp.float32),
        grid_spec=pltpu.PrefetchScalarGridSpec(
            num_scalar_prefetch=1,
            grid=(1,),
            in_specs=[_full_spec(op.shape) for op in operands],
            out_specs=pl.BlockSpec((1, 1), lambda i, slen: (0, 0),
                                   memory_space=pltpu.MemorySpace.SMEM),
            scratch_shapes=[pltpu.VMEM((T_max, B2, 8 * C), jnp.float32)]),
        compiler_params=pltpu.CompilerParams(
            dimension_semantics=("arbitrary",)),
    )(seqlen, *operands)
    return out[0, 0]


# ----------------------------------------------------------------------------
# Parameter init (raw PyTorch-like layout) and packing for the kernel.
# ----------------------------------------------------------------------------
def init_params(key, E, C, L, P):
    ks = iter(jax.random.split(key, 8 * L + 4))

    def uni(shape, bound):
        return jax.random.uniform(next(ks), shape, jnp.float32, -bound, bound)

    kb = 1.0 / (C ** 0.5)

    def lstm_stack():
        layers = []
        for l in range(L):
            din = E if l == 0 else C
            layers.append((uni((4 * C, din), kb),   # weight_ih (4C, Din) [i,f,g,o]
                           uni((4 * C, C), kb),     # weight_hh (4C, C)
                           uni((4 * C,), kb),       # bias_ih
                           uni((4 * C,), kb)))      # bias_hh
        return layers

    eeg_lstm = lstm_stack()
    eye_lstm = lstm_stack()

    pb = 1.0 / ((2 * C) ** 0.5)
    return dict(eeg_lstm=eeg_lstm, eye_lstm=eye_lstm,
                eeg_pred_w=uni((P, E, 2 * C), pb), eeg_pred_b=uni((P, E), pb),
                eye_pred_w=uni((P, E, 2 * C), pb), eye_pred_b=uni((P, E), pb))


def _scatter_gate_lanes(w4c, stream, C):
    """(K, 4C) gate-major [i|f|g|o] -> (K, 8C) padded-lane layout.

    Output lanes are [i_eeg,i_eye,f_eeg,f_eye,g_eeg,g_eye,o_eeg,o_eye]; this
    stream's values land in its sub-lanes, zeros elsewhere (block structure).
    """
    K = w4c.shape[0]
    w = w4c.reshape(K, 4, 1, C)
    z = jnp.zeros_like(w)
    w8 = jnp.concatenate([w, z] if stream == 0 else [z, w], axis=2)
    return w8.reshape(K, 8 * C)


def _pack_lstm(eeg_layers, eye_layers, B, C):
    packed = []
    for (ewi, ewh, ebi, ebh), (ywi, ywh, ybi, ybh) in zip(eeg_layers, eye_layers):
        wih = jnp.concatenate([_scatter_gate_lanes(ewi.T, 0, C),
                               _scatter_gate_lanes(ywi.T, 1, C)], axis=0)  # (2Din, 8C)
        whh = jnp.concatenate([_scatter_gate_lanes(ewh.T, 0, C),
                               _scatter_gate_lanes(ywh.T, 1, C)], axis=0)  # (2C, 8C)
        b_e = _scatter_gate_lanes((ebi + ebh)[None, :], 0, C)              # (1, 8C)
        b_y = _scatter_gate_lanes((ybi + ybh)[None, :], 1, C)
        b_row = jnp.concatenate([jnp.tile(b_e, (B, 1)),
                                 jnp.tile(b_y, (B, 1))], axis=0)           # (2B, 8C)
        packed.append((wih, whh, b_row))
    return packed


def _pack_pred(params, B, C, P, E):
    # ctx_full layout for every row is [ctx_eeg | ctx_eye].
    we = jnp.transpose(params["eeg_pred_w"], (2, 0, 1)).reshape(2 * C, P * E)
    wy = jnp.transpose(params["eye_pred_w"], (2, 0, 1)).reshape(2 * C, P * E)
    wy = jnp.concatenate([wy[C:], wy[:C]], axis=0)   # eye pred expects [eye|eeg]
    wpred = jnp.concatenate([we, wy], axis=1)        # (2C, 2*P*E)
    be = params["eeg_pred_b"].reshape(P * E)
    by = params["eye_pred_b"].reshape(P * E)
    pb_row = jnp.concatenate([jnp.tile(be[None, :], (B, 1)),
                              jnp.tile(by[None, :], (B, 1))], axis=0)  # (2B, P*E)
    return wpred, pb_row


# ----------------------------------------------------------------------------
# Forward wrapper (semantics of M2M_CPC.forward for a given t_samples draw).
# t_samples may be a host int or a traced int32 scalar: the kernel length is
# fixed at T_max = time_length - P, so no recompilation per draw.
# ----------------------------------------------------------------------------
def m2m_cpc_forward(eeg_vq, eye_vq, params, t_samples, n_prediction_steps):
    B, T_total, E = eeg_vq.shape
    P = n_prediction_steps
    C = params["eeg_lstm"][0][1].shape[1]
    L = len(params["eeg_lstm"])
    T_max = T_total - P          # max forward length (t_samples + 1 <= T_max)

    # Layer-0 input, block-diagonal-padded to 2E lanes, batch-stacked, time-major.
    zeros_e = jnp.zeros((B, T_max, E), jnp.float32)
    x_eeg = jnp.concatenate([eeg_vq[:, :T_max, :], zeros_e], axis=-1)
    x_eye = jnp.concatenate([zeros_e, eye_vq[:, :T_max, :]], axis=-1)
    x_pad = jnp.transpose(jnp.concatenate([x_eeg, x_eye], axis=0), (1, 0, 2))

    # encode_samples[i] = vq[:, t_samples + 1 + i, :], eeg+eye stacked along batch.
    eeg_enc = lax.dynamic_slice_in_dim(eeg_vq, t_samples + 1, P, axis=1)  # (B,P,E)
    eye_enc = lax.dynamic_slice_in_dim(eye_vq, t_samples + 1, P, axis=1)
    enc = jnp.concatenate([jnp.transpose(eeg_enc, (1, 0, 2)),
                           jnp.transpose(eye_enc, (1, 0, 2))], axis=1)     # (P,2B,E)

    lstm_packed = _pack_lstm(params["eeg_lstm"], params["eye_lstm"], B, C)
    wpred, pb_row = _pack_pred(params, B, C, P, E)

    seqlen = jnp.full((1,), t_samples + 1, jnp.int32)

    nce_sum = m2m_cpc_pallas(seqlen, x_pad, lstm_packed, enc, wpred, pb_row,
                             B=B, C=C, E=E, P=P, L=L, T_max=T_max)
    return nce_sum / (-1.0 * B * P)


# ----------------------------------------------------------------------------
# Pure-JAX reference for the correctness check.
# ----------------------------------------------------------------------------
def ref_forward(eeg_vq, eye_vq, params, t_samples, P):
    B = eeg_vq.shape[0]

    def run_lstm(seq_btd, layers):
        x = seq_btd
        for (w_ih, w_hh, b_ih, b_hh) in layers:
            H = w_hh.shape[1]
            wih_t, whh_t, b = w_ih.T, w_hh.T, b_ih + b_hh

            def step(carry, x_t):
                h, c = carry
                gates = x_t @ wih_t + h @ whh_t + b
                i_g = jax.nn.sigmoid(gates[:, :H])
                f_g = jax.nn.sigmoid(gates[:, H:2 * H])
                g_g = jnp.tanh(gates[:, 2 * H:3 * H])
                o_g = jax.nn.sigmoid(gates[:, 3 * H:])
                c = f_g * c + i_g * g_g
                h = o_g * jnp.tanh(c)
                return (h, c), h

            h0 = jnp.zeros((x.shape[0], H), jnp.float32)
            _, ys = lax.scan(step, (h0, h0), jnp.swapaxes(x, 0, 1))
            x = jnp.swapaxes(ys, 0, 1)
        return x

    eeg_ctx = run_lstm(eeg_vq[:, :t_samples + 1, :], params["eeg_lstm"])[:, -1, :]
    eye_ctx = run_lstm(eye_vq[:, :t_samples + 1, :], params["eye_lstm"])[:, -1, :]

    nce = 0.0
    for i in range(P):
        eeg_enc = eeg_vq[:, t_samples + 1 + i, :]
        eye_enc = eye_vq[:, t_samples + 1 + i, :]
        eeg_pred = (jnp.concatenate([eeg_ctx, eye_ctx], 1) @ params["eeg_pred_w"][i].T
                    + params["eeg_pred_b"][i])
        eye_pred = (jnp.concatenate([eye_ctx, eeg_ctx], 1) @ params["eye_pred_w"][i].T
                    + params["eye_pred_b"][i])

        def contrib(enc, pred):
            total = enc @ pred.T
            return jnp.sum(jnp.diag(jax.nn.log_softmax(total, axis=1)))

        nce = nce + contrib(eeg_enc, eye_pred) + contrib(eye_enc, eeg_pred)
        nce = nce + 0.1 * (contrib(eeg_enc, eeg_pred) + contrib(eye_enc, eye_pred))
    return nce / (-1.0 * B * P)


if __name__ == "__main__":
    # Small shapes consistent with the module's forward.
    B, T, E = 4, 16, 16          # batch, time, embedding_dim
    C = 32                       # context_dim (== hidden_dim, as the module assumes)
    L = 2                        # num_layers
    P = 2                        # n_prediction_steps
    MIN_START = 1                # min_start_step

    key = jax.random.PRNGKey(0)
    k_eeg, k_eye, k_t, k_par = jax.random.split(key, 4)

    eeg_vq = jax.random.normal(k_eeg, (B, T, E), jnp.float32)
    eye_vq = jax.random.normal(k_eye, (B, T, E), jnp.float32)

    # torch.randint(time_length - P - min_start) + min_start  (host int here so the
    # pure-JAX reference can slice statically; the kernel itself is length-agnostic).
    t_samples = int(jax.random.randint(k_t, (), 0, T - P - MIN_START)) + MIN_START

    params = init_params(k_par, E, C, L, P)

    nce = jax.block_until_ready(m2m_cpc_forward(eeg_vq, eye_vq, params, t_samples, P))
    nce_ref = jax.block_until_ready(ref_forward(eeg_vq, eye_vq, params, t_samples, P))

    assert jnp.isfinite(nce), "NCE is not finite"
    assert jnp.allclose(nce, nce_ref, rtol=5e-2, atol=5e-2), (nce, nce_ref)

    print("KERNEL_OK")
</pallas_src>

<mosaic_0001>
module attributes {stable_mosaic.version = 11 : i64} {
  func.func @kernel(%arg0: i32, %arg1: memref<1xi32, #tpu.memory_space<smem>>, %arg2: memref<14x8x32xf32, #tpu.memory_space<vmem>>, %arg3: memref<32x256xf32, #tpu.memory_space<vmem>>, %arg4: memref<64x256xf32, #tpu.memory_space<vmem>>, %arg5: memref<8x256xf32, #tpu.memory_space<vmem>>, %arg6: memref<64x256xf32, #tpu.memory_space<vmem>>, %arg7: memref<64x256xf32, #tpu.memory_space<vmem>>, %arg8: memref<8x256xf32, #tpu.memory_space<vmem>>, %arg9: memref<2x8x16xf32, #tpu.memory_space<vmem>>, %arg10: memref<64x64xf32, #tpu.memory_space<vmem>>, %arg11: memref<8x32xf32, #tpu.memory_space<vmem>>, %arg12: memref<1x1xf32, #tpu.memory_space<smem>>, %arg13: memref<14x8x256xf32, #tpu.memory_space<vmem>>) attributes {dimension_semantics = [#tpu.dimension_semantics<arbitrary>], iteration_bounds = array<i64: 1>, scalar_prefetch = 1 : i64, scratch_operands = 1 : i64, tpu.core_type = #tpu.core_type<tc>, window_params = [{pipeline_mode = #tpu.pipeline_mode<synchronous>, transform_indices = @transform_0, window_bounds = array<i64: 14, 8, 32>}, {pipeline_mode = #tpu.pipeline_mode<synchronous>, transform_indices = @transform_1, window_bounds = array<i64: 32, 256>}, {pipeline_mode = #tpu.pipeline_mode<synchronous>, transform_indices = @transform_2, window_bounds = array<i64: 64, 256>}, {pipeline_mode = #tpu.pipeline_mode<synchronous>, transform_indices = @transform_3, window_bounds = array<i64: 8, 256>}, {pipeline_mode = #tpu.pipeline_mode<synchronous>, transform_indices = @transform_4, window_bounds = array<i64: 64, 256>}, {pipeline_mode = #tpu.pipeline_mode<synchronous>, transform_indices = @transform_5, window_bounds = array<i64: 64, 256>}, {pipeline_mode = #tpu.pipeline_mode<synchronous>, transform_indices = @transform_6, window_bounds = array<i64: 8, 256>}, {pipeline_mode = #tpu.pipeline_mode<synchronous>, transform_indices = @transform_7, window_bounds = array<i64: 2, 8, 16>}, {pipeline_mode = #tpu.pipeline_mode<synchronous>, transform_indices = @transform_8, window_bounds = array<i64: 64, 64>}, {pipeline_mode = #tpu.pipeline_mode<synchronous>, transform_indices = @transform_9, window_bounds = array<i64: 8, 32>}, {transform_indices = @transform_10, window_bounds = array<i64: 1, 1>}]} {
    %c0 = arith.constant 0 : index
    %0 = memref.load %arg1[%c0] : memref<1xi32, #tpu.memory_space<smem>>
    %1 = tpu.iota {dimensions = array<i32: 0>} : vector<8x1xi32>
    %c4_i32 = arith.constant 4 : i32
    %2 = vector.broadcast %c4_i32 : i32 to vector<8x1xi32>
    %3 = arith.cmpi slt, %1, %2 : vector<8x1xi32>
    %c0_0 = arith.constant 0 : index
    %c0_1 = arith.constant 0 : index
    %c0_2 = arith.constant 0 : index
    %4 = vector.load %arg2[%c0_0, %c0_1, %c0_2] : memref<14x8x32xf32, #tpu.memory_space<vmem>>, vector<14x8x32xf32>
    %5 = vector.shape_cast %4 : vector<14x8x32xf32> to vector<112x32xf32>
    %c0_3 = arith.constant 0 : index
    %c0_4 = arith.constant 0 : index
    %6 = vector.load %arg3[%c0_3, %c0_4] : memref<32x256xf32, #tpu.memory_space<vmem>>, vector<32x256xf32>
    %cst = arith.constant dense<0.000000e+00> : vector<112x256xf32>
    %7 = tpu.matmul %5, %6, %cst {dimension_numbers = #tpu.dot_dimension_numbers<[1], [0], [0], [1], [0, 0, 1, 1], [], []>} : vector<112x32xf32>, vector<32x256xf32>, vector<112x256xf32> -> vector<112x256xf32>
    %8 = vector.shape_cast %7 : vector<112x256xf32> to vector<14x8x256xf32>
    %c0_5 = arith.constant 0 : index
    %c0_6 = arith.constant 0 : index
    %9 = vector.load %arg5[%c0_5, %c0_6] : memref<8x256xf32, #tpu.memory_space<vmem>>, vector<8x256xf32>
    %10 = vector.shape_cast %9 : vector<8x256xf32> to vector<1x8x256xf32>
    %11 = vector.broadcast %10 : vector<1x8x256xf32> to vector<14x8x256xf32>
    %12 = arith.addf %8, %11 : vector<14x8x256xf32>
    %c0_7 = arith.constant 0 : index
    %c0_8 = arith.constant 0 : index
    %c0_9 = arith.constant 0 : index
    %13 = vector.load %arg13[%c0_7, %c0_8, %c0_9] : memref<14x8x256xf32, #tpu.memory_space<vmem>>, vector<14x8x256xf32>
    tpu.vector_store %arg13[%c0_7, %c0_8, %c0_9], %12 {strides = array<i32>} : memref<14x8x256xf32, #tpu.memory_space<vmem>>, vector<14x8x256xf32>,
    %cst_10 = arith.constant 0.000000e+00 : f32
    %14 = vector.broadcast %cst_10 : f32 to vector<8x64xf32>
    %cst_11 = arith.constant 0.000000e+00 : f32
    %15 = vector.broadcast %cst_11 : f32 to vector<8x64xf32>
    %cst_12 = arith.constant 0.000000e+00 : f32
    %16 = vector.broadcast %cst_12 : f32 to vector<8x64xf32>
    %cst_13 = arith.constant 0.000000e+00 : f32
    %17 = vector.broadcast %cst_13 : f32 to vector<8x64xf32>
    %c0_i32 = arith.constant 0 : i32
    %18 = vector.broadcast %c0_i32 : i32 to vector<8x1xi32>
    %19 = vector.broadcast %0 : i32 to vector<8x1xi32>
    %20 = arith.cmpi slt, %18, %19 : vector<8x1xi32>
    %c0_14 = arith.constant 0 : index
    %c0_15 = arith.constant 0 : index
    %c0_16 = arith.constant 0 : index
    %21 = vector.load %arg13[%c0_14, %c0_15, %c0_16] : memref<14x8x256xf32, #tpu.memory_space<vmem>>, vector<1x8x256xf32>
    %22 = vector.shape_cast %21 : vector<1x8x256xf32> to vector<8x256xf32>
    %c0_17 = arith.constant 0 : index
    %c0_18 = arith.constant 0 : index
    %23 = vector.load %arg4[%c0_17, %c0_18] : memref<64x256xf32, #tpu.memory_space<vmem>>, vector<64x256xf32>
    %cst_19 = arith.constant dense<0.000000e+00> : vector<8x256xf32>
    %24 = tpu.matmul %14, %23, %cst_19 {dimension_numbers = #tpu.dot_dimension_numbers<[1], [0], [0], [1], [0, 0, 1, 1], [], []>} : vector<8x64xf32>, vector<64x256xf32>, vector<8x256xf32> -> vector<8x256xf32>
    %25 = arith.addf %22, %24 : vector<8x256xf32>
    %26 = arith.negf %25 : vector<8x256xf32>
    %27 = math.exp %26 : vector<8x256xf32>
    %cst_20 = arith.constant 1.000000e+00 : f32
    %28 = vector.broadcast %cst_20 : f32 to vector<8x256xf32>
    %29 = arith.addf %28, %27 : vector<8x256xf32>
    %30 = arith.divf %28, %29 : vector<8x256xf32>
    %31 = math.tanh %25 : vector<8x256xf32>
    %32 = vector.extract_strided_slice %30 {offsets = [0, 0], sizes = [8, 64], strides = [1, 1]} : vector<8x256xf32> to vector<8x64xf32>
    %33 = vector.extract_strided_slice %30 {offsets = [0, 64], sizes = [8, 64], strides = [1, 1]} : vector<8x256xf32> to vector<8x64xf32>
    %34 = vector.extract_strided_slice %31 {offsets = [0, 128], sizes = [8, 64], strides = [1, 1]} : vector<8x256xf32> to vector<8x64xf32>
    %35 = vector.extract_strided_slice %30 {offsets = [0, 192], sizes = [8, 64], strides = [1, 1]} : vector<8x256xf32> to vector<8x64xf32>
    %36 = arith.mulf %33, %16 : vector<8x64xf32>
    %37 = arith.mulf %32, %34 : vector<8x64xf32>
    %38 = arith.addf %36, %37 : vector<8x64xf32>
    %39 = math.tanh %38 : vector<8x64xf32>
    %40 = arith.mulf %35, %39 : vector<8x64xf32>
    %41 = vector.shape_cast %20 : vector<8x1xi1> to vector<8x1xi1>
    %42 = vector.broadcast %41 : vector<8x1xi1> to vector<8x64xi1>
    %43 = arith.select %42, %40, %14 : vector<8x64xi1>, vector<8x64xf32>
    %44 = vector.shape_cast %20 : vector<8x1xi1> to vector<8x1xi1>
    %45 = vector.broadcast %44 : vector<8x1xi1> to vector<8x64xi1>
    %46 = arith.select %45, %38, %16 : vector<8x64xi1>, vector<8x64xf32>
    %c0_21 = arith.constant 0 : index
    %c0_22 = arith.constant 0 : index
    %47 = vector.load %arg6[%c0_21, %c0_22] : memref<64x256xf32, #tpu.memory_space<vmem>>, vector<64x256xf32>
    %cst_23 = arith.constant dense<0.000000e+00> : vector<8x256xf32>
    %48 = tpu.matmul %43, %47, %cst_23 {dimension_numbers = #tpu.dot_dimension_numbers<[1], [0], [0], [1], [0, 0, 1, 1], [], []>} : vector<8x64xf32>, vector<64x256xf32>, vector<8x256xf32> -> vector<8x256xf32>
    %c0_24 = arith.constant 0 : index
    %c0_25 = arith.constant 0 : index
    %49 = vector.load %arg8[%c0_24, %c0_25] : memref<8x256xf32, #tpu.memory_space<vmem>>, vector<8x256xf32>
    %50 = arith.addf %48, %49 : vector<8x256xf32>
    %c0_26 = arith.constant 0 : index
    %c0_27 = arith.constant 0 : index
    %51 = vector.load %arg7[%c0_26, %c0_27] : memref<64x256xf32, #tpu.memory_space<vmem>>, vector<64x256xf32>
    %cst_28 = arith.constant dense<0.000000e+00> : vector<8x256xf32>
    %52 = tpu.matmul %15, %51, %cst_28 {dimension_numbers = #tpu.dot_dimension_numbers<[1], [0], [0], [1], [0, 0, 1, 1], [], []>} : vector<8x64xf32>, vector<64x256xf32>, vector<8x256xf32> -> vector<8x256xf32>
    %53 = arith.addf %50, %52 : vector<8x256xf32>
    %54 = arith.negf %53 : vector<8x256xf32>
    %55 = math.exp %54 : vector<8x256xf32>
    %cst_29 = arith.constant 1.000000e+00 : f32
    %56 = vector.broadcast %cst_29 : f32 to vector<8x256xf32>
    %57 = arith.addf %56, %55 : vector<8x256xf32>
    %58 = arith.divf %56, %57 : vector<8x256xf32>
    %59 = math.tanh %53 : vector<8x256xf32>
    %60 = vector.extract_strided_slice %58 {offsets = [0, 0], sizes = [8, 64], strides = [1, 1]} : vector<8x256xf32> to vector<8x64xf32>
    %61 = vector.extract_strided_slice %58 {offsets = [0, 64], sizes = [8, 64], strides = [1, 1]} : vector<8x256xf32> to vector<8x64xf32>
    %62 = vector.extract_strided_slice %59 {offsets = [0, 128], sizes = [8, 64], strides = [1, 1]} : vector<8x256xf32> to vector<8x64xf32>
    %63 = vector.extract_strided_slice %58 {offsets = [0, 192], sizes = [8, 64], strides = [1, 1]} : vector<8x256xf32> to vector<8x64xf32>
    %64 = arith.mulf %61, %17 : vector<8x64xf32>
    %65 = arith.mulf %60, %62 : vector<8x64xf32>
    %66 = arith.addf %64, %65 : vector<8x64xf32>
    %67 = math.tanh %66 : vector<8x64xf32>
    %68 = arith.mulf %63, %67 : vector<8x64xf32>
    %69 = vector.shape_cast %20 : vector<8x1xi1> to vector<8x1xi1>
    %70 = vector.broadcast %69 : vector<8x1xi1> to vector<8x64xi1>
    %71 = arith.select %70, %68, %15 : vector<8x64xi1>, vector<8x64xf32>
    %72 = vector.shape_cast %20 : vector<8x1xi1> to vector<8x1xi1>
    %73 = vector.broadcast %72 : vector<8x1xi1> to vector<8x64xi1>
    %74 = arith.select %73, %66, %17 : vector<8x64xi1>, vector<8x64xf32>
    %c1_i32 = arith.constant 1 : i32
    %75 = vector.broadcast %c1_i32 : i32 to vector<8x1xi32>
    %76 = vector.broadcast %0 : i32 to vector<8x1xi32>
    %77 = arith.cmpi slt, %75, %76 : vector<8x1xi32>
    %c1 = arith.constant 1 : index
    %c0_30 = arith.constant 0 : index
    %c0_31 = arith.constant 0 : index
    %78 = vector.load %arg13[%c1, %c0_30, %c0_31] : memref<14x8x256xf32, #tpu.memory_space<vmem>>, vector<1x8x256xf32>
    %79 = vector.shape_cast %78 : vector<1x8x256xf32> to vector<8x256xf32>
    %c0_32 = arith.constant 0 : index
    %c0_33 = arith.constant 0 : index
    %80 = vector.load %arg4[%c0_32, %c0_33] : memref<64x256xf32, #tpu.memory_space<vmem>>, vector<64x256xf32>
    %cst_34 = arith.constant dense<0.000000e+00> : vector<8x256xf32>
    %81 = tpu.matmul %43, %80, %cst_34 {dimension_numbers = #tpu.dot_dimension_numbers<[1], [0], [0], [1], [0, 0, 1, 1], [], []>} : vector<8x64xf32>, vector<64x256xf32>, vector<8x256xf32> -> vector<8x256xf32>
    %82 = arith.addf %79, %81 : vector<8x256xf32>
    %83 = arith.negf %82 : vector<8x256xf32>
    %84 = math.exp %83 : vector<8x256xf32>
    %cst_35 = arith.constant 1.000000e+00 : f32
    %85 = vector.broadcast %cst_35 : f32 to vector<8x256xf32>
    %86 = arith.addf %85, %84 : vector<8x256xf32>
    %87 = arith.divf %85, %86 : vector<8x256xf32>
    %88 = math.tanh %82 : vector<8x256xf32>
    %89 = vector.extract_strided_slice %87 {offsets = [0, 0], sizes = [8, 64], strides = [1, 1]} : vector<8x256xf32> to vector<8x64xf32>
    %90 = vector.extract_strided_slice %87 {offsets = [0, 64], sizes = [8, 64], strides = [1, 1]} : vector<8x256xf32> to vector<8x64xf32>
    %91 = vector.extract_strided_slice %88 {offsets = [0, 128], sizes = [8, 64], strides = [1, 1]} : vector<8x256xf32> to vector<8x64xf32>
    %92 = vector.extract_strided_slice %87 {offsets = [0, 192], sizes = [8, 64], strides = [1, 1]} : vector<8x256xf32> to vector<8x64xf32>
    %93 = arith.mulf %90, %46 : vector<8x64xf32>
    %94 = arith.mulf %89, %91 : vector<8x64xf32>
    %95 = arith.addf %93, %94 : vector<8x64xf32>
    %96 = math.tanh %95 : vector<8x64xf32>
    %97 = arith.mulf %92, %96 : vector<8x64xf32>
    %98 = vector.shape_cast %77 : vector<8x1xi1> to vector<8x1xi1>
    %99 = vector.broadcast %98 : vector<8x1xi1> to vector<8x64xi1>
    %100 = arith.select %99, %97, %43 : vector<8x64xi1>, vector<8x64xf32>
    %101 = vector.shape_cast %77 : vector<8x1xi1> to vector<8x1xi1>
    %102 = vector.broadcast %101 : vector<8x1xi1> to vector<8x64xi1>
    %103 = arith.select %102, %95, %46 : vector<8x64xi1>, vector<8x64xf32>
    %c0_36 = arith.constant 0 : index
    %c0_37 = arith.constant 0 : index
    %104 = vector.load %arg6[%c0_36, %c0_37] : memref<64x256xf32, #tpu.memory_space<vmem>>, vector<64x256xf32>
    %cst_38 = arith.constant dense<0.000000e+00> : vector<8x256xf32>
    %105 = tpu.matmul %100, %104, %cst_38 {dimension_numbers = #tpu.dot_dimension_numbers<[1], [0], [0], [1], [0, 0, 1, 1], [], []>} : vector<8x64xf32>, vector<64x256xf32>, vector<8x256xf32> -> vector<8x256xf32>
    %c0_39 = arith.constant 0 : index
    %c0_40 = arith.constant 0 : index
    %106 = vector.load %arg8[%c0_39, %c0_40] : memref<8x256xf32, #tpu.memory_space<vmem>>, vector<8x256xf32>
    %107 = arith.addf %105, %106 : vector<8x256xf32>
    %c0_41 = arith.constant 0 : index
    %c0_42 = arith.constant 0 : index
    %108 = vector.load %arg7[%c0_41, %c0_42] : memref<64x256xf32, #tpu.memory_space<vmem>>, vector<64x256xf32>
    %cst_43 = arith.constant dense<0.000000e+00> : vector<8x256xf32>
    %109 = tpu.matmul %71, %108, %cst_43 {dimension_numbers = #tpu.dot_dimension_numbers<[1], [0], [0], [1], [0, 0, 1, 1], [], []>} : vector<8x64xf32>, vector<64x256xf32>, vector<8x256xf32> -> vector<8x256xf32>
    %110 = arith.addf %107, %109 : vector<8x256xf32>
    %111 = arith.negf %110 : vector<8x256xf32>
    %112 = math.exp %111 : vector<8x256xf32>
    %cst_44 = arith.constant 1.000000e+00 : f32
    %113 = vector.broadcast %cst_44 : f32 to vector<8x256xf32>
    %114 = arith.addf %113, %112 : vector<8x256xf32>
    %115 = arith.divf %113, %114 : vector<8x256xf32>
    %116 = math.tanh %110 : vector<8x256xf32>
    %117 = vector.extract_strided_slice %115 {offsets = [0, 0], sizes = [8, 64], strides = [1, 1]} : vector<8x256xf32> to vector<8x64xf32>
    %118 = vector.extract_strided_slice %115 {offsets = [0, 64], sizes = [8, 64], strides = [1, 1]} : vector<8x256xf32> to vector<8x64xf32>
    %119 = vector.extract_strided_slice %116 {offsets = [0, 128], sizes = [8, 64], strides = [1, 1]} : vector<8x256xf32> to vector<8x64xf32>
    %120 = vector.extract_strided_slice %115 {offsets = [0, 192], sizes = [8, 64], strides = [1, 1]} : vector<8x256xf32> to vector<8x64xf32>
    %121 = arith.mulf %118, %74 : vector<8x64xf32>
    %122 = arith.mulf %117, %119 : vector<8x64xf32>
    %123 = arith.addf %121, %122 : vector<8x64xf32>
    %124 = math.tanh %123 : vector<8x64xf32>
    %125 = arith.mulf %120, %124 : vector<8x64xf32>
    %126 = vector.shape_cast %77 : vector<8x1xi1> to vector<8x1xi1>
    %127 = vector.broadcast %126 : vector<8x1xi1> to vector<8x64xi1>
    %128 = arith.select %127, %125, %71 : vector<8x64xi1>, vector<8x64xf32>
    %129 = vector.shape_cast %77 : vector<8x1xi1> to vector<8x1xi1>
    %130 = vector.broadcast %129 : vector<8x1xi1> to vector<8x64xi1>
    %131 = arith.select %130, %123, %74 : vector<8x64xi1>, vector<8x64xf32>
    %c2_i32 = arith.constant 2 : i32
    %132 = vector.broadcast %c2_i32 : i32 to vector<8x1xi32>
    %133 = vector.broadcast %0 : i32 to vector<8x1xi32>
    %134 = arith.cmpi slt, %132, %133 : vector<8x1xi32>
    %c2 = arith.constant 2 : index
    %c0_45 = arith.constant 0 : index
    %c0_46 = arith.constant 0 : index
    %135 = vector.load %arg13[%c2, %c0_45, %c0_46] : memref<14x8x256xf32, #tpu.memory_space<vmem>>, vector<1x8x256xf32>
    %136 = vector.shape_cast %135 : vector<1x8x256xf32> to vector<8x256xf32>
    %c0_47 = arith.constant 0 : index
    %c0_48 = arith.constant 0 : index
    %137 = vector.load %arg4[%c0_47, %c0_48] : memref<64x256xf32, #tpu.memory_space<vmem>>, vector<64x256xf32>
    %cst_49 = arith.constant dense<0.000000e+00> : vector<8x256xf32>
    %138 = tpu.matmul %100, %137, %cst_49 {dimension_numbers = #tpu.dot_dimension_numbers<[1], [0], [0], [1], [0, 0, 1, 1], [], []>} : vector<8x64xf32>, vector<64x256xf32>, vector<8x256xf32> -> vector<8x256xf32>
    %139 = arith.addf %136, %138 : vector<8x256xf32>
    %140 = arith.negf %139 : vector<8x256xf32>
    %141 = math.exp %140 : vector<8x256xf32>
    %cst_50 = arith.constant 1.000000e+00 : f32
    %142 = vector.broadcast %cst_50 : f32 to vector<8x256xf32>
    %143 = arith.addf %142, %141 : vector<8x256xf32>
    %144 = arith.divf %142, %143 : vector<8x256xf32>
    %145 = math.tanh %139 : vector<8x256xf32>
    %146 = vector.extract_strided_slice %144 {offsets = [0, 0], sizes = [8, 64], strides = [1, 1]} : vector<8x256xf32> to vector<8x64xf32>
    %147 = vector.extract_strided_slice %144 {offsets = [0, 64], sizes = [8, 64], strides = [1, 1]} : vector<8x256xf32> to vector<8x64xf32>
    %148 = vector.extract_strided_slice %145 {offsets = [0, 128], sizes = [8, 64], strides = [1, 1]} : vector<8x256xf32> to vector<8x64xf32>
    %149 = vector.extract_strided_slice %144 {offsets = [0, 192], sizes = [8, 64], strides = [1, 1]} : vector<8x256xf32> to vector<8x64xf32>
    %150 = arith.mulf %147, %103 : vector<8x64xf32>
    %151 = arith.mulf %146, %148 : vector<8x64xf32>
    %152 = arith.addf %150, %151 : vector<8x64xf32>
    %153 = math.tanh %152 : vector<8x64xf32>
    %154 = arith.mulf %149, %153 : vector<8x64xf32>
    %155 = vector.shape_cast %134 : vector<8x1xi1> to vector<8x1xi1>
    %156 = vector.broadcast %155 : vector<8x1xi1> to vector<8x64xi1>
    %157 = arith.select %156, %154, %100 : vector<8x64xi1>, vector<8x64xf32>
    %158 = vector.shape_cast %134 : vector<8x1xi1> to vector<8x1xi1>
    %159 = vector.broadcast %158 : vector<8x1xi1> to vector<8x64xi1>
    %160 = arith.select %159, %152, %103 : vector<8x64xi1>, vector<8x64xf32>
    %c0_51 = arith.constant 0 : index
    %c0_52 = arith.constant 0 : index
    %161 = vector.load %arg6[%c0_51, %c0_52] : memref<64x256xf32, #tpu.memory_space<vmem>>, vector<64x256xf32>
    %cst_53 = arith.constant dense<0.000000e+00> : vector<8x256xf32>
    %162 = tpu.matmul %157, %161, %cst_53 {dimension_numbers = #tpu.dot_dimension_numbers<[1], [0], [0], [1], [0, 0, 1, 1], [], []>} : vector<8x64xf32>, vector<64x256xf32>, vector<8x256xf32> -> vector<8x256xf32>
    %c0_54 = arith.constant 0 : index
    %c0_55 = arith.constant 0 : index
    %163 = vector.load %arg8[%c0_54, %c0_55] : memref<8x256xf32, #tpu.memory_space<vmem>>, vector<8x256xf32>
    %164 = arith.addf %162, %163 : vector<8x256xf32>
    %c0_56 = arith.constant 0 : index
    %c0_57 = arith.constant 0 : index
    %165 = vector.load %arg7[%c0_56, %c0_57] : memref<64x256xf32, #tpu.memory_space<vmem>>, vector<64x256xf32>
    %cst_58 = arith.constant dense<0.000000e+00> : vector<8x256xf32>
    %166 = tpu.matmul %128, %165, %cst_58 {dimension_numbers = #tpu.dot_dimension_numbers<[1], [0], [0], [1], [0, 0, 1, 1], [], []>} : vector<8x64xf32>, vector<64x256xf32>, vector<8x256xf32> -> vector<8x256xf32>
    %167 = arith.addf %164, %166 : vector<8x256xf32>
    %168 = arith.negf %167 : vector<8x256xf32>
    %169 = math.exp %168 : vector<8x256xf32>
    %cst_59 = arith.constant 1.000000e+00 : f32
    %170 = vector.broadcast %cst_59 : f32 to vector<8x256xf32>
    %171 = arith.addf %170, %169 : vector<8x256xf32>
    %172 = arith.divf %170, %171 : vector<8x256xf32>
    %173 = math.tanh %167 : vector<8x256xf32>
    %174 = vector.extract_strided_slice %172 {offsets = [0, 0], sizes = [8, 64], strides = [1, 1]} : vector<8x256xf32> to vector<8x64xf32>
    %175 = vector.extract_strided_slice %172 {offsets = [0, 64], sizes = [8, 64], strides = [1, 1]} : vector<8x256xf32> to vector<8x64xf32>
    %176 = vector.extract_strided_slice %173 {offsets = [0, 128], sizes = [8, 64], strides = [1, 1]} : vector<8x256xf32> to vector<8x64xf32>
    %177 = vector.extract_strided_slice %172 {offsets = [0, 192], sizes = [8, 64], strides = [1, 1]} : vector<8x256xf32> to vector<8x64xf32>
    %178 = arith.mulf %175, %131 : vector<8x64xf32>
    %179 = arith.mulf %174, %176 : vector<8x64xf32>
    %180 = arith.addf %178, %179 : vector<8x64xf32>
    %181 = math.tanh %180 : vector<8x64xf32>
    %182 = arith.mulf %177, %181 : vector<8x64xf32>
    %183 = vector.shape_cast %134 : vector<8x1xi1> to vector<8x1xi1>
    %184 = vector.broadcast %183 : vector<8x1xi1> to vector<8x64xi1>
    %185 = arith.select %184, %182, %128 : vector<8x64xi1>, vector<8x64xf32>
    %186 = vector.shape_cast %134 : vector<8x1xi1> to vector<8x1xi1>
    %187 = vector.broadcast %186 : vector<8x1xi1> to vector<8x64xi1>
    %188 = arith.select %187, %180, %131 : vector<8x64xi1>, vector<8x64xf32>
    %c3_i32 = arith.constant 3 : i32
    %189 = vector.broadcast %c3_i32 : i32 to vector<8x1xi32>
    %190 = vector.broadcast %0 : i32 to vector<8x1xi32>
    %191 = arith.cmpi slt, %189, %190 : vector<8x1xi32>
    %c3 = arith.constant 3 : index
    %c0_60 = arith.constant 0 : index
    %c0_61 = arith.constant 0 : index
    %192 = vector.load %arg13[%c3, %c0_60, %c0_61] : memref<14x8x256xf32, #tpu.memory_space<vmem>>, vector<1x8x256xf32>
    %193 = vector.shape_cast %192 : vector<1x8x256xf32> to vector<8x256xf32>
    %c0_62 = arith.constant 0 : index
    %c0_63 = arith.constant 0 : index
    %194 = vector.load %arg4[%c0_62, %c0_63] : memref<64x256xf32, #tpu.memory_space<vmem>>, vector<64x256xf32>
    %cst_64 = arith.constant dense<0.000000e+00> : vector<8x256xf32>
    %195 = tpu.matmul %157, %194, %cst_64 {dimension_numbers = #tpu.dot_dimension_numbers<[1], [0], [0], [1], [0, 0, 1, 1], [], []>} : vector<8x64xf32>, vector<64x256xf32>, vector<8x256xf32> -> vector<8x256xf32>
    %196 = arith.addf %193, %195 : vector<8x256xf32>
    %197 = arith.negf %196 : vector<8x256xf32>
    %198 = math.exp %197 : vector<8x256xf32>
    %cst_65 = arith.constant 1.000000e+00 : f32
    %199 = vector.broadcast %cst_65 : f32 to vector<8x256xf32>
    %200 = arith.addf %199, %198 : vector<8x256xf32>
    %201 = arith.divf %199, %200 : vector<8x256xf32>
    %202 = math.tanh %196 : vector<8x256xf32>
    %203 = vector.extract_strided_slice %201 {offsets = [0, 0], sizes = [8, 64], strides = [1, 1]} : vector<8x256xf32> to vector<8x64xf32>
    %204 = vector.extract_strided_slice %201 {offsets = [0, 64], sizes = [8, 64], strides = [1, 1]} : vector<8x256xf32> to vector<8x64xf32>
    %205 = vector.extract_strided_slice %202 {offsets = [0, 128], sizes = [8, 64], strides = [1, 1]} : vector<8x256xf32> to vector<8x64xf32>
    %206 = vector.extract_strided_slice %201 {offsets = [0, 192], sizes = [8, 64], strides = [1, 1]} : vector<8x256xf32> to vector<8x64xf32>
    %207 = arith.mulf %204, %160 : vector<8x64xf32>
    %208 = arith.mulf %203, %205 : vector<8x64xf32>
    %209 = arith.addf %207, %208 : vector<8x64xf32>
    %210 = math.tanh %209 : vector<8x64xf32>
    %211 = arith.mulf %206, %210 : vector<8x64xf32>
    %212 = vector.shape_cast %191 : vector<8x1xi1> to vector<8x1xi1>
    %213 = vector.broadcast %212 : vector<8x1xi1> to vector<8x64xi1>
    %214 = arith.select %213, %211, %157 : vector<8x64xi1>, vector<8x64xf32>
    %215 = vector.shape_cast %191 : vector<8x1xi1> to vector<8x1xi1>
    %216 = vector.broadcast %215 : vector<8x1xi1> to vector<8x64xi1>
    %217 = arith.select %216, %209, %160 : vector<8x64xi1>, vector<8x64xf32>
    %c0_66 = arith.constant 0 : index
    %c0_67 = arith.constant 0 : index
    %218 = vector.load %arg6[%c0_66, %c0_67] : memref<64x256xf32, #tpu.memory_space<vmem>>, vector<64x256xf32>
    %cst_68 = arith.constant dense<0.000000e+00> : vector<8x256xf32>
    %219 = tpu.matmul %214, %218, %cst_68 {dimension_numbers = #tpu.dot_dimension_numbers<[1], [0], [0], [1], [0, 0, 1, 1], [], []>} : vector<8x64xf32>, vector<64x256xf32>, vector<8x256xf32> -> vector<8x256xf32>
    %c0_69 = arith.constant 0 : index
    %c0_70 = arith.constant 0 : index
    %220 = vector.load %arg8[%c0_69, %c0_70] : memref<8x256xf32, #tpu.memory_space<vmem>>, vector<8x256xf32>
    %221 = arith.addf %219, %220 : vector<8x256xf32>
    %c0_71 = arith.constant 0 : index
    %c0_72 = arith.constant 0 : index
    %222 = vector.load %arg7[%c0_71, %c0_72] : memref<64x256xf32, #tpu.memory_space<vmem>>, vector<64x256xf32>
    %cst_73 = arith.constant dense<0.000000e+00> : vector<8x256xf32>
    %223 = tpu.matmul %185, %222, %cst_73 {dimension_numbers = #tpu.dot_dimension_numbers<[1], [0], [0], [1], [0, 0, 1, 1], [], []>} : vector<8x64xf32>, vector<64x256xf32>, vector<8x256xf32> -> vector<8x256xf32>
    %224 = arith.addf %221, %223 : vector<8x256xf32>
    %225 = arith.negf %224 : vector<8x256xf32>
    %226 = math.exp %225 : vector<8x256xf32>
    %cst_74 = arith.constant 1.000000e+00 : f32
    %227 = vector.broadcast %cst_74 : f32 to vector<8x256xf32>
    %228 = arith.addf %227, %226 : vector<8x256xf32>
    %229 = arith.divf %227, %228 : vector<8x256xf32>
    %230 = math.tanh %224 : vector<8x256xf32>
    %231 = vector.extract_strided_slice %229 {offsets = [0, 0], sizes = [8, 64], strides = [1, 1]} : vector<8x256xf32> to vector<8x64xf32>
    %232 = vector.extract_strided_slice %229 {offsets = [0, 64], sizes = [8, 64], strides = [1, 1]} : vector<8x256xf32> to vector<8x64xf32>
    %233 = vector.extract_strided_slice %230 {offsets = [0, 128], sizes = [8, 64], strides = [1, 1]} : vector<8x256xf32> to vector<8x64xf32>
    %234 = vector.extract_strided_slice %229 {offsets = [0, 192], sizes = [8, 64], strides = [1, 1]} : vector<8x256xf32> to vector<8x64xf32>
    %235 = arith.mulf %232, %188 : vector<8x64xf32>
    %236 = arith.mulf %231, %233 : vector<8x64xf32>
    %237 = arith.addf %235, %236 : vector<8x64xf32>
    %238 = math.tanh %237 : vector<8x64xf32>
    %239 = arith.mulf %234, %238 : vector<8x64xf32>
    %240 = vector.shape_cast %191 : vector<8x1xi1> to vector<8x1xi1>
    %241 = vector.broadcast %240 : vector<8x1xi1> to vector<8x64xi1>
    %242 = arith.select %241, %239, %185 : vector<8x64xi1>, vector<8x64xf32>
    %243 = vector.shape_cast %191 : vector<8x1xi1> to vector<8x1xi1>
    %244 = vector.broadcast %243 : vector<8x1xi1> to vector<8x64xi1>
    %245 = arith.select %244, %237, %188 : vector<8x64xi1>, vector<8x64xf32>
    %c4_i32_75 = arith.constant 4 : i32
    %246 = vector.broadcast %c4_i32_75 : i32 to vector<8x1xi32>
    %247 = vector.broadcast %0 : i32 to vector<8x1xi32>
    %248 = arith.cmpi slt, %246, %247 : vector<8x1xi32>
    %c4 = arith.constant 4 : index
    %c0_76 = arith.constant 0 : index
    %c0_77 = arith.constant 0 : index
    %249 = vector.load %arg13[%c4, %c0_76, %c0_77] : memref<14x8x256xf32, #tpu.memory_space<vmem>>, vector<1x8x256xf32>
    %250 = vector.shape_cast %249 : vector<1x8x256xf32> to vector<8x256xf32>
    %c0_78 = arith.constant 0 : index
    %c0_79 = arith.constant 0 : index
    %251 = vector.load %arg4[%c0_78, %c0_79] : memref<64x256xf32, #tpu.memory_space<vmem>>, vector<64x256xf32>
    %cst_80 = arith.constant dense<0.000000e+00> : vector<8x256xf32>
    %252 = tpu.matmul %214, %251, %cst_80 {dimension_numbers = #tpu.dot_dimension_numbers<[1], [0], [0], [1], [0, 0, 1, 1], [], []>} : vector<8x64xf32>, vector<64x256xf32>, vector<8x256xf32> -> vector<8x256xf32>
    %253 = arith.addf %250, %252 : vector<8x256xf32>
    %254 = arith.negf %253 : vector<8x256xf32>
    %255 = math.exp %254 : vector<8x256xf32>
    %cst_81 = arith.constant 1.000000e+00 : f32
    %256 = vector.broadcast %cst_81 : f32 to vector<8x256xf32>
    %257 = arith.addf %256, %255 : vector<8x256xf32>
    %258 = arith.divf %256, %257 : vector<8x256xf32>
    %259 = math.tanh %253 : vector<8x256xf32>
    %260 = vector.extract_strided_slice %258 {offsets = [0, 0], sizes = [8, 64], strides = [1, 1]} : vector<8x256xf32> to vector<8x64xf32>
    %261 = vector.extract_strided_slice %258 {offsets = [0, 64], sizes = [8, 64], strides = [1, 1]} : vector<8x256xf32> to vector<8x64xf32>
    %262 = vector.extract_strided_slice %259 {offsets = [0, 128], sizes = [8, 64], strides = [1, 1]} : vector<8x256xf32> to vector<8x64xf32>
    %263 = vector.extract_strided_slice %258 {offsets = [0, 192], sizes = [8, 64], strides = [1, 1]} : vector<8x256xf32> to vector<8x64xf32>
    %264 = arith.mulf %261, %217 : vector<8x64xf32>
    %265 = arith.mulf %260, %262 : vector<8x64xf32>
    %266 = arith.addf %264, %265 : vector<8x64xf32>
    %267 = math.tanh %266 : vector<8x64xf32>
    %268 = arith.mulf %263, %267 : vector<8x64xf32>
    %269 = vector.shape_cast %248 : vector<8x1xi1> to vector<8x1xi1>
    %270 = vector.broadcast %269 : vector<8x1xi1> to vector<8x64xi1>
    %271 = arith.select %270, %268, %214 : vector<8x64xi1>, vector<8x64xf32>
    %272 = vector.shape_cast %248 : vector<8x1xi1> to vector<8x1xi1>
    %273 = vector.broadcast %272 : vector<8x1xi1> to vector<8x64xi1>
    %274 = arith.select %273, %266, %217 : vector<8x64xi1>, vector<8x64xf32>
    %c0_82 = arith.constant 0 : index
    %c0_83 = arith.constant 0 : index
    %275 = vector.load %arg6[%c0_82, %c0_83] : memref<64x256xf32, #tpu.memory_space<vmem>>, vector<64x256xf32>
    %cst_84 = arith.constant dense<0.000000e+00> : vector<8x256xf32>
    %276 = tpu.matmul %271, %275, %cst_84 {dimension_numbers = #tpu.dot_dimension_numbers<[1], [0], [0], [1], [0, 0, 1, 1], [], []>} : vector<8x64xf32>, vector<64x256xf32>, vector<8x256xf32> -> vector<8x256xf32>
    %c0_85 = arith.constant 0 : index
    %c0_86 = arith.constant 0 : index
    %277 = vector.load %arg8[%c0_85, %c0_86] : memref<8x256xf32, #tpu.memory_space<vmem>>, vector<8x256xf32>
    %278 = arith.addf %276, %277 : vector<8x256xf32>
    %c0_87 = arith.constant 0 : index
    %c0_88 = arith.constant 0 : index
    %279 = vector.load %arg7[%c0_87, %c0_88] : memref<64x256xf32, #tpu.memory_space<vmem>>, vector<64x256xf32>
    %cst_89 = arith.constant dense<0.000000e+00> : vector<8x256xf32>
    %280 = tpu.matmul %242, %279, %cst_89 {dimension_numbers = #tpu.dot_dimension_numbers<[1], [0], [0], [1], [0, 0, 1, 1], [], []>} : vector<8x64xf32>, vector<64x256xf32>, vector<8x256xf32> -> vector<8x256xf32>
    %281 = arith.addf %278, %280 : vector<8x256xf32>
    %282 = arith.negf %281 : vector<8x256xf32>
    %283 = math.exp %282 : vector<8x256xf32>
    %cst_90 = arith.constant 1.000000e+00 : f32
    %284 = vector.broadcast %cst_90 : f32 to vector<8x256xf32>
    %285 = arith.addf %284, %283 : vector<8x256xf32>
    %286 = arith.divf %284, %285 : vector<8x256xf32>
    %287 = math.tanh %281 : vector<8x256xf32>
    %288 = vector.extract_strided_slice %286 {offsets = [0, 0], sizes = [8, 64], strides = [1, 1]} : vector<8x256xf32> to vector<8x64xf32>
    %289 = vector.extract_strided_slice %286 {offsets = [0, 64], sizes = [8, 64], strides = [1, 1]} : vector<8x256xf32> to vector<8x64xf32>
    %290 = vector.extract_strided_slice %287 {offsets = [0, 128], sizes = [8, 64], strides = [1, 1]} : vector<8x256xf32> to vector<8x64xf32>
    %291 = vector.extract_strided_slice %286 {offsets = [0, 192], sizes = [8, 64], strides = [1, 1]} : vector<8x256xf32> to vector<8x64xf32>
    %292 = arith.mulf %289, %245 : vector<8x64xf32>
    %293 = arith.mulf %288, %290 : vector<8x64xf32>
    %294 = arith.addf %292, %293 : vector<8x64xf32>
    %295 = math.tanh %294 : vector<8x64xf32>
    %296 = arith.mulf %291, %295 : vector<8x64xf32>
    %297 = vector.shape_cast %248 : vector<8x1xi1> to vector<8x1xi1>
    %298 = vector.broadcast %297 : vector<8x1xi1> to vector<8x64xi1>
    %299 = arith.select %298, %296, %242 : vector<8x64xi1>, vector<8x64xf32>
    %300 = vector.shape_cast %248 : vector<8x1xi1> to vector<8x1xi1>
    %301 = vector.broadcast %300 : vector<8x1xi1> to vector<8x64xi1>
    %302 = arith.select %301, %294, %245 : vector<8x64xi1>, vector<8x64xf32>
    %c5_i32 = arith.constant 5 : i32
    %303 = vector.broadcast %c5_i32 : i32 to vector<8x1xi32>
    %304 = vector.broadcast %0 : i32 to vector<8x1xi32>
    %305 = arith.cmpi slt, %303, %304 : vector<8x1xi32>
    %c5 = arith.constant 5 : index
    %c0_91 = arith.constant 0 : index
    %c0_92 = arith.constant 0 : index
    %306 = vector.load %arg13[%c5, %c0_91, %c0_92] : memref<14x8x256xf32, #tpu.memory_space<vmem>>, vector<1x8x256xf32>
    %307 = vector.shape_cast %306 : vector<1x8x256xf32> to vector<8x256xf32>
    %c0_93 = arith.constant 0 : index
    %c0_94 = arith.constant 0 : index
    %308 = vector.load %arg4[%c0_93, %c0_94] : memref<64x256xf32, #tpu.memory_space<vmem>>, vector<64x256xf32>
    %cst_95 = arith.constant dense<0.000000e+00> : vector<8x256xf32>
    %309 = tpu.matmul %271, %308, %cst_95 {dimension_numbers = #tpu.dot_dimension_numbers<[1], [0], [0], [1], [0, 0, 1, 1], [], []>} : vector<8x64xf32>, vector<64x256xf32>, vector<8x256xf32> -> vector<8x256xf32>
    %310 = arith.addf %307, %309 : vector<8x256xf32>
    %311 = arith.negf %310 : vector<8x256xf32>
    %312 = math.exp %311 : vector<8x256xf32>
    %cst_96 = arith.constant 1.000000e+00 : f32
    %313 = vector.broadcast %cst_96 : f32 to vector<8x256xf32>
    %314 = arith.addf %313, %312 : vector<8x256xf32>
    %315 = arith.divf %313, %314 : vector<8x256xf32>
    %316 = math.tanh %310 : vector<8x256xf32>
    %317 = vector.extract_strided_slice %315 {offsets = [0, 0], sizes = [8, 64], strides = [1, 1]} : vector<8x256xf32> to vector<8x64xf32>
    %318 = vector.extract_strided_slice %315 {offsets = [0, 64], sizes = [8, 64], strides = [1, 1]} : vector<8x256xf32> to vector<8x64xf32>
    %319 = vector.extract_strided_slice %316 {offsets = [0, 128], sizes = [8, 64], strides = [1, 1]} : vector<8x256xf32> to vector<8x64xf32>
    %320 = vector.extract_strided_slice %315 {offsets = [0, 192], sizes = [8, 64], strides = [1, 1]} : vector<8x256xf32> to vector<8x64xf32>
    %321 = arith.mulf %318, %274 : vector<8x64xf32>
    %322 = arith.mulf %317, %319 : vector<8x64xf32>
    %323 = arith.addf %321, %322 : vector<8x64xf32>
    %324 = math.tanh %323 : vector<8x64xf32>
    %325 = arith.mulf %320, %324 : vector<8x64xf32>
    %326 = vector.shape_cast %305 : vector<8x1xi1> to vector<8x1xi1>
    %327 = vector.broadcast %326 : vector<8x1xi1> to vector<8x64xi1>
    %328 = arith.select %327, %325, %271 : vector<8x64xi1>, vector<8x64xf32>
    %329 = vector.shape_cast %305 : vector<8x1xi1> to vector<8x1xi1>
    %330 = vector.broadcast %329 : vector<8x1xi1> to vector<8x64xi1>
    %331 = arith.select %330, %323, %274 : vector<8x64xi1>, vector<8x64xf32>
    %c0_97 = arith.constant 0 : index
    %c0_98 = arith.constant 0 : index
    %332 = vector.load %arg6[%c0_97, %c0_98] : memref<64x256xf32, #tpu.memory_space<vmem>>, vector<64x256xf32>
    %cst_99 = arith.constant dense<0.000000e+00> : vector<8x256xf32>
    %333 = tpu.matmul %328, %332, %cst_99 {dimension_numbers = #tpu.dot_dimension_numbers<[1], [0], [0], [1], [0, 0, 1, 1], [], []>} : vector<8x64xf32>, vector<64x256xf32>, vector<8x256xf32> -> vector<8x256xf32>
    %c0_100 = arith.constant 0 : index
    %c0_101 = arith.constant 0 : index
    %334 = vector.load %arg8[%c0_100, %c0_101] : memref<8x256xf32, #tpu.memory_space<vmem>>, vector<8x256xf32>
    %335 = arith.addf %333, %334 : vector<8x256xf32>
    %c0_102 = arith.constant 0 : index
    %c0_103 = arith.constant 0 : index
    %336 = vector.load %arg7[%c0_102, %c0_103] : memref<64x256xf32, #tpu.memory_space<vmem>>, vector<64x256xf32>
    %cst_104 = arith.constant dense<0.000000e+00> : vector<8x256xf32>
    %337 = tpu.matmul %299, %336, %cst_104 {dimension_numbers = #tpu.dot_dimension_numbers<[1], [0], [0], [1], [0, 0, 1, 1], [], []>} : vector<8x64xf32>, vector<64x256xf32>, vector<8x256xf32> -> vector<8x256xf32>
    %338 = arith.addf %335, %337 : vector<8x256xf32>
    %339 = arith.negf %338 : vector<8x256xf32>
    %340 = math.exp %339 : vector<8x256xf32>
    %cst_105 = arith.constant 1.000000e+00 : f32
    %341 = vector.broadcast %cst_105 : f32 to vector<8x256xf32>
    %342 = arith.addf %341, %340 : vector<8x256xf32>
    %343 = arith.divf %341, %342 : vector<8x256xf32>
    %344 = math.tanh %338 : vector<8x256xf32>
    %345 = vector.extract_strided_slice %343 {offsets = [0, 0], sizes = [8, 64], strides = [1, 1]} : vector<8x256xf32> to vector<8x64xf32>
    %346 = vector.extract_strided_slice %343 {offsets = [0, 64], sizes = [8, 64], strides = [1, 1]} : vector<8x256xf32> to vector<8x64xf32>
    %347 = vector.extract_strided_slice %344 {offsets = [0, 128], sizes = [8, 64], strides = [1, 1]} : vector<8x256xf32> to vector<8x64xf32>
    %348 = vector.extract_strided_slice %343 {offsets = [0, 192], sizes = [8, 64], strides = [1, 1]} : vector<8x256xf32> to vector<8x64xf32>
    %349 = arith.mulf %346, %302 : vector<8x64xf32>
    %350 = arith.mulf %345, %347 : vector<8x64xf32>
    %351 = arith.addf %349, %350 : vector<8x64xf32>
    %352 = math.tanh %351 : vector<8x64xf32>
    %353 = arith.mulf %348, %352 : vector<8x64xf32>
    %354 = vector.shape_cast %305 : vector<8x1xi1> to vector<8x1xi1>
    %355 = vector.broadcast %354 : vector<8x1xi1> to vector<8x64xi1>
    %356 = arith.select %355, %353, %299 : vector<8x64xi1>, vector<8x64xf32>
    %357 = vector.shape_cast %305 : vector<8x1xi1> to vector<8x1xi1>
    %358 = vector.broadcast %357 : vector<8x1xi1> to vector<8x64xi1>
    %359 = arith.select %358, %351, %302 : vector<8x64xi1>, vector<8x64xf32>
    %c6_i32 = arith.constant 6 : i32
    %360 = vector.broadcast %c6_i32 : i32 to vector<8x1xi32>
    %361 = vector.broadcast %0 : i32 to vector<8x1xi32>
    %362 = arith.cmpi slt, %360, %361 : vector<8x1xi32>
    %c6 = arith.constant 6 : index
    %c0_106 = arith.constant 0 : index
    %c0_107 = arith.constant 0 : index
    %363 = vector.load %arg13[%c6, %c0_106, %c0_107] : memref<14x8x256xf32, #tpu.memory_space<vmem>>, vector<1x8x256xf32>
    %364 = vector.shape_cast %363 : vector<1x8x256xf32> to vector<8x256xf32>
    %c0_108 = arith.constant 0 : index
    %c0_109 = arith.constant 0 : index
    %365 = vector.load %arg4[%c0_108, %c0_109] : memref<64x256xf32, #tpu.memory_space<vmem>>, vector<64x256xf32>
    %cst_110 = arith.constant dense<0.000000e+00> : vector<8x256xf32>
    %366 = tpu.matmul %328, %365, %cst_110 {dimension_numbers = #tpu.dot_dimension_numbers<[1], [0], [0], [1], [0, 0, 1, 1], [], []>} : vector<8x64xf32>, vector<64x256xf32>, vector<8x256xf32> -> vector<8x256xf32>
    %367 = arith.addf %364, %366 : vector<8x256xf32>
    %368 = arith.negf %367 : vector<8x256xf32>
    %369 = math.exp %368 : vector<8x256xf32>
    %cst_111 = arith.constant 1.000000e+00 : f32
    %370 = vector.broadcast %cst_111 : f32 to vector<8x256xf32>
    %371 = arith.addf %370, %369 : vector<8x256xf32>
    %372 = arith.divf %370, %371 : vector<8x256xf32>
    %373 = math.tanh %367 : vector<8x256xf32>
    %374 = vector.extract_strided_slice %372 {offsets = [0, 0], sizes = [8, 64], strides = [1, 1]} : vector<8x256xf32> to vector<8x64xf32>
    %375 = vector.extract_strided_slice %372 {offsets = [0, 64], sizes = [8, 64], strides = [1, 1]} : vector<8x256xf32> to vector<8x64xf32>
    %376 = vector.extract_strided_slice %373 {offsets = [0, 128], sizes = [8, 64], strides = [1, 1]} : vector<8x256xf32> to vector<8x64xf32>
    %377 = vector.extract_strided_slice %372 {offsets = [0, 192], sizes = [8, 64], strides = [1, 1]} : vector<8x256xf32> to vector<8x64xf32>
    %378 = arith.mulf %375, %331 : vector<8x64xf32>
    %379 = arith.mulf %374, %376 : vector<8x64xf32>
    %380 = arith.addf %378, %379 : vector<8x64xf32>
    %381 = math.tanh %380 : vector<8x64xf32>
    %382 = arith.mulf %377, %381 : vector<8x64xf32>
    %383 = vector.shape_cast %362 : vector<8x1xi1> to vector<8x1xi1>
    %384 = vector.broadcast %383 : vector<8x1xi1> to vector<8x64xi1>
    %385 = arith.select %384, %382, %328 : vector<8x64xi1>, vector<8x64xf32>
    %386 = vector.shape_cast %362 : vector<8x1xi1> to vector<8x1xi1>
    %387 = vector.broadcast %386 : vector<8x1xi1> to vector<8x64xi1>
    %388 = arith.select %387, %380, %331 : vector<8x64xi1>, vector<8x64xf32>
    %c0_112 = arith.constant 0 : index
    %c0_113 = arith.constant 0 : index
    %389 = vector.load %arg6[%c0_112, %c0_113] : memref<64x256xf32, #tpu.memory_space<vmem>>, vector<64x256xf32>
    %cst_114 = arith.constant dense<0.000000e+00> : vector<8x256xf32>
    %390 = tpu.matmul %385, %389, %cst_114 {dimension_numbers = #tpu.dot_dimension_numbers<[1], [0], [0], [1], [0, 0, 1, 1], [], []>} : vector<8x64xf32>, vector<64x256xf32>, vector<8x256xf32> -> vector<8x256xf32>
    %c0_115 = arith.constant 0 : index
    %c0_116 = arith.constant 0 : index
    %391 = vector.load %arg8[%c0_115, %c0_116] : memref<8x256xf32, #tpu.memory_space<vmem>>, vector<8x256xf32>
    %392 = arith.addf %390, %391 : vector<8x256xf32>
    %c0_117 = arith.constant 0 : index
    %c0_118 = arith.constant 0 : index
    %393 = vector.load %arg7[%c0_117, %c0_118] : memref<64x256xf32, #tpu.memory_space<vmem>>, vector<64x256xf32>
    %cst_119 = arith.constant dense<0.000000e+00> : vector<8x256xf32>
    %394 = tpu.matmul %356, %393, %cst_119 {dimension_numbers = #tpu.dot_dimension_numbers<[1], [0], [0], [1], [0, 0, 1, 1], [], []>} : vector<8x64xf32>, vector<64x256xf32>, vector<8x256xf32> -> vector<8x256xf32>
    %395 = arith.addf %392, %394 : vector<8x256xf32>
    %396 = arith.negf %395 : vector<8x256xf32>
    %397 = math.exp %396 : vector<8x256xf32>
    %cst_120 = arith.constant 1.000000e+00 : f32
    %398 = vector.broadcast %cst_120 : f32 to vector<8x256xf32>
    %399 = arith.addf %398, %397 : vector<8x256xf32>
    %400 = arith.divf %398, %399 : vector<8x256xf32>
    %401 = math.tanh %395 : vector<8x256xf32>
    %402 = vector.extract_strided_slice %400 {offsets = [0, 0], sizes = [8, 64], strides = [1, 1]} : vector<8x256xf32> to vector<8x64xf32>
    %403 = vector.extract_strided_slice %400 {offsets = [0, 64], sizes = [8, 64], strides = [1, 1]} : vector<8x256xf32> to vector<8x64xf32>
    %404 = vector.extract_strided_slice %401 {offsets = [0, 128], sizes = [8, 64], strides = [1, 1]} : vector<8x256xf32> to vector<8x64xf32>
    %405 = vector.extract_strided_slice %400 {offsets = [0, 192], sizes = [8, 64], strides = [1, 1]} : vector<8x256xf32> to vector<8x64xf32>
    %406 = arith.mulf %403, %359 : vector<8x64xf32>
    %407 = arith.mulf %402, %404 : vector<8x64xf32>
    %408 = arith.addf %406, %407 : vector<8x64xf32>
    %409 = math.tanh %408 : vector<8x64xf32>
    %410 = arith.mulf %405, %409 : vector<8x64xf32>
    %411 = vector.shape_cast %362 : vector<8x1xi1> to vector<8x1xi1>
    %412 = vector.broadcast %411 : vector<8x1xi1> to vector<8x64xi1>
    %413 = arith.select %412, %410, %356 : vector<8x64xi1>, vector<8x64xf32>
    %414 = vector.shape_cast %362 : vector<8x1xi1> to vector<8x1xi1>
    %415 = vector.broadcast %414 : vector<8x1xi1> to vector<8x64xi1>
    %416 = arith.select %415, %408, %359 : vector<8x64xi1>, vector<8x64xf32>
    %c7_i32 = arith.constant 7 : i32
    %417 = vector.broadcast %c7_i32 : i32 to vector<8x1xi32>
    %418 = vector.broadcast %0 : i32 to vector<8x1xi32>
    %419 = arith.cmpi slt, %417, %418 : vector<8x1xi32>
    %c7 = arith.constant 7 : index
    %c0_121 = arith.constant 0 : index
    %c0_122 = arith.constant 0 : index
    %420 = vector.load %arg13[%c7, %c0_121, %c0_122] : memref<14x8x256xf32, #tpu.memory_space<vmem>>, vector<1x8x256xf32>
    %421 = vector.shape_cast %420 : vector<1x8x256xf32> to vector<8x256xf32>
    %c0_123 = arith.constant 0 : index
    %c0_124 = arith.constant 0 : index
    %422 = vector.load %arg4[%c0_123, %c0_124] : memref<64x256xf32, #tpu.memory_space<vmem>>, vector<64x256xf32>
    %cst_125 = arith.constant dense<0.000000e+00> : vector<8x256xf32>
    %423 = tpu.matmul %385, %422, %cst_125 {dimension_numbers = #tpu.dot_dimension_numbers<[1], [0], [0], [1], [0, 0, 1, 1], [], []>} : vector<8x64xf32>, vector<64x256xf32>, vector<8x256xf32> -> vector<8x256xf32>
    %424 = arith.addf %421, %423 : vector<8x256xf32>
    %425 = arith.negf %424 : vector<8x256xf32>
    %426 = math.exp %425 : vector<8x256xf32>
    %cst_126 = arith.constant 1.000000e+00 : f32
    %427 = vector.broadcast %cst_126 : f32 to vector<8x256xf32>
    %428 = arith.addf %427, %426 : vector<8x256xf32>
    %429 = arith.divf %427, %428 : vector<8x256xf32>
    %430 = math.tanh %424 : vector<8x256xf32>
    %431 = vector.extract_strided_slice %429 {offsets = [0, 0], sizes = [8, 64], strides = [1, 1]} : vector<8x256xf32> to vector<8x64xf32>
    %432 = vector.extract_strided_slice %429 {offsets = [0, 64], sizes = [8, 64], strides = [1, 1]} : vector<8x256xf32> to vector<8x64xf32>
    %433 = vector.extract_strided_slice %430 {offsets = [0, 128], sizes = [8, 64], strides = [1, 1]} : vector<8x256xf32> to vector<8x64xf32>
    %434 = vector.extract_strided_slice %429 {offsets = [0, 192], sizes = [8, 64], strides = [1, 1]} : vector<8x256xf32> to vector<8x64xf32>
    %435 = arith.mulf %432, %388 : vector<8x64xf32>
    %436 = arith.mulf %431, %433 : vector<8x64xf32>
    %437 = arith.addf %435, %436 : vector<8x64xf32>
    %438 = math.tanh %437 : vector<8x64xf32>
    %439 = arith.mulf %434, %438 : vector<8x64xf32>
    %440 = vector.shape_cast %419 : vector<8x1xi1> to vector<8x1xi1>
    %441 = vector.broadcast %440 : vector<8x1xi1> to vector<8x64xi1>
    %442 = arith.select %441, %439, %385 : vector<8x64xi1>, vector<8x64xf32>
    %443 = vector.shape_cast %419 : vector<8x1xi1> to vector<8x1xi1>
    %444 = vector.broadcast %443 : vector<8x1xi1> to vector<8x64xi1>
    %445 = arith.select %444, %437, %388 : vector<8x64xi1>, vector<8x64xf32>
    %c0_127 = arith.constant 0 : index
    %c0_128 = arith.constant 0 : index
    %446 = vector.load %arg6[%c0_127, %c0_128] : memref<64x256xf32, #tpu.memory_space<vmem>>, vector<64x256xf32>
    %cst_129 = arith.constant dense<0.000000e+00> : vector<8x256xf32>
    %447 = tpu.matmul %442, %446, %cst_129 {dimension_numbers = #tpu.dot_dimension_numbers<[1], [0], [0], [1], [0, 0, 1, 1], [], []>} : vector<8x64xf32>, vector<64x256xf32>, vector<8x256xf32> -> vector<8x256xf32>
    %c0_130 = arith.constant 0 : index
    %c0_131 = arith.constant 0 : index
    %448 = vector.load %arg8[%c0_130, %c0_131] : memref<8x256xf32, #tpu.memory_space<vmem>>, vector<8x256xf32>
    %449 = arith.addf %447, %448 : vector<8x256xf32>
    %c0_132 = arith.constant 0 : index
    %c0_133 = arith.constant 0 : index
    %450 = vector.load %arg7[%c0_132, %c0_133] : memref<64x256xf32, #tpu.memory_space<vmem>>, vector<64x256xf32>
    %cst_134 = arith.constant dense<0.000000e+00> : vector<8x256xf32>
    %451 = tpu.matmul %413, %450, %cst_134 {dimension_numbers = #tpu.dot_dimension_numbers<[1], [0], [0], [1], [0, 0, 1, 1], [], []>} : vector<8x64xf32>, vector<64x256xf32>, vector<8x256xf32> -> vector<8x256xf32>
    %452 = arith.addf %449, %451 : vector<8x256xf32>
    %453 = arith.negf %452 : vector<8x256xf32>
    %454 = math.exp %453 : vector<8x256xf32>
    %cst_135 = arith.constant 1.000000e+00 : f32
    %455 = vector.broadcast %cst_135 : f32 to vector<8x256xf32>
    %456 = arith.addf %455, %454 : vector<8x256xf32>
    %457 = arith.divf %455, %456 : vector<8x256xf32>
    %458 = math.tanh %452 : vector<8x256xf32>
    %459 = vector.extract_strided_slice %457 {offsets = [0, 0], sizes = [8, 64], strides = [1, 1]} : vector<8x256xf32> to vector<8x64xf32>
    %460 = vector.extract_strided_slice %457 {offsets = [0, 64], sizes = [8, 64], strides = [1, 1]} : vector<8x256xf32> to vector<8x64xf32>
    %461 = vector.extract_strided_slice %458 {offsets = [0, 128], sizes = [8, 64], strides = [1, 1]} : vector<8x256xf32> to vector<8x64xf32>
    %462 = vector.extract_strided_slice %457 {offsets = [0, 192], sizes = [8, 64], strides = [1, 1]} : vector<8x256xf32> to vector<8x64xf32>
    %463 = arith.mulf %460, %416 : vector<8x64xf32>
    %464 = arith.mulf %459, %461 : vector<8x64xf32>
    %465 = arith.addf %463, %464 : vector<8x64xf32>
    %466 = math.tanh %465 : vector<8x64xf32>
    %467 = arith.mulf %462, %466 : vector<8x64xf32>
    %468 = vector.shape_cast %419 : vector<8x1xi1> to vector<8x1xi1>
    %469 = vector.broadcast %468 : vector<8x1xi1> to vector<8x64xi1>
    %470 = arith.select %469, %467, %413 : vector<8x64xi1>, vector<8x64xf32>
    %471 = vector.shape_cast %419 : vector<8x1xi1> to vector<8x1xi1>
    %472 = vector.broadcast %471 : vector<8x1xi1> to vector<8x64xi1>
    %473 = arith.select %472, %465, %416 : vector<8x64xi1>, vector<8x64xf32>
    %c8_i32 = arith.constant 8 : i32
    %474 = vector.broadcast %c8_i32 : i32 to vector<8x1xi32>
    %475 = vector.broadcast %0 : i32 to vector<8x1xi32>
    %476 = arith.cmpi slt, %474, %475 : vector<8x1xi32>
    %c8 = arith.constant 8 : index
    %c0_136 = arith.constant 0 : index
    %c0_137 = arith.constant 0 : index
    %477 = vector.load %arg13[%c8, %c0_136, %c0_137] : memref<14x8x256xf32, #tpu.memory_space<vmem>>, vector<1x8x256xf32>
    %478 = vector.shape_cast %477 : vector<1x8x256xf32> to vector<8x256xf32>
    %c0_138 = arith.constant 0 : index
    %c0_139 = arith.constant 0 : index
    %479 = vector.load %arg4[%c0_138, %c0_139] : memref<64x256xf32, #tpu.memory_space<vmem>>, vector<64x256xf32>
    %cst_140 = arith.constant dense<0.000000e+00> : vector<8x256xf32>
    %480 = tpu.matmul %442, %479, %cst_140 {dimension_numbers = #tpu.dot_dimension_numbers<[1], [0], [0], [1], [0, 0, 1, 1], [], []>} : vector<8x64xf32>, vector<64x256xf32>, vector<8x256xf32> -> vector<8x256xf32>
    %481 = arith.addf %478, %480 : vector<8x256xf32>
    %482 = arith.negf %481 : vector<8x256xf32>
    %483 = math.exp %482 : vector<8x256xf32>
    %cst_141 = arith.constant 1.000000e+00 : f32
    %484 = vector.broadcast %cst_141 : f32 to vector<8x256xf32>
    %485 = arith.addf %484, %483 : vector<8x256xf32>
    %486 = arith.divf %484, %485 : vector<8x256xf32>
    %487 = math.tanh %481 : vector<8x256xf32>
    %488 = vector.extract_strided_slice %486 {offsets = [0, 0], sizes = [8, 64], strides = [1, 1]} : vector<8x256xf32> to vector<8x64xf32>
    %489 = vector.extract_strided_slice %486 {offsets = [0, 64], sizes = [8, 64], strides = [1, 1]} : vector<8x256xf32> to vector<8x64xf32>
    %490 = vector.extract_strided_slice %487 {offsets = [0, 128], sizes = [8, 64], strides = [1, 1]} : vector<8x256xf32> to vector<8x64xf32>
    %491 = vector.extract_strided_slice %486 {offsets = [0, 192], sizes = [8, 64], strides = [1, 1]} : vector<8x256xf32> to vector<8x64xf32>
    %492 = arith.mulf %489, %445 : vector<8x64xf32>
    %493 = arith.mulf %488, %490 : vector<8x64xf32>
    %494 = arith.addf %492, %493 : vector<8x64xf32>
    %495 = math.tanh %494 : vector<8x64xf32>
    %496 = arith.mulf %491, %495 : vector<8x64xf32>
    %497 = vector.shape_cast %476 : vector<8x1xi1> to vector<8x1xi1>
    %498 = vector.broadcast %497 : vector<8x1xi1> to vector<8x64xi1>
    %499 = arith.select %498, %496, %442 : vector<8x64xi1>, vector<8x64xf32>
    %500 = vector.shape_cast %476 : vector<8x1xi1> to vector<8x1xi1>
    %501 = vector.broadcast %500 : vector<8x1xi1> to vector<8x64xi1>
    %502 = arith.select %501, %494, %445 : vector<8x64xi1>, vector<8x64xf32>
    %c0_142 = arith.constant 0 : index
    %c0_143 = arith.constant 0 : index
    %503 = vector.load %arg6[%c0_142, %c0_143] : memref<64x256xf32, #tpu.memory_space<vmem>>, vector<64x256xf32>
    %cst_144 = arith.constant dense<0.000000e+00> : vector<8x256xf32>
    %504 = tpu.matmul %499, %503, %cst_144 {dimension_numbers = #tpu.dot_dimension_numbers<[1], [0], [0], [1], [0, 0, 1, 1], [], []>} : vector<8x64xf32>, vector<64x256xf32>, vector<8x256xf32> -> vector<8x256xf32>
    %c0_145 = arith.constant 0 : index
    %c0_146 = arith.constant 0 : index
    %505 = vector.load %arg8[%c0_145, %c0_146] : memref<8x256xf32, #tpu.memory_space<vmem>>, vector<8x256xf32>
    %506 = arith.addf %504, %505 : vector<8x256xf32>
    %c0_147 = arith.constant 0 : index
    %c0_148 = arith.constant 0 : index
    %507 = vector.load %arg7[%c0_147, %c0_148] : memref<64x256xf32, #tpu.memory_space<vmem>>, vector<64x256xf32>
    %cst_149 = arith.constant dense<0.000000e+00> : vector<8x256xf32>
    %508 = tpu.matmul %470, %507, %cst_149 {dimension_numbers = #tpu.dot_dimension_numbers<[1], [0], [0], [1], [0, 0, 1, 1], [], []>} : vector<8x64xf32>, vector<64x256xf32>, vector<8x256xf32> -> vector<8x256xf32>
    %509 = arith.addf %506, %508 : vector<8x256xf32>
    %510 = arith.negf %509 : vector<8x256xf32>
    %511 = math.exp %510 : vector<8x256xf32>
    %cst_150 = arith.constant 1.000000e+00 : f32
    %512 = vector.broadcast %cst_150 : f32 to vector<8x256xf32>
    %513 = arith.addf %512, %511 : vector<8x256xf32>
    %514 = arith.divf %512, %513 : vector<8x256xf32>
    %515 = math.tanh %509 : vector<8x256xf32>
    %516 = vector.extract_strided_slice %514 {offsets = [0, 0], sizes = [8, 64], strides = [1, 1]} : vector<8x256xf32> to vector<8x64xf32>
    %517 = vector.extract_strided_slice %514 {offsets = [0, 64], sizes = [8, 64], strides = [1, 1]} : vector<8x256xf32> to vector<8x64xf32>
    %518 = vector.extract_strided_slice %515 {offsets = [0, 128], sizes = [8, 64], strides = [1, 1]} : vector<8x256xf32> to vector<8x64xf32>
    %519 = vector.extract_strided_slice %514 {offsets = [0, 192], sizes = [8, 64], strides = [1, 1]} : vector<8x256xf32> to vector<8x64xf32>
    %520 = arith.mulf %517, %473 : vector<8x64xf32>
    %521 = arith.mulf %516, %518 : vector<8x64xf32>
    %522 = arith.addf %520, %521 : vector<8x64xf32>
    %523 = math.tanh %522 : vector<8x64xf32>
    %524 = arith.mulf %519, %523 : vector<8x64xf32>
    %525 = vector.shape_cast %476 : vector<8x1xi1> to vector<8x1xi1>
    %526 = vector.broadcast %525 : vector<8x1xi1> to vector<8x64xi1>
    %527 = arith.select %526, %524, %470 : vector<8x64xi1>, vector<8x64xf32>
    %528 = vector.shape_cast %476 : vector<8x1xi1> to vector<8x1xi1>
    %529 = vector.broadcast %528 : vector<8x1xi1> to vector<8x64xi1>
    %530 = arith.select %529, %522, %473 : vector<8x64xi1>, vector<8x64xf32>
    %c9_i32 = arith.constant 9 : i32
    %531 = vector.broadcast %c9_i32 : i32 to vector<8x1xi32>
    %532 = vector.broadcast %0 : i32 to vector<8x1xi32>
    %533 = arith.cmpi slt, %531, %532 : vector<8x1xi32>
    %c9 = arith.constant 9 : index
    %c0_151 = arith.constant 0 : index
    %c0_152 = arith.constant 0 : index
    %534 = vector.load %arg13[%c9, %c0_151, %c0_152] : memref<14x8x256xf32, #tpu.memory_space<vmem>>, vector<1x8x256xf32>
    %535 = vector.shape_cast %534 : vector<1x8x256xf32> to vector<8x256xf32>
    %c0_153 = arith.constant 0 : index
    %c0_154 = arith.constant 0 : index
    %536 = vector.load %arg4[%c0_153, %c0_154] : memref<64x256xf32, #tpu.memory_space<vmem>>, vector<64x256xf32>
    %cst_155 = arith.constant dense<0.000000e+00> : vector<8x256xf32>
    %537 = tpu.matmul %499, %536, %cst_155 {dimension_numbers = #tpu.dot_dimension_numbers<[1], [0], [0], [1], [0, 0, 1, 1], [], []>} : vector<8x64xf32>, vector<64x256xf32>, vector<8x256xf32> -> vector<8x256xf32>
    %538 = arith.addf %535, %537 : vector<8x256xf32>
    %539 = arith.negf %538 : vector<8x256xf32>
    %540 = math.exp %539 : vector<8x256xf32>
    %cst_156 = arith.constant 1.000000e+00 : f32
    %541 = vector.broadcast %cst_156 : f32 to vector<8x256xf32>
    %542 = arith.addf %541, %540 : vector<8x256xf32>
    %543 = arith.divf %541, %542 : vector<8x256xf32>
    %544 = math.tanh %538 : vector<8x256xf32>
    %545 = vector.extract_strided_slice %543 {offsets = [0, 0], sizes = [8, 64], strides = [1, 1]} : vector<8x256xf32> to vector<8x64xf32>
    %546 = vector.extract_strided_slice %543 {offsets = [0, 64], sizes = [8, 64], strides = [1, 1]} : vector<8x256xf32> to vector<8x64xf32>
    %547 = vector.extract_strided_slice %544 {offsets = [0, 128], sizes = [8, 64], strides = [1, 1]} : vector<8x256xf32> to vector<8x64xf32>
    %548 = vector.extract_strided_slice %543 {offsets = [0, 192], sizes = [8, 64], strides = [1, 1]} : vector<8x256xf32> to vector<8x64xf32>
    %549 = arith.mulf %546, %502 : vector<8x64xf32>
    %550 = arith.mulf %545, %547 : vector<8x64xf32>
    %551 = arith.addf %549, %550 : vector<8x64xf32>
    %552 = math.tanh %551 : vector<8x64xf32>
    %553 = arith.mulf %548, %552 : vector<8x64xf32>
    %554 = vector.shape_cast %533 : vector<8x1xi1> to vector<8x1xi1>
    %555 = vector.broadcast %554 : vector<8x1xi1> to vector<8x64xi1>
    %556 = arith.select %555, %553, %499 : vector<8x64xi1>, vector<8x64xf32>
    %557 = vector.shape_cast %533 : vector<8x1xi1> to vector<8x1xi1>
    %558 = vector.broadcast %557 : vector<8x1xi1> to vector<8x64xi1>
    %559 = arith.select %558, %551, %502 : vector<8x64xi1>, vector<8x64xf32>
    %c0_157 = arith.constant 0 : index
    %c0_158 = arith.constant 0 : index
    %560 = vector.load %arg6[%c0_157, %c0_158] : memref<64x256xf32, #tpu.memory_space<vmem>>, vector<64x256xf32>
    %cst_159 = arith.constant dense<0.000000e+00> : vector<8x256xf32>
    %561 = tpu.matmul %556, %560, %cst_159 {dimension_numbers = #tpu.dot_dimension_numbers<[1], [0], [0], [1], [0, 0, 1, 1], [], []>} : vector<8x64xf32>, vector<64x256xf32>, vector<8x256xf32> -> vector<8x256xf32>
    %c0_160 = arith.constant 0 : index
    %c0_161 = arith.constant 0 : index
    %562 = vector.load %arg8[%c0_160, %c0_161] : memref<8x256xf32, #tpu.memory_space<vmem>>, vector<8x256xf32>
    %563 = arith.addf %561, %562 : vector<8x256xf32>
    %c0_162 = arith.constant 0 : index
    %c0_163 = arith.constant 0 : index
    %564 = vector.load %arg7[%c0_162, %c0_163] : memref<64x256xf32, #tpu.memory_space<vmem>>, vector<64x256xf32>
    %cst_164 = arith.constant dense<0.000000e+00> : vector<8x256xf32>
    %565 = tpu.matmul %527, %564, %cst_164 {dimension_numbers = #tpu.dot_dimension_numbers<[1], [0], [0], [1], [0, 0, 1, 1], [], []>} : vector<8x64xf32>, vector<64x256xf32>, vector<8x256xf32> -> vector<8x256xf32>
    %566 = arith.addf %563, %565 : vector<8x256xf32>
    %567 = arith.negf %566 : vector<8x256xf32>
    %568 = math.exp %567 : vector<8x256xf32>
    %cst_165 = arith.constant 1.000000e+00 : f32
    %569 = vector.broadcast %cst_165 : f32 to vector<8x256xf32>
    %570 = arith.addf %569, %568 : vector<8x256xf32>
    %571 = arith.divf %569, %570 : vector<8x256xf32>
    %572 = math.tanh %566 : vector<8x256xf32>
    %573 = vector.extract_strided_slice %571 {offsets = [0, 0], sizes = [8, 64], strides = [1, 1]} : vector<8x256xf32> to vector<8x64xf32>
    %574 = vector.extract_strided_slice %571 {offsets = [0, 64], sizes = [8, 64], strides = [1, 1]} : vector<8x256xf32> to vector<8x64xf32>
    %575 = vector.extract_strided_slice %572 {offsets = [0, 128], sizes = [8, 64], strides = [1, 1]} : vector<8x256xf32> to vector<8x64xf32>
    %576 = vector.extract_strided_slice %571 {offsets = [0, 192], sizes = [8, 64], strides = [1, 1]} : vector<8x256xf32> to vector<8x64xf32>
    %577 = arith.mulf %574, %530 : vector<8x64xf32>
    %578 = arith.mulf %573, %575 : vector<8x64xf32>
    %579 = arith.addf %577, %578 : vector<8x64xf32>
    %580 = math.tanh %579 : vector<8x64xf32>
    %581 = arith.mulf %576, %580 : vector<8x64xf32>
    %582 = vector.shape_cast %533 : vector<8x1xi1> to vector<8x1xi1>
    %583 = vector.broadcast %582 : vector<8x1xi1> to vector<8x64xi1>
    %584 = arith.select %583, %581, %527 : vector<8x64xi1>, vector<8x64xf32>
    %585 = vector.shape_cast %533 : vector<8x1xi1> to vector<8x1xi1>
    %586 = vector.broadcast %585 : vector<8x1xi1> to vector<8x64xi1>
    %587 = arith.select %586, %579, %530 : vector<8x64xi1>, vector<8x64xf32>
    %c10_i32 = arith.constant 10 : i32
    %588 = vector.broadcast %c10_i32 : i32 to vector<8x1xi32>
    %589 = vector.broadcast %0 : i32 to vector<8x1xi32>
    %590 = arith.cmpi slt, %588, %589 : vector<8x1xi32>
    %c10 = arith.constant 10 : index
    %c0_166 = arith.constant 0 : index
    %c0_167 = arith.constant 0 : index
    %591 = vector.load %arg13[%c10, %c0_166, %c0_167] : memref<14x8x256xf32, #tpu.memory_space<vmem>>, vector<1x8x256xf32>
    %592 = vector.shape_cast %591 : vector<1x8x256xf32> to vector<8x256xf32>
    %c0_168 = arith.constant 0 : index
    %c0_169 = arith.constant 0 : index
    %593 = vector.load %arg4[%c0_168, %c0_169] : memref<64x256xf32, #tpu.memory_space<vmem>>, vector<64x256xf32>
    %cst_170 = arith.constant dense<0.000000e+00> : vector<8x256xf32>
    %594 = tpu.matmul %556, %593, %cst_170 {dimension_numbers = #tpu.dot_dimension_numbers<[1], [0], [0], [1], [0, 0, 1, 1], [], []>} : vector<8x64xf32>, vector<64x256xf32>, vector<8x256xf32> -> vector<8x256xf32>
    %595 = arith.addf %592, %594 : vector<8x256xf32>
    %596 = arith.negf %595 : vector<8x256xf32>
    %597 = math.exp %596 : vector<8x256xf32>
    %cst_171 = arith.constant 1.000000e+00 : f32
    %598 = vector.broadcast %cst_171 : f32 to vector<8x256xf32>
    %599 = arith.addf %598, %597 : vector<8x256xf32>
    %600 = arith.divf %598, %599 : vector<8x256xf32>
    %601 = math.tanh %595 : vector<8x256xf32>
    %602 = vector.extract_strided_slice %600 {offsets = [0, 0], sizes = [8, 64], strides = [1, 1]} : vector<8x256xf32> to vector<8x64xf32>
    %603 = vector.extract_strided_slice %600 {offsets = [0, 64], sizes = [8, 64], strides = [1, 1]} : vector<8x256xf32> to vector<8x64xf32>
    %604 = vector.extract_strided_slice %601 {offsets = [0, 128], sizes = [8, 64], strides = [1, 1]} : vector<8x256xf32> to vector<8x64xf32>
    %605 = vector.extract_strided_slice %600 {offsets = [0, 192], sizes = [8, 64], strides = [1, 1]} : vector<8x256xf32> to vector<8x64xf32>
    %606 = arith.mulf %603, %559 : vector<8x64xf32>
    %607 = arith.mulf %602, %604 : vector<8x64xf32>
    %608 = arith.addf %606, %607 : vector<8x64xf32>
    %609 = math.tanh %608 : vector<8x64xf32>
    %610 = arith.mulf %605, %609 : vector<8x64xf32>
    %611 = vector.shape_cast %590 : vector<8x1xi1> to vector<8x1xi1>
    %612 = vector.broadcast %611 : vector<8x1xi1> to vector<8x64xi1>
    %613 = arith.select %612, %610, %556 : vector<8x64xi1>, vector<8x64xf32>
    %614 = vector.shape_cast %590 : vector<8x1xi1> to vector<8x1xi1>
    %615 = vector.broadcast %614 : vector<8x1xi1> to vector<8x64xi1>
    %616 = arith.select %615, %608, %559 : vector<8x64xi1>, vector<8x64xf32>
    %c0_172 = arith.constant 0 : index
    %c0_173 = arith.constant 0 : index
    %617 = vector.load %arg6[%c0_172, %c0_173] : memref<64x256xf32, #tpu.memory_space<vmem>>, vector<64x256xf32>
    %cst_174 = arith.constant dense<0.000000e+00> : vector<8x256xf32>
    %618 = tpu.matmul %613, %617, %cst_174 {dimension_numbers = #tpu.dot_dimension_numbers<[1], [0], [0], [1], [0, 0, 1, 1], [], []>} : vector<8x64xf32>, vector<64x256xf32>, vector<8x256xf32> -> vector<8x256xf32>
    %c0_175 = arith.constant 0 : index
    %c0_176 = arith.constant 0 : index
    %619 = vector.load %arg8[%c0_175, %c0_176] : memref<8x256xf32, #tpu.memory_space<vmem>>, vector<8x256xf32>
    %620 = arith.addf %618, %619 : vector<8x256xf32>
    %c0_177 = arith.constant 0 : index
    %c0_178 = arith.constant 0 : index
    %621 = vector.load %arg7[%c0_177, %c0_178] : memref<64x256xf32, #tpu.memory_space<vmem>>, vector<64x256xf32>
    %cst_179 = arith.constant dense<0.000000e+00> : vector<8x256xf32>
    %622 = tpu.matmul %584, %621, %cst_179 {dimension_numbers = #tpu.dot_dimension_numbers<[1], [0], [0], [1], [0, 0, 1, 1], [], []>} : vector<8x64xf32>, vector<64x256xf32>, vector<8x256xf32> -> vector<8x256xf32>
    %623 = arith.addf %620, %622 : vector<8x256xf32>
    %624 = arith.negf %623 : vector<8x256xf32>
    %625 = math.exp %624 : vector<8x256xf32>
    %cst_180 = arith.constant 1.000000e+00 : f32
    %626 = vector.broadcast %cst_180 : f32 to vector<8x256xf32>
    %627 = arith.addf %626, %625 : vector<8x256xf32>
    %628 = arith.divf %626, %627 : vector<8x256xf32>
    %629 = math.tanh %623 : vector<8x256xf32>
    %630 = vector.extract_strided_slice %628 {offsets = [0, 0], sizes = [8, 64], strides = [1, 1]} : vector<8x256xf32> to vector<8x64xf32>
    %631 = vector.extract_strided_slice %628 {offsets = [0, 64], sizes = [8, 64], strides = [1, 1]} : vector<8x256xf32> to vector<8x64xf32>
    %632 = vector.extract_strided_slice %629 {offsets = [0, 128], sizes = [8, 64], strides = [1, 1]} : vector<8x256xf32> to vector<8x64xf32>
    %633 = vector.extract_strided_slice %628 {offsets = [0, 192], sizes = [8, 64], strides = [1, 1]} : vector<8x256xf32> to vector<8x64xf32>
    %634 = arith.mulf %631, %587 : vector<8x64xf32>
    %635 = arith.mulf %630, %632 : vector<8x64xf32>
    %636 = arith.addf %634, %635 : vector<8x64xf32>
    %637 = math.tanh %636 : vector<8x64xf32>
    %638 = arith.mulf %633, %637 : vector<8x64xf32>
    %639 = vector.shape_cast %590 : vector<8x1xi1> to vector<8x1xi1>
    %640 = vector.broadcast %639 : vector<8x1xi1> to vector<8x64xi1>
    %641 = arith.select %640, %638, %584 : vector<8x64xi1>, vector<8x64xf32>
    %642 = vector.shape_cast %590 : vector<8x1xi1> to vector<8x1xi1>
    %643 = vector.broadcast %642 : vector<8x1xi1> to vector<8x64xi1>
    %644 = arith.select %643, %636, %587 : vector<8x64xi1>, vector<8x64xf32>
    %c11_i32 = arith.constant 11 : i32
    %645 = vector.broadcast %c11_i32 : i32 to vector<8x1xi32>
    %646 = vector.broadcast %0 : i32 to vector<8x1xi32>
    %647 = arith.cmpi slt, %645, %646 : vector<8x1xi32>
    %c11 = arith.constant 11 : index
    %c0_181 = arith.constant 0 : index
    %c0_182 = arith.constant 0 : index
    %648 = vector.load %arg13[%c11, %c0_181, %c0_182] : memref<14x8x256xf32, #tpu.memory_space<vmem>>, vector<1x8x256xf32>
    %649 = vector.shape_cast %648 : vector<1x8x256xf32> to vector<8x256xf32>
    %c0_183 = arith.constant 0 : index
    %c0_184 = arith.constant 0 : index
    %650 = vector.load %arg4[%c0_183, %c0_184] : memref<64x256xf32, #tpu.memory_space<vmem>>, vector<64x256xf32>
    %cst_185 = arith.constant dense<0.000000e+00> : vector<8x256xf32>
    %651 = tpu.matmul %613, %650, %cst_185 {dimension_numbers = #tpu.dot_dimension_numbers<[1], [0], [0], [1], [0, 0, 1, 1], [], []>} : vector<8x64xf32>, vector<64x256xf32>, vector<8x256xf32> -> vector<8x256xf32>
    %652 = arith.addf %649, %651 : vector<8x256xf32>
    %653 = arith.negf %652 : vector<8x256xf32>
    %654 = math.exp %653 : vector<8x256xf32>
    %cst_186 = arith.constant 1.000000e+00 : f32
    %655 = vector.broadcast %cst_186 : f32 to vector<8x256xf32>
    %656 = arith.addf %655, %654 : vector<8x256xf32>
    %657 = arith.divf %655, %656 : vector<8x256xf32>
    %658 = math.tanh %652 : vector<8x256xf32>
    %659 = vector.extract_strided_slice %657 {offsets = [0, 0], sizes = [8, 64], strides = [1, 1]} : vector<8x256xf32> to vector<8x64xf32>
    %660 = vector.extract_strided_slice %657 {offsets = [0, 64], sizes = [8, 64], strides = [1, 1]} : vector<8x256xf32> to vector<8x64xf32>
    %661 = vector.extract_strided_slice %658 {offsets = [0, 128], sizes = [8, 64], strides = [1, 1]} : vector<8x256xf32> to vector<8x64xf32>
    %662 = vector.extract_strided_slice %657 {offsets = [0, 192], sizes = [8, 64], strides = [1, 1]} : vector<8x256xf32> to vector<8x64xf32>
    %663 = arith.mulf %660, %616 : vector<8x64xf32>
    %664 = arith.mulf %659, %661 : vector<8x64xf32>
    %665 = arith.addf %663, %664 : vector<8x64xf32>
    %666 = math.tanh %665 : vector<8x64xf32>
    %667 = arith.mulf %662, %666 : vector<8x64xf32>
    %668 = vector.shape_cast %647 : vector<8x1xi1> to vector<8x1xi1>
    %669 = vector.broadcast %668 : vector<8x1xi1> to vector<8x64xi1>
    %670 = arith.select %669, %667, %613 : vector<8x64xi1>, vector<8x64xf32>
    %671 = vector.shape_cast %647 : vector<8x1xi1> to vector<8x1xi1>
    %672 = vector.broadcast %671 : vector<8x1xi1> to vector<8x64xi1>
    %673 = arith.select %672, %665, %616 : vector<8x64xi1>, vector<8x64xf32>
    %c0_187 = arith.constant 0 : index
    %c0_188 = arith.constant 0 : index
    %674 = vector.load %arg6[%c0_187, %c0_188] : memref<64x256xf32, #tpu.memory_space<vmem>>, vector<64x256xf32>
    %cst_189 = arith.constant dense<0.000000e+00> : vector<8x256xf32>
    %675 = tpu.matmul %670, %674, %cst_189 {dimension_numbers = #tpu.dot_dimension_numbers<[1], [0], [0], [1], [0, 0, 1, 1], [], []>} : vector<8x64xf32>, vector<64x256xf32>, vector<8x256xf32> -> vector<8x256xf32>
    %c0_190 = arith.constant 0 : index
    %c0_191 = arith.constant 0 : index
    %676 = vector.load %arg8[%c0_190, %c0_191] : memref<8x256xf32, #tpu.memory_space<vmem>>, vector<8x256xf32>
    %677 = arith.addf %675, %676 : vector<8x256xf32>
    %c0_192 = arith.constant 0 : index
    %c0_193 = arith.constant 0 : index
    %678 = vector.load %arg7[%c0_192, %c0_193] : memref<64x256xf32, #tpu.memory_space<vmem>>, vector<64x256xf32>
    %cst_194 = arith.constant dense<0.000000e+00> : vector<8x256xf32>
    %679 = tpu.matmul %641, %678, %cst_194 {dimension_numbers = #tpu.dot_dimension_numbers<[1], [0], [0], [1], [0, 0, 1, 1], [], []>} : vector<8x64xf32>, vector<64x256xf32>, vector<8x256xf32> -> vector<8x256xf32>
    %680 = arith.addf %677, %679 : vector<8x256xf32>
    %681 = arith.negf %680 : vector<8x256xf32>
    %682 = math.exp %681 : vector<8x256xf32>
    %cst_195 = arith.constant 1.000000e+00 : f32
    %683 = vector.broadcast %cst_195 : f32 to vector<8x256xf32>
    %684 = arith.addf %683, %682 : vector<8x256xf32>
    %685 = arith.divf %683, %684 : vector<8x256xf32>
    %686 = math.tanh %680 : vector<8x256xf32>
    %687 = vector.extract_strided_slice %685 {offsets = [0, 0], sizes = [8, 64], strides = [1, 1]} : vector<8x256xf32> to vector<8x64xf32>
    %688 = vector.extract_strided_slice %685 {offsets = [0, 64], sizes = [8, 64], strides = [1, 1]} : vector<8x256xf32> to vector<8x64xf32>
    %689 = vector.extract_strided_slice %686 {offsets = [0, 128], sizes = [8, 64], strides = [1, 1]} : vector<8x256xf32> to vector<8x64xf32>
    %690 = vector.extract_strided_slice %685 {offsets = [0, 192], sizes = [8, 64], strides = [1, 1]} : vector<8x256xf32> to vector<8x64xf32>
    %691 = arith.mulf %688, %644 : vector<8x64xf32>
    %692 = arith.mulf %687, %689 : vector<8x64xf32>
    %693 = arith.addf %691, %692 : vector<8x64xf32>
    %694 = math.tanh %693 : vector<8x64xf32>
    %695 = arith.mulf %690, %694 : vector<8x64xf32>
    %696 = vector.shape_cast %647 : vector<8x1xi1> to vector<8x1xi1>
    %697 = vector.broadcast %696 : vector<8x1xi1> to vector<8x64xi1>
    %698 = arith.select %697, %695, %641 : vector<8x64xi1>, vector<8x64xf32>
    %699 = vector.shape_cast %647 : vector<8x1xi1> to vector<8x1xi1>
    %700 = vector.broadcast %699 : vector<8x1xi1> to vector<8x64xi1>
    %701 = arith.select %700, %693, %644 : vector<8x64xi1>, vector<8x64xf32>
    %c12_i32 = arith.constant 12 : i32
    %702 = vector.broadcast %c12_i32 : i32 to vector<8x1xi32>
    %703 = vector.broadcast %0 : i32 to vector<8x1xi32>
    %704 = arith.cmpi slt, %702, %703 : vector<8x1xi32>
    %c12 = arith.constant 12 : index
    %c0_196 = arith.constant 0 : index
    %c0_197 = arith.constant 0 : index
    %705 = vector.load %arg13[%c12, %c0_196, %c0_197] : memref<14x8x256xf32, #tpu.memory_space<vmem>>, vector<1x8x256xf32>
    %706 = vector.shape_cast %705 : vector<1x8x256xf32> to vector<8x256xf32>
    %c0_198 = arith.constant 0 : index
    %c0_199 = arith.constant 0 : index
    %707 = vector.load %arg4[%c0_198, %c0_199] : memref<64x256xf32, #tpu.memory_space<vmem>>, vector<64x256xf32>
    %cst_200 = arith.constant dense<0.000000e+00> : vector<8x256xf32>
    %708 = tpu.matmul %670, %707, %cst_200 {dimension_numbers = #tpu.dot_dimension_numbers<[1], [0], [0], [1], [0, 0, 1, 1], [], []>} : vector<8x64xf32>, vector<64x256xf32>, vector<8x256xf32> -> vector<8x256xf32>
    %709 = arith.addf %706, %708 : vector<8x256xf32>
    %710 = arith.negf %709 : vector<8x256xf32>
    %711 = math.exp %710 : vector<8x256xf32>
    %cst_201 = arith.constant 1.000000e+00 : f32
    %712 = vector.broadcast %cst_201 : f32 to vector<8x256xf32>
    %713 = arith.addf %712, %711 : vector<8x256xf32>
    %714 = arith.divf %712, %713 : vector<8x256xf32>
    %715 = math.tanh %709 : vector<8x256xf32>
    %716 = vector.extract_strided_slice %714 {offsets = [0, 0], sizes = [8, 64], strides = [1, 1]} : vector<8x256xf32> to vector<8x64xf32>
    %717 = vector.extract_strided_slice %714 {offsets = [0, 64], sizes = [8, 64], strides = [1, 1]} : vector<8x256xf32> to vector<8x64xf32>
    %718 = vector.extract_strided_slice %715 {offsets = [0, 128], sizes = [8, 64], strides = [1, 1]} : vector<8x256xf32> to vector<8x64xf32>
    %719 = vector.extract_strided_slice %714 {offsets = [0, 192], sizes = [8, 64], strides = [1, 1]} : vector<8x256xf32> to vector<8x64xf32>
    %720 = arith.mulf %717, %673 : vector<8x64xf32>
    %721 = arith.mulf %716, %718 : vector<8x64xf32>
    %722 = arith.addf %720, %721 : vector<8x64xf32>
    %723 = math.tanh %722 : vector<8x64xf32>
    %724 = arith.mulf %719, %723 : vector<8x64xf32>
    %725 = vector.shape_cast %704 : vector<8x1xi1> to vector<8x1xi1>
    %726 = vector.broadcast %725 : vector<8x1xi1> to vector<8x64xi1>
    %727 = arith.select %726, %724, %670 : vector<8x64xi1>, vector<8x64xf32>
    %728 = vector.shape_cast %704 : vector<8x1xi1> to vector<8x1xi1>
    %729 = vector.broadcast %728 : vector<8x1xi1> to vector<8x64xi1>
    %730 = arith.select %729, %722, %673 : vector<8x64xi1>, vector<8x64xf32>
    %c0_202 = arith.constant 0 : index
    %c0_203 = arith.constant 0 : index
    %731 = vector.load %arg6[%c0_202, %c0_203] : memref<64x256xf32, #tpu.memory_space<vmem>>, vector<64x256xf32>
    %cst_204 = arith.constant dense<0.000000e+00> : vector<8x256xf32>
    %732 = tpu.matmul %727, %731, %cst_204 {dimension_numbers = #tpu.dot_dimension_numbers<[1], [0], [0], [1], [0, 0, 1, 1], [], []>} : vector<8x64xf32>, vector<64x256xf32>, vector<8x256xf32> -> vector<8x256xf32>
    %c0_205 = arith.constant 0 : index
    %c0_206 = arith.constant 0 : index
    %733 = vector.load %arg8[%c0_205, %c0_206] : memref<8x256xf32, #tpu.memory_space<vmem>>, vector<8x256xf32>
    %734 = arith.addf %732, %733 : vector<8x256xf32>
    %c0_207 = arith.constant 0 : index
    %c0_208 = arith.constant 0 : index
    %735 = vector.load %arg7[%c0_207, %c0_208] : memref<64x256xf32, #tpu.memory_space<vmem>>, vector<64x256xf32>
    %cst_209 = arith.constant dense<0.000000e+00> : vector<8x256xf32>
    %736 = tpu.matmul %698, %735, %cst_209 {dimension_numbers = #tpu.dot_dimension_numbers<[1], [0], [0], [1], [0, 0, 1, 1], [], []>} : vector<8x64xf32>, vector<64x256xf32>, vector<8x256xf32> -> vector<8x256xf32>
    %737 = arith.addf %734, %736 : vector<8x256xf32>
    %738 = arith.negf %737 : vector<8x256xf32>
    %739 = math.exp %738 : vector<8x256xf32>
    %cst_210 = arith.constant 1.000000e+00 : f32
    %740 = vector.broadcast %cst_210 : f32 to vector<8x256xf32>
    %741 = arith.addf %740, %739 : vector<8x256xf32>
    %742 = arith.divf %740, %741 : vector<8x256xf32>
    %743 = math.tanh %737 : vector<8x256xf32>
    %744 = vector.extract_strided_slice %742 {offsets = [0, 0], sizes = [8, 64], strides = [1, 1]} : vector<8x256xf32> to vector<8x64xf32>
    %745 = vector.extract_strided_slice %742 {offsets = [0, 64], sizes = [8, 64], strides = [1, 1]} : vector<8x256xf32> to vector<8x64xf32>
    %746 = vector.extract_strided_slice %743 {offsets = [0, 128], sizes = [8, 64], strides = [1, 1]} : vector<8x256xf32> to vector<8x64xf32>
    %747 = vector.extract_strided_slice %742 {offsets = [0, 192], sizes = [8, 64], strides = [1, 1]} : vector<8x256xf32> to vector<8x64xf32>
    %748 = arith.mulf %745, %701 : vector<8x64xf32>
    %749 = arith.mulf %744, %746 : vector<8x64xf32>
    %750 = arith.addf %748, %749 : vector<8x64xf32>
    %751 = math.tanh %750 : vector<8x64xf32>
    %752 = arith.mulf %747, %751 : vector<8x64xf32>
    %753 = vector.shape_cast %704 : vector<8x1xi1> to vector<8x1xi1>
    %754 = vector.broadcast %753 : vector<8x1xi1> to vector<8x64xi1>
    %755 = arith.select %754, %752, %698 : vector<8x64xi1>, vector<8x64xf32>
    %756 = vector.shape_cast %704 : vector<8x1xi1> to vector<8x1xi1>
    %757 = vector.broadcast %756 : vector<8x1xi1> to vector<8x64xi1>
    %758 = arith.select %757, %750, %701 : vector<8x64xi1>, vector<8x64xf32>
    %c13_i32 = arith.constant 13 : i32
    %759 = vector.broadcast %c13_i32 : i32 to vector<8x1xi32>
    %760 = vector.broadcast %0 : i32 to vector<8x1xi32>
    %761 = arith.cmpi slt, %759, %760 : vector<8x1xi32>
    %c13 = arith.constant 13 : index
    %c0_211 = arith.constant 0 : index
    %c0_212 = arith.constant 0 : index
    %762 = vector.load %arg13[%c13, %c0_211, %c0_212] : memref<14x8x256xf32, #tpu.memory_space<vmem>>, vector<1x8x256xf32>
    %763 = vector.shape_cast %762 : vector<1x8x256xf32> to vector<8x256xf32>
    %c0_213 = arith.constant 0 : index
    %c0_214 = arith.constant 0 : index
    %764 = vector.load %arg4[%c0_213, %c0_214] : memref<64x256xf32, #tpu.memory_space<vmem>>, vector<64x256xf32>
    %cst_215 = arith.constant dense<0.000000e+00> : vector<8x256xf32>
    %765 = tpu.matmul %727, %764, %cst_215 {dimension_numbers = #tpu.dot_dimension_numbers<[1], [0], [0], [1], [0, 0, 1, 1], [], []>} : vector<8x64xf32>, vector<64x256xf32>, vector<8x256xf32> -> vector<8x256xf32>
    %766 = arith.addf %763, %765 : vector<8x256xf32>
    %767 = arith.negf %766 : vector<8x256xf32>
    %768 = math.exp %767 : vector<8x256xf32>
    %cst_216 = arith.constant 1.000000e+00 : f32
    %769 = vector.broadcast %cst_216 : f32 to vector<8x256xf32>
    %770 = arith.addf %769, %768 : vector<8x256xf32>
    %771 = arith.divf %769, %770 : vector<8x256xf32>
    %772 = math.tanh %766 : vector<8x256xf32>
    %773 = vector.extract_strided_slice %771 {offsets = [0, 0], sizes = [8, 64], strides = [1, 1]} : vector<8x256xf32> to vector<8x64xf32>
    %774 = vector.extract_strided_slice %771 {offsets = [0, 64], sizes = [8, 64], strides = [1, 1]} : vector<8x256xf32> to vector<8x64xf32>
    %775 = vector.extract_strided_slice %772 {offsets = [0, 128], sizes = [8, 64], strides = [1, 1]} : vector<8x256xf32> to vector<8x64xf32>
    %776 = vector.extract_strided_slice %771 {offsets = [0, 192], sizes = [8, 64], strides = [1, 1]} : vector<8x256xf32> to vector<8x64xf32>
    %777 = arith.mulf %774, %730 : vector<8x64xf32>
    %778 = arith.mulf %773, %775 : vector<8x64xf32>
    %779 = arith.addf %777, %778 : vector<8x64xf32>
    %780 = math.tanh %779 : vector<8x64xf32>
    %781 = arith.mulf %776, %780 : vector<8x64xf32>
    %782 = vector.shape_cast %761 : vector<8x1xi1> to vector<8x1xi1>
    %783 = vector.broadcast %782 : vector<8x1xi1> to vector<8x64xi1>
    %784 = arith.select %783, %781, %727 : vector<8x64xi1>, vector<8x64xf32>
    %c0_217 = arith.constant 0 : index
    %c0_218 = arith.constant 0 : index
    %785 = vector.load %arg6[%c0_217, %c0_218] : memref<64x256xf32, #tpu.memory_space<vmem>>, vector<64x256xf32>
    %cst_219 = arith.constant dense<0.000000e+00> : vector<8x256xf32>
    %786 = tpu.matmul %784, %785, %cst_219 {dimension_numbers = #tpu.dot_dimension_numbers<[1], [0], [0], [1], [0, 0, 1, 1], [], []>} : vector<8x64xf32>, vector<64x256xf32>, vector<8x256xf32> -> vector<8x256xf32>
    %c0_220 = arith.constant 0 : index
    %c0_221 = arith.constant 0 : index
    %787 = vector.load %arg8[%c0_220, %c0_221] : memref<8x256xf32, #tpu.memory_space<vmem>>, vector<8x256xf32>
    %788 = arith.addf %786, %787 : vector<8x256xf32>
    %c0_222 = arith.constant 0 : index
    %c0_223 = arith.constant 0 : index
    %789 = vector.load %arg7[%c0_222, %c0_223] : memref<64x256xf32, #tpu.memory_space<vmem>>, vector<64x256xf32>
    %cst_224 = arith.constant dense<0.000000e+00> : vector<8x256xf32>
    %790 = tpu.matmul %755, %789, %cst_224 {dimension_numbers = #tpu.dot_dimension_numbers<[1], [0], [0], [1], [0, 0, 1, 1], [], []>} : vector<8x64xf32>, vector<64x256xf32>, vector<8x256xf32> -> vector<8x256xf32>
    %791 = arith.addf %788, %790 : vector<8x256xf32>
    %792 = arith.negf %791 : vector<8x256xf32>
    %793 = math.exp %792 : vector<8x256xf32>
    %cst_225 = arith.constant 1.000000e+00 : f32
    %794 = vector.broadcast %cst_225 : f32 to vector<8x256xf32>
    %795 = arith.addf %794, %793 : vector<8x256xf32>
    %796 = arith.divf %794, %795 : vector<8x256xf32>
    %797 = math.tanh %791 : vector<8x256xf32>
    %798 = vector.extract_strided_slice %796 {offsets = [0, 0], sizes = [8, 64], strides = [1, 1]} : vector<8x256xf32> to vector<8x64xf32>
    %799 = vector.extract_strided_slice %796 {offsets = [0, 64], sizes = [8, 64], strides = [1, 1]} : vector<8x256xf32> to vector<8x64xf32>
    %800 = vector.extract_strided_slice %797 {offsets = [0, 128], sizes = [8, 64], strides = [1, 1]} : vector<8x256xf32> to vector<8x64xf32>
    %801 = vector.extract_strided_slice %796 {offsets = [0, 192], sizes = [8, 64], strides = [1, 1]} : vector<8x256xf32> to vector<8x64xf32>
    %802 = arith.mulf %799, %758 : vector<8x64xf32>
    %803 = arith.mulf %798, %800 : vector<8x64xf32>
    %804 = arith.addf %802, %803 : vector<8x64xf32>
    %805 = math.tanh %804 : vector<8x64xf32>
    %806 = arith.mulf %801, %805 : vector<8x64xf32>
    %807 = vector.shape_cast %761 : vector<8x1xi1> to vector<8x1xi1>
    %808 = vector.broadcast %807 : vector<8x1xi1> to vector<8x64xi1>
    %809 = arith.select %808, %806, %755 : vector<8x64xi1>, vector<8x64xf32>
    %c4_i32_226 = arith.constant 4 : i32
    %810 = tpu.dynamic_rotate %809 by %c4_i32_226 dim 0 : vector<8x64xf32>, i32 -> vector<8x64xf32>
    %811 = arith.addf %809, %810 : vector<8x64xf32>
    %c0_227 = arith.constant 0 : index
    %c0_228 = arith.constant 0 : index
    %812 = vector.load %arg10[%c0_227, %c0_228] : memref<64x64xf32, #tpu.memory_space<vmem>>, vector<64x64xf32>
    %cst_229 = arith.constant dense<0.000000e+00> : vector<8x64xf32>
    %813 = tpu.matmul %811, %812, %cst_229 {dimension_numbers = #tpu.dot_dimension_numbers<[1], [0], [0], [1], [0, 0, 1, 1], [], []>} : vector<8x64xf32>, vector<64x64xf32>, vector<8x64xf32> -> vector<8x64xf32>
    %814 = vector.extract_strided_slice %813 {offsets = [0, 0], sizes = [8, 32], strides = [1, 1]} : vector<8x64xf32> to vector<8x32xf32>
    %815 = vector.extract_strided_slice %813 {offsets = [0, 32], sizes = [8, 32], strides = [1, 1]} : vector<8x64xf32> to vector<8x32xf32>
    %816 = vector.shape_cast %3 : vector<8x1xi1> to vector<8x1xi1>
    %817 = vector.broadcast %816 : vector<8x1xi1> to vector<8x32xi1>
    %818 = arith.select %817, %814, %815 : vector<8x32xi1>, vector<8x32xf32>
    %c0_230 = arith.constant 0 : index
    %c0_231 = arith.constant 0 : index
    %819 = vector.load %arg11[%c0_230, %c0_231] : memref<8x32xf32, #tpu.memory_space<vmem>>, vector<8x32xf32>
    %820 = arith.addf %818, %819 : vector<8x32xf32>
    %821 = tpu.iota {dimensions = array<i32: 0>} : vector<8x8xi32>
    %822 = tpu.iota {dimensions = array<i32: 1>} : vector<8x8xi32>
    %823 = arith.cmpi eq, %821, %822 : vector<8x8xi32>
    %c4_i32_232 = arith.constant 4 : i32
    %824 = vector.broadcast %c4_i32_232 : i32 to vector<8x8xi32>
    %825 = arith.addi %822, %824 : vector<8x8xi32>
    %826 = arith.cmpi eq, %821, %825 : vector<8x8xi32>
    %827 = arith.ori %823, %826 : vector<8x8xi1>
    %c4_i32_233 = arith.constant 4 : i32
    %828 = vector.broadcast %c4_i32_233 : i32 to vector<8x8xi32>
    %829 = arith.addi %821, %828 : vector<8x8xi32>
    %830 = arith.cmpi eq, %822, %829 : vector<8x8xi32>
    %831 = arith.ori %827, %830 : vector<8x8xi1>
    %c4_i32_234 = arith.constant 4 : i32
    %832 = vector.broadcast %c4_i32_234 : i32 to vector<8x8xi32>
    %833 = arith.cmpi slt, %821, %832 : vector<8x8xi32>
    %c4_i32_235 = arith.constant 4 : i32
    %834 = vector.broadcast %c4_i32_235 : i32 to vector<8x8xi32>
    %835 = arith.cmpi slt, %822, %834 : vector<8x8xi32>
    %836 = arith.xori %833, %835 : vector<8x8xi1>
    %cst_236 = arith.constant dense<true> : vector<8x8xi1>
    %837 = arith.xori %836, %cst_236 : vector<8x8xi1>
    %cst_237 = arith.constant 1.000000e-01 : f32
    %cst_238 = arith.constant 1.000000e+00 : f32
    %838 = vector.broadcast %cst_237 : f32 to vector<8x8xf32>
    %839 = vector.broadcast %cst_238 : f32 to vector<8x8xf32>
    %840 = arith.select %837, %838, %839 : vector<8x8xi1>, vector<8x8xf32>
    %cst_239 = arith.constant 0.000000e+00 : f32
    %841 = vector.broadcast %cst_239 : f32 to vector<8x8xf32>
    %842 = arith.select %831, %840, %841 : vector<8x8xi1>, vector<8x8xf32>
    %cst_240 = arith.constant 1.000000e-01 : f32
    %cst_241 = arith.constant 1.000000e+00 : f32
    %843 = vector.broadcast %cst_240 : f32 to vector<8x1xf32>
    %844 = vector.broadcast %cst_241 : f32 to vector<8x1xf32>
    %845 = arith.select %3, %843, %844 : vector<8x1xi1>, vector<8x1xf32>
    %cst_242 = arith.constant 1.000000e+00 : f32
    %cst_243 = arith.constant 1.000000e-01 : f32
    %846 = vector.broadcast %cst_242 : f32 to vector<8x1xf32>
    %847 = vector.broadcast %cst_243 : f32 to vector<8x1xf32>
    %848 = arith.select %3, %846, %847 : vector<8x1xi1>, vector<8x1xf32>
    %c0_244 = arith.constant 0 : index
    %c0_245 = arith.constant 0 : index
    %c0_246 = arith.constant 0 : index
    %849 = vector.load %arg9[%c0_244, %c0_245, %c0_246] : memref<2x8x16xf32, #tpu.memory_space<vmem>>, vector<1x8x16xf32>
    %850 = vector.shape_cast %849 : vector<1x8x16xf32> to vector<8x16xf32>
    %851 = vector.extract_strided_slice %820 {offsets = [0, 0], sizes = [8, 16], strides = [1, 1]} : vector<8x32xf32> to vector<8x16xf32>
    %cst_247 = arith.constant dense<0.000000e+00> : vector<8x8xf32>
    %852 = tpu.matmul %850, %851, %cst_247 {dimension_numbers = #tpu.dot_dimension_numbers<[1], [1], [0], [0], [0, 0, 1, 0], [], []>} : vector<8x16xf32>, vector<8x16xf32>, vector<8x8xf32> -> vector<8x8xf32>
    %853 = vector.extract_strided_slice %852 {offsets = [0, 0], sizes = [8, 4], strides = [1, 1]} : vector<8x8xf32> to vector<8x4xf32>
    %854 = vector.extract_strided_slice %852 {offsets = [0, 4], sizes = [8, 4], strides = [1, 1]} : vector<8x8xf32> to vector<8x4xf32>
    %cst_248 = arith.constant dense<0xFF800000> : vector<8xf32>
    %855 = vector.multi_reduction <maximumf>, %853, %cst_248 [1] : vector<8x4xf32> to vector<8xf32>
    %856 = vector.shape_cast %855 : vector<8xf32> to vector<8x1xf32>
    %cst_249 = arith.constant dense<0xFF800000> : vector<8xf32>
    %857 = vector.multi_reduction <maximumf>, %854, %cst_249 [1] : vector<8x4xf32> to vector<8xf32>
    %858 = vector.shape_cast %857 : vector<8xf32> to vector<8x1xf32>
    %859 = vector.broadcast %856 : vector<8x1xf32> to vector<8x4xf32>
    %860 = arith.subf %853, %859 : vector<8x4xf32>
    %861 = math.exp %860 : vector<8x4xf32>
    %cst_250 = arith.constant dense<0.000000e+00> : vector<8xf32>
    %862 = vector.multi_reduction <add>, %861, %cst_250 [1] : vector<8x4xf32> to vector<8xf32>
    %863 = vector.shape_cast %862 : vector<8xf32> to vector<8x1xf32>
    %864 = math.log %863 : vector<8x1xf32>
    %865 = arith.addf %856, %864 : vector<8x1xf32>
    %866 = vector.broadcast %858 : vector<8x1xf32> to vector<8x4xf32>
    %867 = arith.subf %854, %866 : vector<8x4xf32>
    %868 = math.exp %867 : vector<8x4xf32>
    %cst_251 = arith.constant dense<0.000000e+00> : vector<8xf32>
    %869 = vector.multi_reduction <add>, %868, %cst_251 [1] : vector<8x4xf32> to vector<8xf32>
    %870 = vector.shape_cast %869 : vector<8xf32> to vector<8x1xf32>
    %871 = math.log %870 : vector<8x1xf32>
    %872 = arith.addf %858, %871 : vector<8x1xf32>
    %873 = arith.mulf %852, %842 : vector<8x8xf32>
    %874 = vector.shape_cast %873 : vector<8x8xf32> to vector<1x8x8xf32>
    %cst_252 = arith.constant dense<0.000000e+00> : vector<1xf32>
    %875 = vector.multi_reduction <add>, %874, %cst_252 [1, 2] : vector<1x8x8xf32> to vector<1xf32>
    %876 = vector.shape_cast %875 : vector<1xf32> to vector<1x1x1xf32>
    %877 = vector.extract %876[0, 0, 0] : f32 from vector<1x1x1xf32>
    %cst_253 = arith.constant 0.000000e+00 : f32
    %878 = arith.addf %cst_253, %877 : f32
    %879 = arith.mulf %865, %845 : vector<8x1xf32>
    %880 = arith.mulf %872, %848 : vector<8x1xf32>
    %881 = arith.addf %879, %880 : vector<8x1xf32>
    %882 = vector.shape_cast %881 : vector<8x1xf32> to vector<1x8x1xf32>
    %cst_254 = arith.constant dense<0.000000e+00> : vector<1xf32>
    %883 = vector.multi_reduction <add>, %882, %cst_254 [1, 2] : vector<1x8x1xf32> to vector<1xf32>
    %884 = vector.shape_cast %883 : vector<1xf32> to vector<1x1x1xf32>
    %885 = vector.extract %884[0, 0, 0] : f32 from vector<1x1x1xf32>
    %886 = arith.subf %878, %885 : f32
    %c1_255 = arith.constant 1 : index
    %c0_256 = arith.constant 0 : index
    %c0_257 = arith.constant 0 : index
    %887 = vector.load %arg9[%c1_255, %c0_256, %c0_257] : memref<2x8x16xf32, #tpu.memory_space<vmem>>, vector<1x8x16xf32>
    %888 = vector.shape_cast %887 : vector<1x8x16xf32> to vector<8x16xf32>
    %889 = vector.extract_strided_slice %820 {offsets = [0, 16], sizes = [8, 16], strides = [1, 1]} : vector<8x32xf32> to vector<8x16xf32>
    %cst_258 = arith.constant dense<0.000000e+00> : vector<8x8xf32>
    %890 = tpu.matmul %888, %889, %cst_258 {dimension_numbers = #tpu.dot_dimension_numbers<[1], [1], [0], [0], [0, 0, 1, 0], [], []>} : vector<8x16xf32>, vector<8x16xf32>, vector<8x8xf32> -> vector<8x8xf32>
    %891 = vector.extract_strided_slice %890 {offsets = [0, 0], sizes = [8, 4], strides = [1, 1]} : vector<8x8xf32> to vector<8x4xf32>
    %892 = vector.extract_strided_slice %890 {offsets = [0, 4], sizes = [8, 4], strides = [1, 1]} : vector<8x8xf32> to vector<8x4xf32>
    %cst_259 = arith.constant dense<0xFF800000> : vector<8xf32>
    %893 = vector.multi_reduction <maximumf>, %891, %cst_259 [1] : vector<8x4xf32> to vector<8xf32>
    %894 = vector.shape_cast %893 : vector<8xf32> to vector<8x1xf32>
    %cst_260 = arith.constant dense<0xFF800000> : vector<8xf32>
    %895 = vector.multi_reduction <maximumf>, %892, %cst_260 [1] : vector<8x4xf32> to vector<8xf32>
    %896 = vector.shape_cast %895 : vector<8xf32> to vector<8x1xf32>
    %897 = vector.broadcast %894 : vector<8x1xf32> to vector<8x4xf32>
    %898 = arith.subf %891, %897 : vector<8x4xf32>
    %899 = math.exp %898 : vector<8x4xf32>
    %cst_261 = arith.constant dense<0.000000e+00> : vector<8xf32>
    %900 = vector.multi_reduction <add>, %899, %cst_261 [1] : vector<8x4xf32> to vector<8xf32>
    %901 = vector.shape_cast %900 : vector<8xf32> to vector<8x1xf32>
    %902 = math.log %901 : vector<8x1xf32>
    %903 = arith.addf %894, %902 : vector<8x1xf32>
    %904 = vector.broadcast %896 : vector<8x1xf32> to vector<8x4xf32>
    %905 = arith.subf %892, %904 : vector<8x4xf32>
    %906 = math.exp %905 : vector<8x4xf32>
    %cst_262 = arith.constant dense<0.000000e+00> : vector<8xf32>
    %907 = vector.multi_reduction <add>, %906, %cst_262 [1] : vector<8x4xf32> to vector<8xf32>
    %908 = vector.shape_cast %907 : vector<8xf32> to vector<8x1xf32>
    %909 = math.log %908 : vector<8x1xf32>
    %910 = arith.addf %896, %909 : vector<8x1xf32>
    %911 = arith.mulf %890, %842 : vector<8x8xf32>
    %912 = vector.shape_cast %911 : vector<8x8xf32> to vector<1x8x8xf32>
    %cst_263 = arith.constant dense<0.000000e+00> : vector<1xf32>
    %913 = vector.multi_reduction <add>, %912, %cst_263 [1, 2] : vector<1x8x8xf32> to vector<1xf32>
    %914 = vector.shape_cast %913 : vector<1xf32> to vector<1x1x1xf32>
    %915 = vector.extract %914[0, 0, 0] : f32 from vector<1x1x1xf32>
    %916 = arith.addf %886, %915 : f32
    %917 = arith.mulf %903, %845 : vector<8x1xf32>
    %918 = arith.mulf %910, %848 : vector<8x1xf32>
    %919 = arith.addf %917, %918 : vector<8x1xf32>
    %920 = vector.shape_cast %919 : vector<8x1xf32> to vector<1x8x1xf32>
    %cst_264 = arith.constant dense<0.000000e+00> : vector<1xf32>
    %921 = vector.multi_reduction <add>, %920, %cst_264 [1, 2] : vector<1x8x1xf32> to vector<1xf32>
    %922 = vector.shape_cast %921 : vector<1xf32> to vector<1x1x1xf32>
    %923 = vector.extract %922[0, 0, 0] : f32 from vector<1x1x1xf32>
    %924 = arith.subf %916, %923 : f32
    %c0_265 = arith.constant 0 : index
    %c0_266 = arith.constant 0 : index
    %925 = memref.load %arg12[%c0_265, %c0_266] : memref<1x1xf32, #tpu.memory_space<smem>>
    memref.store %924, %arg12[%c0_265, %c0_266] : memref<1x1xf32, #tpu.memory_space<smem>>
    return
  }
  func.func @transform_0(%arg0: i32, %arg1: memref<1xi32, #tpu.memory_space<smem>>) -> (i32, i32, i32) {
    %c0_i32 = arith.constant 0 : i32
    %c0_i32_0 = arith.constant 0 : i32
    %c0_i32_1 = arith.constant 0 : i32
    %c0_i32_2 = arith.constant 0 : i32
    return %c0_i32, %c0_i32_0, %c0_i32_1 : i32, i32, i32
  }
  func.func @transform_1(%arg0: i32, %arg1: memref<1xi32, #tpu.memory_space<smem>>) -> (i32, i32) {
    %c0_i32 = arith.constant 0 : i32
    %c0_i32_0 = arith.constant 0 : i32
    %c0_i32_1 = arith.constant 0 : i32
    return %c0_i32, %c0_i32_0 : i32, i32
  }
  func.func @transform_2(%arg0: i32, %arg1: memref<1xi32, #tpu.memory_space<smem>>) -> (i32, i32) {
    %c0_i32 = arith.constant 0 : i32
    %c0_i32_0 = arith.constant 0 : i32
    %c0_i32_1 = arith.constant 0 : i32
    return %c0_i32, %c0_i32_0 : i32, i32
  }
  func.func @transform_3(%arg0: i32, %arg1: memref<1xi32, #tpu.memory_space<smem>>) -> (i32, i32) {
    %c0_i32 = arith.constant 0 : i32
    %c0_i32_0 = arith.constant 0 : i32
    %c0_i32_1 = arith.constant 0 : i32
    return %c0_i32, %c0_i32_0 : i32, i32
  }
  func.func @transform_4(%arg0: i32, %arg1: memref<1xi32, #tpu.memory_space<smem>>) -> (i32, i32) {
    %c0_i32 = arith.constant 0 : i32
    %c0_i32_0 = arith.constant 0 : i32
    %c0_i32_1 = arith.constant 0 : i32
    return %c0_i32, %c0_i32_0 : i32, i32
  }
  func.func @transform_5(%arg0: i32, %arg1: memref<1xi32, #tpu.memory_space<smem>>) -> (i32, i32) {
    %c0_i32 = arith.constant 0 : i32
    %c0_i32_0 = arith.constant 0 : i32
    %c0_i32_1 = arith.constant 0 : i32
    return %c0_i32, %c0_i32_0 : i32, i32
  }
  func.func @transform_6(%arg0: i32, %arg1: memref<1xi32, #tpu.memory_space<smem>>) -> (i32, i32) {
    %c0_i32 = arith.constant 0 : i32
    %c0_i32_0 = arith.constant 0 : i32
    %c0_i32_1 = arith.constant 0 : i32
    return %c0_i32, %c0_i32_0 : i32, i32
  }
  func.func @transform_7(%arg0: i32, %arg1: memref<1xi32, #tpu.memory_space<smem>>) -> (i32, i32, i32) {
    %c0_i32 = arith.constant 0 : i32
    %c0_i32_0 = arith.constant 0 : i32
    %c0_i32_1 = arith.constant 0 : i32
    %c0_i32_2 = arith.constant 0 : i32
    return %c0_i32, %c0_i32_0, %c0_i32_1 : i32, i32, i32
  }
  func.func @transform_8(%arg0: i32, %arg1: memref<1xi32, #tpu.memory_space<smem>>) -> (i32, i32) {
    %c0_i32 = arith.constant 0 : i32
    %c0_i32_0 = arith.constant 0 : i32
    %c0_i32_1 = arith.constant 0 : i32
    return %c0_i32, %c0_i32_0 : i32, i32
  }
  func.func @transform_9(%arg0: i32, %arg1: memref<1xi32, #tpu.memory_space<smem>>) -> (i32, i32) {
    %c0_i32 = arith.constant 0 : i32
    %c0_i32_0 = arith.constant 0 : i32
    %c0_i32_1 = arith.constant 0 : i32
    return %c0_i32, %c0_i32_0 : i32, i32
  }
  func.func @transform_10(%arg0: i32, %arg1: memref<1xi32, #tpu.memory_space<smem>>) -> (i32, i32) {
    %c0_i32 = arith.constant 0 : i32
    %c0_i32_0 = arith.constant 0 : i32
    %c0_i32_1 = arith.constant 0 : i32
    return %c0_i32, %c0_i32_0 : i32, i32
  }
}

</mosaic_0001>

<bundles_post_ra>
// kernel: tpu_custom_call.1
= control target key start
LH: loop header
LB: loop body
LE: loop exit
PB: predicated region body
PF: predicated region fallthrough
CT: control target
= control target key end

     0   :  { %17 = vsyncpa [#allocation6], 0  ;;  %s7708_s0 = inlined_call_operand.<no memory space> [shape: s32[1], index: 0, kind: input, shape index: {}]   ;;  %s7709_s1 = inlined_call_operand.hbm [shape: f32[14,8,32], index: 1, kind: input, shape index: {}]   ;;  %s7710_s2 = inlined_call_operand.hbm [shape: f32[32,256], index: 2, kind: input, shape index: {}]   ;;  %s7711_s3 = inlined_call_operand.hbm [shape: f32[64,256], index: 3, kind: input, shape index: {}]   ;;  %s7712_s4 = inlined_call_operand.hbm [shape: f32[8,256], index: 4, kind: input, shape index: {}]   ;;  %s7713_s5 = inlined_call_operand.hbm [shape: f32[64,256], index: 5, kind: input, shape index: {}]   ;;  %s7714_s6 = inlined_call_operand.hbm [shape: f32[64,256], index: 6, kind: input, shape index: {}]   ;;  %s7715_s7 = inlined_call_operand.vmem [shape: f32[8,256], index: 7, kind: input, shape index: {}]   ;;  %s7716_s8 = inlined_call_operand.hbm [shape: f32[2,8,16], index: 8, kind: input, shape index: {}]   ;;  %s7717_s9 = inlined_call_operand.hbm [shape: f32[64,64], index: 9, kind: input, shape index: {}]   ;;  %s7718_s10 = inlined_call_operand.vmem [shape: f32[8,32], index: 10, kind: input, shape index: {}]   ;;  %s7719_s11 = inlined_call_operand.hbm [shape: f32[1,1], index: 11, kind: output, shape index: {}]  }
   0x1   :  { %18 = vsyncpa [#allocation9], 0 }
   0x2   :  { %19 = vsyncpa [#allocation12], 0 }
   0x3   :  { %20 = vsyncpa [#allocation15], 0 }
   0x4   :  { %21 = vsyncpa [#allocation18], 0 }
   0x5   :  { %22 = vsyncpa [#allocation7], 0  ;;  %s6359_s17 = smov [#allocation8]   ;;  %s6161_s21 = scalar_lea.hbm %s7710_s2, 1024 }
   0x6   :  { %s40_s18 = sshll.u32 %s6359_s17, 4  ;;  %p6162_p0 = scmp.ne.s32.totalorder %s7710_s2, %s6161_s21  ;;  %s41_s18 = int_to_ptr.vmem [resolvable:$true] %s40_s18 }
   0x7   :  { %p6165_p1 = scmp.lt.u32.totalorder %s6161_s21, %s7710_s2 }
   0x9   :  { %p6167_p2 = pnand %p6165_p1, %p6162_p0 }
   0xb   :  { %6170 = shalt.err (!%p6167_p2)
}
   0xc   :  { %s6171_s26 = scalar_lea.vmem %s41_s18, 1024  ;;  %p6176_p4 = scmp.lt.s32.totalorder %s41_s18, %s41_s18 }
   0xd   :  { %p6172_p3 = scmp.ne.s32.totalorder %s41_s18, %s6171_s26  ;;  %p6177_p5 = scmp.lt.s32.totalorder %s6171_s26, %s6171_s26 }
   0xf   :  { %p6178_p6 = por %p6177_p5, %p6176_p4 }
  0x11   :  { %p6179_p7 = pnand %p6178_p6, %p6172_p3 }
  0x13   :  { %6182 = shalt.err (!%p6179_p7)
}
  0x14   :  { %s6360_s27 = smov 256   ;;  %s6361_s28 = smov 16  }
  0x15   :  { %46 = dma.hbm_to_vmem [thread:$0]  %s7710_s2, 1024, %s41_s18, [#allocation9], %s6360_s27, %s6360_s27, %s6361_s28  }
  0x16   :  { %s6362_s12 = smov [#allocation11]   ;;  %s6363_s14 = smov [#allocation14]  }
  0x17   :  { %s65_s13 = sshll.u32 %s6362_s12, 4  ;;  %s86_s15 = sshll.u32 %s6363_s14, 4  ;;  %s66_s13 = int_to_ptr.vmem [resolvable:$true] %s65_s13  ;;  %s87_s15 = int_to_ptr.vmem [resolvable:$true] %s86_s15 }
  0x18   :  { %s6183_s19 = scalar_lea.hbm %s7712_s4, 256 }
  0x19   :  { %p6184_p8 = scmp.ne.s32.totalorder %s7712_s4, %s6183_s19  ;;  %p6187_p9 = scmp.lt.u32.totalorder %s6183_s19, %s7712_s4 }
  0x1b   :  { %p6189_p10 = pnand %p6187_p9, %p6184_p8 }
  0x1d   :  { %6192 = shalt.err (!%p6189_p10)
}
  0x1e   :  { %s6193_s2 = scalar_lea.vmem %s66_s13, 256  ;;  %p6198_p12 = scmp.lt.s32.totalorder %s66_s13, %s66_s13 }
  0x1f   :  { %p6194_p11 = scmp.ne.s32.totalorder %s66_s13, %s6193_s2  ;;  %p6199_p13 = scmp.lt.s32.totalorder %s6193_s2, %s6193_s2 }
  0x21   :  { %p6200_p0 = por %p6199_p13, %p6198_p12 }
  0x23   :  { %p6201_p1 = pnand %p6200_p0, %p6194_p11 }
  0x25   :  { %6204 = shalt.err (!%p6201_p1)
}
  0x26   :  { %68 = dma.hbm_to_vmem [thread:$0]  %s7712_s4, 256, %s66_s13, [#allocation12]  }
  0x27   :  { %s6205_s29 = scalar_lea.hbm %s7714_s6, 2048 }
  0x28   :  { %p6206_p2 = scmp.ne.s32.totalorder %s7714_s6, %s6205_s29  ;;  %p6209_p3 = scmp.lt.u32.totalorder %s6205_s29, %s7714_s6 }
  0x2a   :  { %p6211_p4 = pnand %p6209_p3, %p6206_p2 }
  0x2c   :  { %6214 = shalt.err (!%p6211_p4)
}
  0x2d   :  { %s6215_s17 = scalar_lea.vmem %s87_s15, 2048  ;;  %p6220_p6 = scmp.lt.s32.totalorder %s87_s15, %s87_s15 }
  0x2e   :  { %p6216_p5 = scmp.ne.s32.totalorder %s87_s15, %s6215_s17  ;;  %p6221_p7 = scmp.lt.s32.totalorder %s6215_s17, %s6215_s17 }
  0x30   :  { %p6222_p8 = por %p6221_p7, %p6220_p6 }
  0x32   :  { %p6223_p9 = pnand %p6222_p8, %p6216_p5 }
  0x34   :  { %6226 = shalt.err (!%p6223_p9)
}
  0x35   :  { %92 = dma.hbm_to_vmem [thread:$0]  %s7714_s6, 2048, %s87_s15, [#allocation15], %s6360_s27, %s6360_s27, %s6361_s28  }
  0x36   :  { %s6364_s19 = smov [#allocation5]   ;;  %s6227_s23 = scalar_lea.hbm %s7709_s1, 1792 }
  0x37   :  { %s28_s20 = sshll.u32 %s6364_s19, 4  ;;  %p6228_p10 = scmp.ne.s32.totalorder %s7709_s1, %s6227_s23  ;;  %s29_s20 = int_to_ptr.vmem [resolvable:$true] %s28_s20 }
  0x38   :  { %p6231_p11 = scmp.lt.u32.totalorder %s6227_s23, %s7709_s1 }
  0x3a   :  { %p6233_p12 = pnand %p6231_p11, %p6228_p10 }
  0x3c   :  { %6236 = shalt.err (!%p6233_p12)
}
  0x3d   :  { %s6237_s26 = scalar_lea.vmem %s29_s20, 1792  ;;  %p6242_p0 = scmp.lt.s32.totalorder %s29_s20, %s29_s20 }
  0x3e   :  { %p6238_p13 = scmp.ne.s32.totalorder %s29_s20, %s6237_s26  ;;  %p6243_p1 = scmp.lt.s32.totalorder %s6237_s26, %s6237_s26 }
  0x40   :  { %p6244_p2 = por %p6243_p1, %p6242_p0 }
  0x42   :  { %p6245_p3 = pnand %p6244_p2, %p6238_p13 }
  0x44   :  { %6248 = shalt.err (!%p6245_p3)
}
  0x45   :  { %s6365_s6 = smov 128   ;;  %s6366_s15 = smov 8  }
  0x46   :  { %34 = dma.hbm_to_vmem [thread:$0]  %s7709_s1, 1792, %s29_s20, [#allocation6], %s6365_s6, %s6365_s6, %s6366_s15  }
  0x47   :  { %s6367_s12 = smov [#allocation10]   ;;  %s6368_s16 = smov [#allocation13]  }
  0x48   :  { %s52_s14 = sshll.u32 %s6367_s12, 4  ;;  %s74_s17 = sshll.u32 %s6368_s16, 4  ;;  %s53_s14 = int_to_ptr.vmem [resolvable:$true] %s52_s14  ;;  %s6499_s17 = int_to_ptr.vmem [resolvable:$true] %s74_s17 }
  0x49   :  { %s6249_s19 = scalar_lea.hbm %s7711_s3, 2048 }
  0x4a   :  { %p6250_p4 = scmp.ne.s32.totalorder %s7711_s3, %s6249_s19  ;;  %p6253_p5 = scmp.lt.u32.totalorder %s6249_s19, %s7711_s3 }
  0x4c   :  { %p6255_p6 = pnand %p6253_p5, %p6250_p4 }
  0x4e   :  { %6258 = shalt.err (!%p6255_p6)
}
  0x4f   :  { %s6259_s1 = scalar_lea.vmem %s53_s14, 2048  ;;  %p6264_p8 = scmp.lt.s32.totalorder %s53_s14, %s53_s14 }
  0x50   :  { %p6260_p7 = scmp.ne.s32.totalorder %s53_s14, %s6259_s1  ;;  %p6265_p9 = scmp.lt.s32.totalorder %s6259_s1, %s6259_s1 }
  0x52   :  { %p6266_p10 = por %p6265_p9, %p6264_p8 }
  0x54   :  { %p6267_p11 = pnand %p6266_p10, %p6260_p7 }
  0x56   :  { %6270 = shalt.err (!%p6267_p11)
}
  0x57   :  { %58 = dma.hbm_to_vmem [thread:$0]  %s7711_s3, 2048, %s53_s14, [#allocation9], %s6360_s27, %s6360_s27, %s6361_s28  }
  0x58   :  { %s6271_s26 = scalar_lea.hbm %s7713_s5, 2048 }
  0x59   :  { %p6272_p12 = scmp.ne.s32.totalorder %s7713_s5, %s6271_s26  ;;  %p6275_p13 = scmp.lt.u32.totalorder %s6271_s26, %s7713_s5 }
  0x5b   :  { %p6277_p0 = pnand %p6275_p13, %p6272_p12 }
  0x5d   :  { %6280 = shalt.err (!%p6277_p0)
}
  0x5e   :  { %s6281_s4 = scalar_lea.vmem %s6499_s17, 2048  ;;  %p6286_p2 = scmp.lt.s32.totalorder %s6499_s17, %s6499_s17 }
  0x5f   :  { %p6282_p1 = scmp.ne.s32.totalorder %s6499_s17, %s6281_s4  ;;  %p6287_p3 = scmp.lt.s32.totalorder %s6281_s4, %s6281_s4 }
  0x61   :  { %p6288_p4 = por %p6287_p3, %p6286_p2 }
  0x63   :  { %p6289_p5 = pnand %p6288_p4, %p6282_p1 }
  0x65   :  { %6292 = shalt.err (!%p6289_p5)
}
  0x66   :  { %80 = dma.hbm_to_vmem [thread:$0]  %s7713_s5, 2048, %s6499_s17, [#allocation12], %s6360_s27, %s6360_s27, %s6361_s28  }
  0x67   :  { %s6369_s13 = smov [#allocation16]   ;;  %s6370_s21 = smov [#allocation17]  }
  0x68   :  { %s100_s19 = sshll.u32 %s6369_s13, 4  ;;  %s112_s22 = sshll.u32 %s6370_s21, 4  ;;  %s101_s19 = int_to_ptr.vmem [resolvable:$true] %s100_s19  ;;  %s6536_s22 = int_to_ptr.vmem [resolvable:$true] %s112_s22 }
  0x69   :  { %s6293_s1 = scalar_lea.hbm %s7716_s8, 256 }
  0x6a   :  { %p6294_p6 = scmp.ne.s32.totalorder %s7716_s8, %s6293_s1  ;;  %p6297_p7 = scmp.lt.u32.totalorder %s6293_s1, %s7716_s8 }
  0x6c   :  { %p6299_p8 = pnand %p6297_p7, %p6294_p6 }
  0x6e   :  { %6302 = shalt.err (!%p6299_p8)
}
  0x6f   :  { %s6303_s5 = scalar_lea.vmem %s101_s19, 256  ;;  %p6308_p10 = scmp.lt.s32.totalorder %s101_s19, %s101_s19 }
  0x70   :  { %p6304_p9 = scmp.ne.s32.totalorder %s101_s19, %s6303_s5  ;;  %p6309_p11 = scmp.lt.s32.totalorder %s6303_s5, %s6303_s5 }
  0x72   :  { %p6310_p12 = por %p6309_p11, %p6308_p10 }
  0x74   :  { %p6311_p13 = pnand %p6310_p12, %p6304_p9 }
  0x76   :  { %6314 = shalt.err (!%p6311_p13)
}
  0x77   :  { %106 = dma.hbm_to_vmem [thread:$0]  %s7716_s8, 256, %s101_s19, [#allocation15], %s6365_s6, %s6365_s6, %s6366_s15  }
  0x78   :  { %s6315_s29 = scalar_lea.hbm %s7717_s9, 1024 }
  0x79   :  { %p6316_p0 = scmp.ne.s32.totalorder %s7717_s9, %s6315_s29  ;;  %p6319_p1 = scmp.lt.u32.totalorder %s6315_s29, %s7717_s9 }
  0x7b   :  { %p6321_p2 = pnand %p6319_p1, %p6316_p0 }
  0x7d   :  { %6324 = shalt.err (!%p6321_p2)
}
  0x7e   :  { %s6325_s3 = scalar_lea.vmem %s6536_s22, 1024  ;;  %p6330_p4 = scmp.lt.s32.totalorder %s6536_s22, %s6536_s22 }
  0x7f   :  { %p6326_p3 = scmp.ne.s32.totalorder %s6536_s22, %s6325_s3  ;;  %p6331_p5 = scmp.lt.s32.totalorder %s6325_s3, %s6325_s3 }
  0x81   :  { %p6332_p6 = por %p6331_p5, %p6330_p4 }
  0x83   :  { %p6333_p7 = pnand %p6332_p6, %p6326_p3 }
  0x85   :  { %6336 = shalt.err (!%p6333_p7)
}
  0x86   :  { %118 = dma.hbm_to_vmem [thread:$0]  %s7717_s9, 1024, %s6536_s22, [#allocation18], %s6365_s6, %s6365_s6, %s6366_s15  }
  0x87   :  { %6347 = dma.done.wait [#allocation6], 1792  }
  0x88   :  { %6348 = vsyncadd [#allocation6], 4294965504 }
  0x89   :  { %6349 = dma.done.wait [#allocation9], 3072  }
  0x8a   :  { %6350 = vsyncadd [#allocation9], 4294964224 }
  0x8b   :  { %6351 = dma.done.wait [#allocation12], 2304  }
  0x8c   :  { %6352 = vsyncadd [#allocation12], 4294964992 }
  0x8d   :  { %6353 = dma.done.wait [#allocation15], 2304  }
  0x8e   :  { %6354 = vsyncadd [#allocation15], 4294964992 }
  0x8f   :  { %6355 = dma.done.wait [#allocation18], 1024  }
  0x90   :  { %6356 = vsyncadd [#allocation18], 4294966272  ;;  %v6371_v0 = vmov 0.0   ;;  %v164_v1 = vld [vmem:[#allocation8 + $0x8] sm:$0xff]  ;;  %v166_v2 = vld [vmem:[#allocation8 + $0x18] sm:$0xff]  ;;  %vm171_vm0 = vcmask 261120  }
  0x91   :  { %278 = vmatprep.mubr.f32.mxu0 %v6371_v0  ;;  %631 = vmatprep.mubr.f32.mxu1 %v6371_v0  ;;  %v163_v3 = vld [vmem:[#allocation8] sm:$0xff]  ;;  %v4966_v4 = vpack.c.bf16 %v166_v2, %v164_v1  ;;  %v165_v5 = vld [vmem:[#allocation8 + $0x10] sm:$0xff]  ;;  %v168_v6 = vld [vmem:[#allocation8 + $0x28] sm:$0xff]  ;;  %s6372_s9 = smov 64   ;;  %vm441_vm2 = vcmask 523264   ;;  %s6376_s28 = smov 112  }
  0x92   :  { %v170_v7 = vld [vmem:[#allocation8 + $0x38] sm:$0xff]  ;;  %v4968_v8 = vpack.c.bf16 %v165_v5, %v163_v3  ;;  %v167_v10 = vld [vmem:[#allocation8 + $0x20] sm:$0xff]  ;;  %v169_v11 = vld [vmem:[#allocation8 + $0x30] sm:$0xff]  ;;  %s6337_s14 = scalar_lea.hbm %s7719_s11, 16 }
  0x93   :  { %v4970_v9 = vpack.c.bf16 %v170_v7, %v168_v6  ;;  %4967 = vmatprep.subr.bf16.mxu0 %v4966_v4  ;;  %v426_v12 = vld [vmem:[#allocation10 + $0x8] sm:$0xff]  ;;  %v428_v13 = vld [vmem:[#allocation10 + $0x18] sm:$0xff]  ;;  %v4972_v14 = vpack.c.bf16 %v169_v11, %v167_v10  ;;  %v425_v16 = vld [vmem:[#allocation10] sm:$0xff]  ;;  %p6338_p8 = scmp.ne.s32.totalorder %s7719_s11, %s6337_s14  ;;  %p6341_p9 = scmp.lt.u32.totalorder %s6337_s14, %s7719_s11 }
  0x94   :  { %4969 = vmatpush1.bf16.msra.mxu0 %v4968_v8  ;;  %v6575_v15 = vpack.c.bf16 %v428_v13, %v426_v12  ;;  %v427_v17 = vld [vmem:[#allocation10 + $0x10] sm:$0xff]  ;;  %v430_v18 = vld [vmem:[#allocation10 + $0x28] sm:$0xff]  ;;  %v432_v19 = vld [vmem:[#allocation10 + $0x38] sm:$0xff] }
  0x95   :  { %4971 = vmatprep.subr.bf16.mxu0 %v4970_v9  ;;  %v149_v20 = vld [vmem:[#allocation5] sm:$0xff]  ;;  %v6577_v21 = vpack.c.bf16 %v427_v17, %v425_v16  ;;  %v6580_v22 = vpack.c.bf16 %v432_v19, %v430_v18  ;;  %v429_v23 = vld [vmem:[#allocation10 + $0x20] sm:$0xff]  ;;  %v434_v25 = vld [vmem:[#allocation10 + $0x48] sm:$0xff]  ;;  %p6343_p10 = pnand %p6341_p9, %p6338_p8 }
  0x96   :  { %v431_v24 = vld [vmem:[#allocation10 + $0x30] sm:$0xff]  ;;  %v436_v26 = vld [vmem:[#allocation10 + $0x58] sm:$0xff]  ;;  %v433_v30 = vld [vmem:[#allocation10 + $0x40] sm:$0xff] }
  0x97   :  { %v150_v27 = vld [vmem:[#allocation5 + $0x8] sm:$0xff]  ;;  %v6585_v28 = vpack.c.bf16 %v431_v24, %v429_v23  ;;  %v6588_v29 = vpack.c.bf16 %v436_v26, %v434_v25  ;;  %v435_v31 = vld [vmem:[#allocation10 + $0x50] sm:$0xff]  ;;  %v438_v32 = vld [vmem:[#allocation10 + $0x68] sm:$0xff] }
  0x98   :  { %4973 = vmatpush1.bf16.msra.mxu0 %v4972_v14  ;;  %v440_v33 = vld [vmem:[#allocation10 + $0x78] sm:$0xff]  ;;  %v151_v34 = vld [vmem:[#allocation5 + $0x10] sm:$0xff]  ;;  %v6593_v35 = vpack.c.bf16 %v435_v31, %v433_v30  ;;  %v439_v38 = vld [vmem:[#allocation10 + $0x70] sm:$0xff] }
  0x99   :  { %4975 = vmatprep.subr.bf16.mxu0 %v6575_v15  ;;  %v6596_v36 = vpack.c.bf16 %v440_v33, %v438_v32  ;;  %v437_v37 = vld [vmem:[#allocation10 + $0x60] sm:$0xff]  ;;  %v152_v39 = vld [vmem:[#allocation5 + $0x18] sm:$0xff]  ;;  %v153_v41 = vld [vmem:[#allocation5 + $0x20] sm:$0xff] }
  0x9a   :  { %v6601_v40 = vpack.c.bf16 %v439_v38, %v437_v37  ;;  %v154_v42 = vld [vmem:[#allocation5 + $0x28] sm:$0xff]  ;;  %v155_v43 = vld [vmem:[#allocation5 + $0x30] sm:$0xff]  ;;  %v156_v44 = vld [vmem:[#allocation5 + $0x38] sm:$0xff] }
  0x9b   :  { %4809 = vmatmul.mubr.msk.f32.vlgmr.msra.gmra.mrb[0].mxu0 %vm171_vm0, %v149_v20  ;;  %v157_v45 = vld [vmem:[#allocation5 + $0x40] sm:$0xff]  ;;  %v158_v46 = vld [vmem:[#allocation5 + $0x48] sm:$0xff]  ;;  %v159_v47 = vld [vmem:[#allocation5 + $0x50] sm:$0xff] }
  0x9c   :  { %4977 = vmatpush1.bf16.msra.mxu0 %v6577_v21  ;;  %284 = vmatprep.mubr.f32.mxu0 %v6371_v0  ;;  %v160_v48 = vld [vmem:[#allocation5 + $0x58] sm:$0xff]  ;;  %v161_v49 = vld [vmem:[#allocation5 + $0x60] sm:$0xff]  ;;  %v162_v50 = vld [vmem:[#allocation5 + $0x68] sm:$0xff] }
  0x9d   :  { %4979 = vmatprep.subr.bf16.mxu0 %v6580_v22  ;;  %v6638_v51 = vld [vmem:[#allocation11] sm:$0xff]  ;;  %v6641_v56 = vld [vmem:[#allocation11 + $0x8] sm:$0xff]  ;;  %v545_v63 = vld [vmem:[#allocation13 + $0x8] sm:$0xff] }
  0x9e   :  { %v547_v1 = vld [vmem:[#allocation13 + $0x18] sm:$0xff]  ;;  %v544_v2 = vld [vmem:[#allocation13] sm:$0xff]  ;;  %v546_v4 = vld [vmem:[#allocation13 + $0x10] sm:$0xff] }
  0x9f   :  { %4810 = vmatmul.mubr.msk.f32.gmra.mrb[2].mxu0 %vm171_vm0, %v150_v27  ;;  %v6645_v3 = vpack.c.bf16 %v547_v1, %v545_v63  ;;  %v549_v5 = vld [vmem:[#allocation13 + $0x28] sm:$0xff]  ;;  %v551_v6 = vld [vmem:[#allocation13 + $0x38] sm:$0xff]  ;;  %v6647_v7 = vpack.c.bf16 %v546_v4, %v544_v2  ;;  %v548_v9 = vld [vmem:[#allocation13 + $0x20] sm:$0xff] }
  0xa0   :  { %290 = vmatprep.mubr.f32.mxu0 %v6371_v0  ;;  %4981 = vmatpush1.bf16.msra.mxu0 %v6585_v28  ;;  %v6649_v8 = vpack.c.bf16 %v551_v6, %v549_v5  ;;  %v550_v10 = vld [vmem:[#allocation13 + $0x30] sm:$0xff]  ;;  %v553_v11 = vld [vmem:[#allocation13 + $0x48] sm:$0xff]  ;;  %v555_v12 = vld [vmem:[#allocation13 + $0x58] sm:$0xff] }
  0xa1   :  { %4983 = vmatprep.subr.bf16.mxu0 %v6588_v29  ;;  %4991 = vmatprep.subr.bf16.mxu1 %v6645_v3  ;;  %v6653_v13 = vpack.c.bf16 %v550_v10, %v548_v9  ;;  %v6656_v14 = vpack.c.bf16 %v555_v12, %v553_v11  ;;  %v552_v16 = vld [vmem:[#allocation13 + $0x40] sm:$0xff]  ;;  %v554_v17 = vld [vmem:[#allocation13 + $0x50] sm:$0xff]  ;;  %v557_v18 = vld [vmem:[#allocation13 + $0x68] sm:$0xff] }
  0xa2   :  { %4993 = vmatpush1.bf16.msra.mxu1 %v6647_v7  ;;  %v559_v19 = vld [vmem:[#allocation13 + $0x78] sm:$0xff]  ;;  %v6659_v20 = vpack.c.bf16 %v554_v17, %v552_v16  ;;  %v556_v24 = vld [vmem:[#allocation13 + $0x60] sm:$0xff]  ;;  %v558_v25 = vld [vmem:[#allocation13 + $0x70] sm:$0xff] }
  0xa3   :  { %4811 = vmatmul.mubr.msk.f32.gmra.mrb[4].mxu0 %vm171_vm0, %v151_v34  ;;  %4995 = vmatprep.subr.bf16.mxu1 %v6649_v8  ;;  %v6662_v23 = vpack.c.bf16 %v559_v19, %v557_v18  ;;  %v639_v26 = vld [vmem:[#allocation14 + $0x8] sm:$0xff]  ;;  %v641_v27 = vld [vmem:[#allocation14 + $0x18] sm:$0xff]  ;;  %v6665_v30 = vpack.c.bf16 %v558_v25, %v556_v24  ;;  %v650_v5 = vld [vmem:[#allocation14 + $0x60] sm:$0xff] }
  0xa4   :  { %296 = vmatprep.mubr.f32.mxu0 %v6371_v0  ;;  %4985 = vmatpush1.bf16.msra.mxu0 %v6593_v35  ;;  %v6668_v31 = vpack.c.bf16 %v641_v27, %v639_v26  ;;  %v651_v63 = vld [vmem:[#allocation14 + $0x68] sm:$0xff]  ;;  %v653_v1 = vld [vmem:[#allocation14 + $0x78] sm:$0xff]  ;;  %v652_v6 = vld [vmem:[#allocation14 + $0x70] sm:$0xff] }
  0xa5   :  { %4987 = vmatprep.subr.bf16.mxu0 %v6596_v36  ;;  %v6707_v4 = vpack.c.bf16 %v653_v1, %v651_v63  ;;  %v6712_v9 = vpack.c.bf16 %v652_v6, %v650_v5  ;;  %v6736_v18 = vld [vmem:[%s7715_s7] sm:$0xff] }
  0xa6   :  { %4997 = vmatpush1.bf16.msra.mxu1 %v6653_v13 }
  0xa7   :  { %4812 = vmatmul.mubr.msk.f32.gmra.mrb[6].mxu0 %vm171_vm0, %v152_v39  ;;  %4999 = vmatprep.subr.bf16.mxu1 %v6656_v14 }
  0xa8   :  { %302 = vmatprep.mubr.f32.mxu0 %v6371_v0  ;;  %4989 = vmatpush1.bf16.msra.mxu0 %v6601_v40 }
  0xa9   :  { %5023 = vmatprep.subr.bf16.mxu0 %v6575_v15 }
  0xaa   :  { %5001 = vmatpush1.bf16.msra.mxu1 %v6659_v20 }
  0xab   :  { %4813 = vmatmul.mubr.msk.f32.gmra.mrb[8].mxu0 %vm171_vm0, %v153_v41  ;;  %5003 = vmatprep.subr.bf16.mxu1 %v6662_v23 }
  0xac   :  { %308 = vmatprep.mubr.f32.mxu0 %v6371_v0 }
  0xae   :  { %5005 = vmatpush1.bf16.msra.mxu1 %v6665_v30 }
  0xaf   :  { %4814 = vmatmul.mubr.msk.f32.gmra.mrb[10].mxu0 %vm171_vm0, %v154_v42  ;;  %5007 = vmatprep.subr.bf16.mxu1 %v6668_v31  ;;  %v6678_v42 = vstv %s7708_s0 }
  0xb0   :  { %314 = vmatprep.mubr.f32.mxu0 %v6371_v0  ;;  %vm422_vm1 = vcmp.gt.s32.totalorder %v6678_v42, 0  ;;  %vm751_vm3 = vcmp.gt.s32.totalorder %v6678_v42, 1  ;;  %vm1032_vm4 = vcmp.gt.s32.totalorder %v6678_v42, 2  ;;  %vm1313_vm5 = vcmp.gt.s32.totalorder %v6678_v42, 3 }
  0xb1   :  { %vm1594_vm6 = vcmp.gt.s32.totalorder %v6678_v42, 4  ;;  %vm1875_vm7 = vcmp.gt.s32.totalorder %v6678_v42, 5  ;;  %vm2156_vm8 = vcmp.gt.s32.totalorder %v6678_v42, 6  ;;  %vm2437_vm9 = vcmp.gt.s32.totalorder %v6678_v42, 7 }
  0xb2   :  { %vm2718_vm10 = vcmp.gt.s32.totalorder %v6678_v42, 8  ;;  %vm2999_vm11 = vcmp.gt.s32.totalorder %v6678_v42, 9  ;;  %vm3280_vm12 = vcmp.gt.s32.totalorder %v6678_v42, 10  ;;  %vm3561_vm13 = vcmp.gt.s32.totalorder %v6678_v42, 11 }
  0xb3   :  { %4815 = vmatmul.mubr.msk.f32.gmra.mrb[12].mxu0 %vm171_vm0, %v155_v43  ;;  %vm3842_vm14 = vcmp.gt.s32.totalorder %v6678_v42, 12  ;;  %vm4123_vm15 = vcmp.gt.s32.totalorder %v6678_v42, 13  ;;  %v4416_v42 = vld [vmem:[#allocation17 + $0x20] sm:$0xff] }
  0xb4   :  { %320 = vmatprep.mubr.f32.mxu0 %v6371_v0 }
  0xb7   :  { %4816 = vmatmul.mubr.msk.f32.gmra.mrb[14].mxu0 %vm171_vm0, %v156_v44 }
  0xb8   :  { %326 = vmatprep.mubr.f32.mxu0 %v6371_v0 }
  0xbb   :  { %4817 = vmatmul.mubr.msk.f32.gmra.mrb[16].mxu0 %vm171_vm0, %v157_v45 }
  0xbc   :  { %332 = vmatprep.mubr.f32.mxu0 %v6371_v0 }
  0xbf   :  { %4818 = vmatmul.mubr.msk.f32.gmra.mrb[18].mxu0 %vm171_vm0, %v158_v46  ;;  %v638_v46 = vld [vmem:[#allocation14] sm:$0xff] }
  0xc0   :  { %338 = vmatprep.mubr.f32.mxu0 %v6371_v0 }
  0xc3   :  { %4819 = vmatmul.mubr.msk.f32.gmra.mrb[20].mxu0 %vm171_vm0, %v159_v47  ;;  %v640_v47 = vld [vmem:[#allocation14 + $0x10] sm:$0xff] }
  0xc4   :  { %344 = vmatprep.mubr.f32.mxu0 %v6371_v0 }
  0xc7   :  { %4820 = vmatmul.mubr.msk.f32.gmra.mrb[22].mxu0 %vm171_vm0, %v160_v48  ;;  %v643_v48 = vld [vmem:[#allocation14 + $0x28] sm:$0xff] }
  0xc8   :  { %350 = vmatprep.mubr.f32.mxu0 %v6371_v0 }
  0xcb   :  { %4821 = vmatmul.mubr.msk.f32.gmra.mrb[24].mxu0 %vm171_vm0, %v161_v49  ;;  %v645_v49 = vld [vmem:[#allocation14 + $0x38] sm:$0xff] }
  0xcc   :  { %356 = vmatprep.mubr.f32.mxu0 %v6371_v0 }
  0xcf   :  { %4822 = vmatmul.mubr.msk.f32.gmra.mrb[26].mxu0 %vm171_vm0, %v162_v50  ;;  %v6687_v50 = vpack.c.bf16 %v640_v47, %v638_v46  ;;  %vm6374_vm0 = vmmov 0  }
  0xd0   :  { %509 = vmatprep.mubr.f32.mxu0 %v6371_v0 }
  0xd3   :  { %510 = vmatmul.mubr.f32.vlgmr.msra.gmra.mrb[0].mxu0 %v6371_v0 }
  0xd4   :  { %5025 = vmatpush1.bf16.msra.mxu0 %v6577_v21  ;;  %819 = vmatprep.mubr.f32.mxu0 %v6371_v0 }
  0xd5   :  { %5027 = vmatprep.subr.bf16.mxu0 %v6580_v22 }
  0xd8   :  { %5029 = vmatpush1.bf16.msra.mxu0 %v6585_v28 }
  0xd9   :  { %5031 = vmatprep.subr.bf16.mxu0 %v6588_v29 }
  0xdc   :  { %5033 = vmatpush1.bf16.msra.mxu0 %v6593_v35 }
  0xdd   :  { %5035 = vmatprep.subr.bf16.mxu0 %v6596_v36 }
  0xe0   :  { %5037 = vmatpush1.bf16.msra.mxu0 %v6601_v40 }
  0xe1   :  { %5071 = vmatprep.subr.bf16.mxu0 %v6575_v15 }
 0x1a6   :  { %v511_v52 = vpop.f32.mrb[0].mxu0 }
 0x1a7   :  { %v5658_v53 = vadd.f32 %v511_v52, %v6638_v51  ;;  %v513_v54 = vpop.f32.mrb[1].mxu0  ;;  %v6689_v52 = vpack.c.bf16 %v645_v49, %v643_v48 }
 0x1a8   :  { %v5659_v57 = vadd.f32 %v513_v54, %v6641_v56  ;;  %v644_v54 = vld [vmem:[#allocation14 + $0x30] sm:$0xff] }
 0x1a9   :  { %v4823_v55 = vmul.f32 -1.442695, %v5658_v53  ;;  %v642_v53 = vld [vmem:[#allocation14 + $0x20] sm:$0xff] }
 0x1aa   :  { %v4824_v32 = vmul.f32 -1.442695, %v5659_v57 }
 0x1ab   :  { %5801 = vpow2.f32 %v4823_v55 }
 0x1ac   :  { %5803 = vtanh.f32 %v5659_v57  ;;  %v647_v57 = vld [vmem:[#allocation14 + $0x48] sm:$0xff] }
 0x1b5   :  { %v5802_v58 = vpop.eup %5801 }
 0x1b6   :  { %v524_v59 = vadd.f32 1.0, %v5802_v58  ;;  %v5804_v60 = vpop.eup %5803  ;;  %v649_v58 = vld [vmem:[#allocation14 + $0x58] sm:$0xff] }
 0x1b8   :  { %5805 = vrcp.f32 %v524_v59  ;;  %v6694_v59 = vpack.c.bf16 %v644_v54, %v642_v53 }
 0x1b9   :  { %5807 = vpow2.f32 %v4824_v32 }
 0x1c2   :  { %v5806_v61 = vpop.eup %5805 }
 0x1c3   :  { %v532_v62 = vmul.f32 %v5806_v61, %v5804_v60  ;;  %v5808_v33 = vpop.eup %5807  ;;  %v531_v37 = vmul.f32 0.0, %v5806_v61  ;;  %v6698_v60 = vpack.c.bf16 %v649_v58, %v647_v57  ;;  %v646_v61 = vld [vmem:[#allocation14 + $0x40] sm:$0xff] }
 0x1c4   :  { %v525_v34 = vadd.f32 1.0, %v5808_v33  ;;  %v6742_v33 = vld [vmem:[%s7715_s7 + $0x8] sm:$0xff] }
 0x1c5   :  { %534 = vrot.lane.b32.xlu0 %v532_v62, %s6372_s9  ;;  %v648_v62 = vld [vmem:[#allocation14 + $0x50] sm:$0xff] }
 0x1c6   :  { %5809 = vrcp.f32 %v525_v34  ;;  %v6704_v2 = vpack.c.bf16 %v648_v62, %v646_v61 }
 0x1d0   :  { %v5810_v41 = vpop.eup %5809 }
 0x237   :  { %v535_v38 = vpop.permute.xlu0 %534 }
 0x238   :  { %v6672_v39 = vadd.f32 %v535_v38, %v531_v37 }
 0x23a   :  { %5811 = vtanh.f32 %v6672_v39 }
 0x244   :  { %v5812_v43 = vpop.eup %5811 }
 0x245   :  { %v539_v44 = vmul.f32 %v5812_v43, %v5810_v41 }
 0x247   :  { %v6683_v45 = vsel %vm422_vm1, %v539_v44, 0.0 }
 0x248   :  { %563 = vrot.lane.b32.xlu0 %v6683_v45, %s6372_s9 }
 0x2ba   :  { %v564_v55 = vpop.permute.xlu0 %563 }
 0x2bb   :  { %4825 = vmatmul.mubr.msk.f32.vlgmr.msra.gmra.mrb[0].mxu1 %vm441_vm2, %v564_v55  ;;  %4828 = vmatmul.mubr.msk.f32.vlgmr.msra.gmra.mrb[2].mxu0 %vm441_vm2, %v564_v55  ;;  %v6750_v55 = vsel %vm422_vm1, %v6672_v39, 0.0 }
 0x2bc   :  { %5009 = vmatpush1.bf16.msra.mxu1 %v6687_v50  ;;  %718 = vmatprep.mubr.f32.mxu1 %v6371_v0 }
 0x2bd   :  { %5011 = vmatprep.subr.bf16.mxu1 %v6689_v52  ;;  %5073 = vmatpush1.bf16.msra.mxu0 %v6577_v21 }
 0x2be   :  { %5075 = vmatprep.subr.bf16.mxu0 %v6580_v22  ;;  %1100 = vmatprep.mubr.f32.mxu0 %v6371_v0 }
 0x2c0   :  { %5013 = vmatpush1.bf16.msra.mxu1 %v6694_v59 }
 0x2c1   :  { %5015 = vmatprep.subr.bf16.mxu1 %v6698_v60  ;;  %5077 = vmatpush1.bf16.msra.mxu0 %v6585_v28 }
 0x2c2   :  { %5079 = vmatprep.subr.bf16.mxu0 %v6588_v29 }
 0x2c4   :  { %5017 = vmatpush1.bf16.msra.mxu1 %v6704_v2 }
 0x2c5   :  { %5019 = vmatprep.subr.bf16.mxu1 %v6707_v4  ;;  %5081 = vmatpush1.bf16.msra.mxu0 %v6593_v35 }
 0x2c6   :  { %5083 = vmatprep.subr.bf16.mxu0 %v6596_v36 }
 0x2c8   :  { %5021 = vmatpush1.bf16.msra.mxu1 %v6712_v9 }
 0x2c9   :  { %5039 = vmatprep.subr.bf16.mxu1 %v6645_v3  ;;  %5085 = vmatpush1.bf16.msra.mxu0 %v6601_v40 }
 0x2ca   :  { %5119 = vmatprep.subr.bf16.mxu0 %v6575_v15 }
 0x2cb   :  { %719 = vmatmul.mubr.f32.vlgmr.msra.gmra.mrb[0].mxu1 %v6371_v0 }
 0x2cc   :  { %5041 = vmatpush1.bf16.msra.mxu1 %v6647_v7  ;;  %923 = vmatprep.mubr.f32.mxu1 %v6371_v0 }
 0x2cd   :  { %5043 = vmatprep.subr.bf16.mxu1 %v6649_v8 }
 0x2d0   :  { %5045 = vmatpush1.bf16.msra.mxu1 %v6653_v13 }
 0x2d1   :  { %5047 = vmatprep.subr.bf16.mxu1 %v6656_v14 }
 0x2d4   :  { %5049 = vmatpush1.bf16.msra.mxu1 %v6659_v20 }
 0x2d5   :  { %5051 = vmatprep.subr.bf16.mxu1 %v6662_v23 }
 0x2d8   :  { %5053 = vmatpush1.bf16.msra.mxu1 %v6665_v30 }
 0x2d9   :  { %5055 = vmatprep.subr.bf16.mxu1 %v6668_v31 }
 0x38e   :  { %v821_v10 = vpop.f32.mrb[2].mxu0 }
 0x38f   :  { %v5660_v11 = vadd.f32 %v821_v10, %v6638_v51  ;;  %v823_v12 = vpop.f32.mrb[3].mxu0 }
 0x390   :  { %v5661_v17 = vadd.f32 %v823_v12, %v6641_v56 }
 0x391   :  { %v4829_v16 = vmul.f32 -1.442695, %v5660_v11 }
 0x392   :  { %v4830_v49 = vmul.f32 -1.442695, %v5661_v17 }
 0x393   :  { %5813 = vpow2.f32 %v4829_v16 }
 0x394   :  { %5815 = vtanh.f32 %v5661_v17 }
 0x39d   :  { %v5814_v19 = vpop.eup %5813 }
 0x39e   :  { %v834_v24 = vadd.f32 1.0, %v5814_v19  ;;  %v720_v25 = vpop.f32.mrb[0].mxu1  ;;  %v5816_v34 = vpop.eup %5815 }
 0x39f   :  { %v5686_v26 = vadd.f32 %v720_v25, %v6736_v18  ;;  %v722_v27 = vpop.f32.mrb[1].mxu1 }
 0x3a0   :  { %5817 = vrcp.f32 %v834_v24  ;;  %v5687_v38 = vadd.f32 %v722_v27, %v6742_v33 }
 0x3a1   :  { %v4826_v32 = vmul.f32 -1.442695, %v5686_v26 }
 0x3a2   :  { %v4827_v54 = vmul.f32 -1.442695, %v5687_v38 }
 0x3a3   :  { %5819 = vpow2.f32 %v4826_v32 }
 0x3a4   :  { %5821 = vtanh.f32 %v5687_v38 }
 0x3aa   :  { %v5818_v37 = vpop.eup %5817 }
 0x3ab   :  { %v842_v41 = vmul.f32 %v5818_v37, %v5816_v34  ;;  %v841_v58 = vmul.f32 %v5818_v37, %v6750_v55 }
 0x3ad   :  { %v5820_v43 = vpop.eup %5819  ;;  %844 = vrot.lane.b32.xlu1 %v842_v41, %s6372_s9 }
 0x3ae   :  { %v733_v44 = vadd.f32 1.0, %v5820_v43  ;;  %v5822_v46 = vpop.eup %5821 }
 0x3b0   :  { %5823 = vrcp.f32 %v733_v44 }
 0x3b1   :  { %5825 = vpow2.f32 %v4830_v49 }
 0x3b2   :  { %5827 = vpow2.f32 %v4827_v54 }
 0x3ba   :  { %v5824_v47 = vpop.eup %5823 }
 0x3bb   :  { %v741_v48 = vmul.f32 %v5824_v47, %v5822_v46  ;;  %v5826_v53 = vpop.eup %5825  ;;  %v740_v11 = vmul.f32 0.0, %v5824_v47 }
 0x3bc   :  { %v835_v57 = vadd.f32 1.0, %v5826_v53  ;;  %v5828_v63 = vpop.eup %5827 }
 0x3bd   :  { %743 = vrot.lane.b32.xlu1 %v741_v48, %s6372_s9  ;;  %v734_v6 = vadd.f32 1.0, %v5828_v63 }
 0x3be   :  { %5829 = vrcp.f32 %v835_v57 }
 0x3c8   :  { %v5830_v1 = vpop.eup %5829 }
 0x41f   :  { %v845_v61 = vpop.permute.xlu1 %844 }
 0x420   :  { %v6753_v62 = vadd.f32 %v845_v61, %v841_v58 }
 0x422   :  { %5831 = vtanh.f32 %v6753_v62 }
 0x423   :  { %5833 = vrcp.f32 %v734_v6 }
 0x42c   :  { %v5832_v5 = vpop.eup %5831 }
 0x42d   :  { %v849_v10 = vmul.f32 %v5832_v5, %v5830_v1  ;;  %v5834_v17 = vpop.eup %5833 }
 0x42f   :  { %v744_v39 = vpop.permute.xlu1 %743  ;;  %v6760_v12 = vsel %vm751_vm3, %v849_v10, %v6683_v45 }
 0x430   :  { %v6762_v16 = vadd.f32 %v744_v39, %v740_v11  ;;  %855 = vrot.lane.b32.xlu0 %v6760_v12, %s6372_s9 }
 0x432   :  { %5835 = vtanh.f32 %v6762_v16 }
 0x43c   :  { %v5836_v19 = vpop.eup %5835 }
 0x43d   :  { %v748_v24 = vmul.f32 %v5836_v19, %v5834_v17  ;;  %v6813_v17 = vsel %vm751_vm3, %v6753_v62, %v6750_v55 }
 0x43f   :  { %v6769_v25 = vsel %vm422_vm1, %v748_v24, 0.0 }
 0x440   :  { %931 = vrot.lane.b32.xlu1 %v6769_v25, %s6372_s9 }
 0x4a2   :  { %v856_v45 = vpop.permute.xlu0 %855 }
 0x4a3   :  { %4831 = vmatmul.mubr.msk.f32.vlgmr.msra.gmra.mrb[2].mxu1 %vm441_vm2, %v856_v45  ;;  %4835 = vmatmul.mubr.msk.f32.vlgmr.msra.gmra.mrb[4].mxu0 %vm441_vm2, %v856_v45 }
 0x4a4   :  { %5057 = vmatpush1.bf16.msra.mxu1 %v6687_v50  ;;  %999 = vmatprep.mubr.f32.mxu1 %v6371_v0 }
 0x4a5   :  { %5059 = vmatprep.subr.bf16.mxu1 %v6689_v52  ;;  %5121 = vmatpush1.bf16.msra.mxu0 %v6577_v21 }
 0x4a6   :  { %5123 = vmatprep.subr.bf16.mxu0 %v6580_v22  ;;  %1381 = vmatprep.mubr.f32.mxu0 %v6371_v0 }
 0x4a8   :  { %5061 = vmatpush1.bf16.msra.mxu1 %v6694_v59 }
 0x4a9   :  { %5063 = vmatprep.subr.bf16.mxu1 %v6698_v60  ;;  %5125 = vmatpush1.bf16.msra.mxu0 %v6585_v28 }
 0x4aa   :  { %5127 = vmatprep.subr.bf16.mxu0 %v6588_v29 }
 0x4ac   :  { %5065 = vmatpush1.bf16.msra.mxu1 %v6704_v2 }
 0x4ad   :  { %5067 = vmatprep.subr.bf16.mxu1 %v6707_v4  ;;  %5129 = vmatpush1.bf16.msra.mxu0 %v6593_v35 }
 0x4ae   :  { %5131 = vmatprep.subr.bf16.mxu0 %v6596_v36 }
 0x4b0   :  { %5069 = vmatpush1.bf16.msra.mxu1 %v6712_v9 }
 0x4b1   :  { %5087 = vmatprep.subr.bf16.mxu1 %v6645_v3  ;;  %5133 = vmatpush1.bf16.msra.mxu0 %v6601_v40 }
 0x4b2   :  { %v932_v26 = vpop.permute.xlu1 %931  ;;  %5167 = vmatprep.subr.bf16.mxu0 %v6575_v15 }
 0x4b3   :  { %4832 = vmatmul.mubr.msk.f32.vlgmr.msra.gmra.mrb[2].mxu1 %vm441_vm2, %v932_v26 }
 0x4b4   :  { %5089 = vmatpush1.bf16.msra.mxu1 %v6647_v7  ;;  %1204 = vmatprep.mubr.f32.mxu1 %v6371_v0 }
 0x4b5   :  { %5091 = vmatprep.subr.bf16.mxu1 %v6649_v8 }
 0x4b8   :  { %5093 = vmatpush1.bf16.msra.mxu1 %v6653_v13 }
 0x4b9   :  { %5095 = vmatprep.subr.bf16.mxu1 %v6656_v14 }
 0x4bc   :  { %5097 = vmatpush1.bf16.msra.mxu1 %v6659_v20 }
 0x4bd   :  { %5099 = vmatprep.subr.bf16.mxu1 %v6662_v23 }
 0x4c0   :  { %5101 = vmatpush1.bf16.msra.mxu1 %v6665_v30 }
 0x4c1   :  { %5103 = vmatprep.subr.bf16.mxu1 %v6668_v31 }
 0x576   :  { %v1102_v27 = vpop.f32.mrb[4].mxu0 }
 0x577   :  { %v5662_v32 = vadd.f32 %v1102_v27, %v6638_v51  ;;  %v1104_v34 = vpop.f32.mrb[5].mxu0 }
 0x578   :  { %v5663_v38 = vadd.f32 %v1104_v34, %v6641_v56  ;;  %v6822_v34 = vsel %vm422_vm1, %v6762_v16, 0.0 }
 0x579   :  { %v4836_v37 = vmul.f32 -1.442695, %v5662_v32 }
 0x57a   :  { %v4837_v6 = vmul.f32 -1.442695, %v5663_v38 }
 0x57b   :  { %5837 = vpow2.f32 %v4836_v37 }
 0x57c   :  { %5839 = vtanh.f32 %v5663_v38 }
 0x585   :  { %v5838_v41 = vpop.eup %5837 }
 0x586   :  { %v1115_v43 = vadd.f32 1.0, %v5838_v41  ;;  %v1001_v44 = vpop.f32.mrb[2].mxu1  ;;  %v5840_v49 = vpop.eup %5839 }
 0x587   :  { %v5688_v46 = vadd.f32 %v1001_v44, %v6736_v18  ;;  %v1003_v47 = vpop.f32.mrb[3].mxu1 }
 0x588   :  { %5841 = vrcp.f32 %v1115_v43  ;;  %v5689_v54 = vadd.f32 %v1003_v47, %v6742_v33 }
 0x589   :  { %v4833_v48 = vmul.f32 -1.442695, %v5688_v46 }
 0x58a   :  { %v4834_v11 = vmul.f32 -1.442695, %v5689_v54 }
 0x58b   :  { %5843 = vpow2.f32 %v4833_v48 }
 0x58c   :  { %5845 = vtanh.f32 %v5689_v54 }
 0x592   :  { %v5842_v53 = vpop.eup %5841 }
 0x593   :  { %v1123_v57 = vmul.f32 %v5842_v53, %v5840_v49  ;;  %v1122_v19 = vmul.f32 %v5842_v53, %v6813_v17 }
 0x595   :  { %v5844_v58 = vpop.eup %5843  ;;  %1125 = vrot.lane.b32.xlu0 %v1123_v57, %s6372_s9 }
 0x596   :  { %v1014_v61 = vadd.f32 1.0, %v5844_v58  ;;  %v5846_v63 = vpop.eup %5845 }
 0x598   :  { %5847 = vrcp.f32 %v1014_v61 }
 0x599   :  { %5849 = vpow2.f32 %v4837_v6 }
 0x59a   :  { %5851 = vpow2.f32 %v4834_v11 }
 0x5a2   :  { %v5848_v1 = vpop.eup %5847 }
 0x5a3   :  { %v1022_v5 = vmul.f32 %v5848_v1, %v5846_v63  ;;  %v5850_v10 = vpop.eup %5849  ;;  %v1021_v62 = vmul.f32 %v5848_v1, %v6822_v34 }
 0x5a4   :  { %v1116_v39 = vadd.f32 1.0, %v5850_v10  ;;  %v5852_v26 = vpop.eup %5851 }
 0x5a5   :  { %1024 = vrot.lane.b32.xlu1 %v1022_v5, %s6372_s9  ;;  %v1015_v37 = vadd.f32 1.0, %v5852_v26 }
 0x5a6   :  { %5853 = vrcp.f32 %v1116_v39 }
 0x5b0   :  { %v5854_v27 = vpop.eup %5853 }
 0x607   :  { %v1126_v24 = vpop.permute.xlu0 %1125 }
 0x608   :  { %v6816_v45 = vadd.f32 %v1126_v24, %v1122_v19 }
 0x60a   :  { %5855 = vtanh.f32 %v6816_v45 }
 0x60b   :  { %5857 = vrcp.f32 %v1015_v37 }
 0x614   :  { %v5856_v32 = vpop.eup %5855 }
 0x615   :  { %v1130_v55 = vmul.f32 %v5856_v32, %v5854_v27  ;;  %v5858_v16 = vpop.eup %5857 }
 0x617   :  { %v1025_v38 = vpop.permute.xlu1 %1024  ;;  %v6829_v41 = vsel %vm1032_vm4, %v1130_v55, %v6760_v12 }
 0x618   :  { %v6831_v43 = vadd.f32 %v1025_v38, %v1021_v62  ;;  %1136 = vrot.lane.b32.xlu0 %v6829_v41, %s6372_s9 }
 0x61a   :  { %5859 = vtanh.f32 %v6831_v43 }
 0x624   :  { %v5860_v44 = vpop.eup %5859 }
 0x625   :  { %v1029_v46 = vmul.f32 %v5860_v44, %v5858_v16  ;;  %v6883_v44 = vsel %vm1032_vm4, %v6816_v45, %v6813_v17 }
 0x627   :  { %v6839_v47 = vsel %vm751_vm3, %v1029_v46, %v6769_v25 }
 0x628   :  { %1212 = vrot.lane.b32.xlu1 %v6839_v47, %s6372_s9 }
 0x68a   :  { %v1137_v12 = vpop.permute.xlu0 %1136 }
 0x68b   :  { %4838 = vmatmul.mubr.msk.f32.vlgmr.msra.gmra.mrb[4].mxu1 %vm441_vm2, %v1137_v12  ;;  %4842 = vmatmul.mubr.msk.f32.vlgmr.msra.gmra.mrb[6].mxu0 %vm441_vm2, %v1137_v12 }
 0x68c   :  { %5105 = vmatpush1.bf16.msra.mxu1 %v6687_v50  ;;  %1280 = vmatprep.mubr.f32.mxu1 %v6371_v0 }
 0x68d   :  { %5107 = vmatprep.subr.bf16.mxu1 %v6689_v52  ;;  %5169 = vmatpush1.bf16.msra.mxu0 %v6577_v21 }
 0x68e   :  { %5171 = vmatprep.subr.bf16.mxu0 %v6580_v22  ;;  %1662 = vmatprep.mubr.f32.mxu0 %v6371_v0 }
 0x690   :  { %5109 = vmatpush1.bf16.msra.mxu1 %v6694_v59 }
 0x691   :  { %5111 = vmatprep.subr.bf16.mxu1 %v6698_v60  ;;  %5173 = vmatpush1.bf16.msra.mxu0 %v6585_v28 }
 0x692   :  { %5175 = vmatprep.subr.bf16.mxu0 %v6588_v29 }
 0x694   :  { %5113 = vmatpush1.bf16.msra.mxu1 %v6704_v2 }
 0x695   :  { %5115 = vmatprep.subr.bf16.mxu1 %v6707_v4  ;;  %5177 = vmatpush1.bf16.msra.mxu0 %v6593_v35 }
 0x696   :  { %5179 = vmatprep.subr.bf16.mxu0 %v6596_v36 }
 0x698   :  { %5117 = vmatpush1.bf16.msra.mxu1 %v6712_v9 }
 0x699   :  { %5135 = vmatprep.subr.bf16.mxu1 %v6645_v3  ;;  %5181 = vmatpush1.bf16.msra.mxu0 %v6601_v40 }
 0x69a   :  { %v1213_v25 = vpop.permute.xlu1 %1212  ;;  %5183 = vmatprep.subr.bf16.mxu0 %v6645_v3 }
 0x69b   :  { %4839 = vmatmul.mubr.msk.f32.vlgmr.msra.gmra.mrb[4].mxu1 %vm441_vm2, %v1213_v25 }
 0x69c   :  { %5137 = vmatpush1.bf16.msra.mxu1 %v6647_v7  ;;  %1485 = vmatprep.mubr.f32.mxu1 %v6371_v0 }
 0x69d   :  { %5139 = vmatprep.subr.bf16.mxu1 %v6649_v8 }
 0x6a0   :  { %5141 = vmatpush1.bf16.msra.mxu1 %v6653_v13 }
 0x6a1   :  { %5143 = vmatprep.subr.bf16.mxu1 %v6656_v14 }
 0x6a4   :  { %5145 = vmatpush1.bf16.msra.mxu1 %v6659_v20 }
 0x6a5   :  { %5147 = vmatprep.subr.bf16.mxu1 %v6662_v23 }
 0x6a8   :  { %5149 = vmatpush1.bf16.msra.mxu1 %v6665_v30 }
 0x6a9   :  { %5151 = vmatprep.subr.bf16.mxu1 %v6668_v31 }
 0x75e   :  { %v1383_v48 = vpop.f32.mrb[6].mxu0 }
 0x75f   :  { %v5664_v49 = vadd.f32 %v1383_v48, %v6638_v51  ;;  %v1385_v53 = vpop.f32.mrb[7].mxu0 }
 0x760   :  { %v5665_v57 = vadd.f32 %v1385_v53, %v6641_v56 }
 0x761   :  { %v4843_v54 = vmul.f32 -1.442695, %v5664_v49 }
 0x762   :  { %v4844_v55 = vmul.f32 -1.442695, %v5665_v57 }
 0x763   :  { %5861 = vpow2.f32 %v4843_v54 }
 0x764   :  { %5863 = vtanh.f32 %v5665_v57  ;;  %v6893_v57 = vsel %vm751_vm3, %v6831_v43, %v6822_v34  ;;  %vm4602_vm3 = vcmask 64544  }
 0x76d   :  { %v5862_v58 = vpop.eup %5861 }
 0x76e   :  { %v1396_v61 = vadd.f32 1.0, %v5862_v58  ;;  %v1282_v63 = vpop.f32.mrb[4].mxu1  ;;  %v5864_v10 = vpop.eup %5863 }
 0x76f   :  { %v5690_v1 = vadd.f32 %v1282_v63, %v6736_v18  ;;  %v1284_v5 = vpop.f32.mrb[5].mxu1 }
 0x770   :  { %5865 = vrcp.f32 %v1396_v61  ;;  %v5691_v39 = vadd.f32 %v1284_v5, %v6742_v33 }
 0x771   :  { %v4840_v6 = vmul.f32 -1.442695, %v5690_v1 }
 0x772   :  { %v4841_v38 = vmul.f32 -1.442695, %v5691_v39 }
 0x773   :  { %5867 = vpow2.f32 %v4840_v6 }
 0x774   :  { %5869 = vtanh.f32 %v5691_v39 }
 0x77a   :  { %v5866_v11 = vpop.eup %5865 }
 0x77b   :  { %v1404_v19 = vmul.f32 %v5866_v11, %v5864_v10  ;;  %v1403_v46 = vmul.f32 %v5866_v11, %v6883_v44 }
 0x77d   :  { %v5868_v24 = vpop.eup %5867  ;;  %1406 = vrot.lane.b32.xlu0 %v1404_v19, %s6372_s9 }
 0x77e   :  { %v1295_v26 = vadd.f32 1.0, %v5868_v24  ;;  %v5870_v27 = vpop.eup %5869 }
 0x780   :  { %5871 = vrcp.f32 %v1295_v26 }
 0x781   :  { %5873 = vpow2.f32 %v4844_v55 }
 0x782   :  { %5875 = vpow2.f32 %v4841_v38 }
 0x78a   :  { %v5872_v32 = vpop.eup %5871 }
 0x78b   :  { %v1303_v37 = vmul.f32 %v5872_v32, %v5870_v27  ;;  %v5874_v62 = vpop.eup %5873  ;;  %v1302_v45 = vmul.f32 %v5872_v32, %v6893_v57 }
 0x78c   :  { %v1397_v16 = vadd.f32 1.0, %v5874_v62  ;;  %v5876_v48 = vpop.eup %5875 }
 0x78d   :  { %1305 = vrot.lane.b32.xlu1 %v1303_v37, %s6372_s9  ;;  %v1296_v54 = vadd.f32 1.0, %v5876_v48 }
 0x78e   :  { %5877 = vrcp.f32 %v1397_v16 }
 0x798   :  { %v5878_v49 = vpop.eup %5877 }
 0x7ef   :  { %v1407_v12 = vpop.permute.xlu0 %1406 }
 0x7f0   :  { %v6886_v25 = vadd.f32 %v1407_v12, %v1403_v46 }
 0x7f2   :  { %5879 = vtanh.f32 %v6886_v25 }
 0x7f3   :  { %5881 = vrcp.f32 %v1296_v54 }
 0x7fc   :  { %v5880_v53 = vpop.eup %5879 }
 0x7fd   :  { %v1411_v17 = vmul.f32 %v5880_v53, %v5878_v49  ;;  %v5882_v34 = vpop.eup %5881 }
 0x7ff   :  { %v1306_v58 = vpop.permute.xlu1 %1305  ;;  %v6900_v61 = vsel %vm1313_vm5, %v1411_v17, %v6829_v41 }
 0x800   :  { %v6902_v63 = vadd.f32 %v1306_v58, %v1302_v45  ;;  %1417 = vrot.lane.b32.xlu0 %v6900_v61, %s6372_s9 }
 0x802   :  { %5883 = vtanh.f32 %v6902_v63 }
 0x80c   :  { %v5884_v43 = vpop.eup %5883 }
 0x80d   :  { %v1310_v1 = vmul.f32 %v5884_v43, %v5882_v34  ;;  %v6954_v43 = vsel %vm1313_vm5, %v6886_v25, %v6883_v44 }
 0x80f   :  { %v6910_v5 = vsel %vm1032_vm4, %v1310_v1, %v6839_v47 }
 0x810   :  { %1493 = vrot.lane.b32.xlu1 %v6910_v5, %s6372_s9 }
 0x872   :  { %v1418_v41 = vpop.permute.xlu0 %1417 }
 0x873   :  { %4845 = vmatmul.mubr.msk.f32.vlgmr.msra.gmra.mrb[6].mxu1 %vm441_vm2, %v1418_v41  ;;  %4849 = vmatmul.mubr.msk.f32.vlgmr.msra.gmra.mrb[8].mxu0 %vm441_vm2, %v1418_v41 }
 0x874   :  { %5153 = vmatpush1.bf16.msra.mxu1 %v6687_v50  ;;  %1561 = vmatprep.mubr.f32.mxu1 %v6371_v0 }
 0x875   :  { %5155 = vmatprep.subr.bf16.mxu1 %v6689_v52  ;;  %5185 = vmatpush1.bf16.msra.mxu0 %v6647_v7 }
 0x876   :  { %5187 = vmatprep.subr.bf16.mxu0 %v6649_v8  ;;  %1766 = vmatprep.mubr.f32.mxu0 %v6371_v0 }
 0x878   :  { %5157 = vmatpush1.bf16.msra.mxu1 %v6694_v59 }
 0x879   :  { %5159 = vmatprep.subr.bf16.mxu1 %v6698_v60  ;;  %5189 = vmatpush1.bf16.msra.mxu0 %v6653_v13 }
 0x87a   :  { %5191 = vmatprep.subr.bf16.mxu0 %v6656_v14 }
 0x87c   :  { %5161 = vmatpush1.bf16.msra.mxu1 %v6704_v2 }
 0x87d   :  { %5163 = vmatprep.subr.bf16.mxu1 %v6707_v4  ;;  %5193 = vmatpush1.bf16.msra.mxu0 %v6659_v20 }
 0x87e   :  { %5195 = vmatprep.subr.bf16.mxu0 %v6662_v23 }
 0x880   :  { %5165 = vmatpush1.bf16.msra.mxu1 %v6712_v9 }
 0x881   :  { %5197 = vmatpush1.bf16.msra.mxu0 %v6665_v30  ;;  %5231 = vmatprep.subr.bf16.mxu1 %v6645_v3 }
 0x882   :  { %v1494_v47 = vpop.permute.xlu1 %1493  ;;  %5199 = vmatprep.subr.bf16.mxu0 %v6668_v31 }
 0x883   :  { %4846 = vmatmul.mubr.msk.f32.vlgmr.msra.gmra.mrb[6].mxu1 %vm441_vm2, %v1494_v47 }
 0x884   :  { %5233 = vmatpush1.bf16.msra.mxu1 %v6647_v7  ;;  %2047 = vmatprep.mubr.f32.mxu1 %v6371_v0 }
 0x885   :  { %5235 = vmatprep.subr.bf16.mxu1 %v6649_v8 }
 0x888   :  { %5237 = vmatpush1.bf16.msra.mxu1 %v6653_v13 }
 0x889   :  { %5239 = vmatprep.subr.bf16.mxu1 %v6656_v14 }
 0x88c   :  { %5241 = vmatpush1.bf16.msra.mxu1 %v6659_v20 }
 0x88d   :  { %5243 = vmatprep.subr.bf16.mxu1 %v6662_v23 }
 0x890   :  { %5245 = vmatpush1.bf16.msra.mxu1 %v6665_v30 }
 0x891   :  { %5247 = vmatprep.subr.bf16.mxu1 %v6668_v31 }
 0x946   :  { %v1664_v6 = vpop.f32.mrb[8].mxu0 }
 0x947   :  { %v5666_v10 = vadd.f32 %v1664_v6, %v6638_v51  ;;  %v1666_v11 = vpop.f32.mrb[9].mxu0 }
 0x948   :  { %v5667_v19 = vadd.f32 %v1666_v11, %v6641_v56 }
 0x949   :  { %v4850_v39 = vmul.f32 -1.442695, %v5666_v10 }
 0x94a   :  { %v4851_v17 = vmul.f32 -1.442695, %v5667_v19 }
 0x94b   :  { %5885 = vpow2.f32 %v4850_v39 }
 0x94c   :  { %5887 = vtanh.f32 %v5667_v19  ;;  %v6964_v19 = vsel %vm1032_vm4, %v6902_v63, %v6893_v57  ;;  %vm4598_vm4 = vcmask 31744  }
 0x955   :  { %v5886_v24 = vpop.eup %5885 }
 0x956   :  { %v1677_v26 = vadd.f32 1.0, %v5886_v24  ;;  %v1563_v27 = vpop.f32.mrb[6].mxu1  ;;  %v5888_v62 = vpop.eup %5887 }
 0x957   :  { %v5692_v32 = vadd.f32 %v1563_v27, %v6736_v18  ;;  %v1565_v37 = vpop.f32.mrb[7].mxu1 }
 0x958   :  { %5889 = vrcp.f32 %v1677_v26  ;;  %v5693_v16 = vadd.f32 %v1565_v37, %v6742_v33 }
 0x959   :  { %v4847_v55 = vmul.f32 -1.442695, %v5692_v32 }
 0x95a   :  { %v4848_v58 = vmul.f32 -1.442695, %v5693_v16 }
 0x95b   :  { %5891 = vpow2.f32 %v4847_v55 }
 0x95c   :  { %5893 = vtanh.f32 %v5693_v16 }
 0x962   :  { %v5890_v38 = vpop.eup %5889 }
 0x963   :  { %v1685_v46 = vmul.f32 %v5890_v38, %v5888_v62  ;;  %v1684_v1 = vmul.f32 %v5890_v38, %v6954_v43 }
 0x965   :  { %v5892_v12 = vpop.eup %5891  ;;  %1687 = vrot.lane.b32.xlu0 %v1685_v46, %s6372_s9 }
 0x966   :  { %v1576_v48 = vadd.f32 1.0, %v5892_v12  ;;  %v5894_v49 = vpop.eup %5893 }
 0x968   :  { %5895 = vrcp.f32 %v1576_v48 }
 0x969   :  { %5897 = vpow2.f32 %v4851_v17 }
 0x96a   :  { %5899 = vpow2.f32 %v4848_v58 }
 0x972   :  { %v5896_v53 = vpop.eup %5895 }
 0x973   :  { %v1584_v54 = vmul.f32 %v5896_v53, %v5894_v49  ;;  %v5898_v45 = vpop.eup %5897  ;;  %v1583_v25 = vmul.f32 %v5896_v53, %v6964_v19 }
 0x974   :  { %v1678_v34 = vadd.f32 1.0, %v5898_v45  ;;  %v5900_v6 = vpop.eup %5899 }
 0x975   :  { %1586 = vrot.lane.b32.xlu1 %v1584_v54, %s6372_s9  ;;  %v1577_v39 = vadd.f32 1.0, %v5900_v6 }
 0x976   :  { %5901 = vrcp.f32 %v1678_v34 }
 0x980   :  { %v5902_v10 = vpop.eup %5901 }
 0x9d7   :  { %v1688_v41 = vpop.permute.xlu0 %1687 }
 0x9d8   :  { %v6957_v47 = vadd.f32 %v1688_v41, %v1684_v1 }
 0x9da   :  { %5903 = vtanh.f32 %v6957_v47 }
 0x9db   :  { %5905 = vrcp.f32 %v1577_v39 }
 0x9e4   :  { %v5904_v11 = vpop.eup %5903 }
 0x9e5   :  { %v1692_v44 = vmul.f32 %v5904_v11, %v5902_v10  ;;  %v5906_v57 = vpop.eup %5905 }
 0x9e7   :  { %v1587_v24 = vpop.permute.xlu1 %1586  ;;  %v6971_v26 = vsel %vm1594_vm6, %v1692_v44, %v6900_v61 }
 0x9e8   :  { %v6973_v27 = vadd.f32 %v1587_v24, %v1583_v25  ;;  %1698 = vrot.lane.b32.xlu0 %v6971_v26, %s6372_s9 }
 0x9ea   :  { %5907 = vtanh.f32 %v6973_v27 }
 0x9f4   :  { %v5908_v63 = vpop.eup %5907 }
 0x9f5   :  { %v1591_v32 = vmul.f32 %v5908_v63, %v5906_v57 }
 0x9f7   :  { %v6981_v37 = vsel %vm1313_vm5, %v1591_v32, %v6910_v5 }
 0x9f8   :  { %1774 = vrot.lane.b32.xlu1 %v6981_v37, %s6372_s9 }
 0xa5a   :  { %v1699_v61 = vpop.permute.xlu0 %1698 }
 0xa5b   :  { %4852 = vmatmul.mubr.msk.f32.vlgmr.msra.gmra.mrb[28].mxu0 %vm441_vm2, %v1699_v61 }
 0xa5c   :  { %5201 = vmatpush1.bf16.msra.mxu0 %v6687_v50  ;;  %1842 = vmatprep.mubr.f32.mxu0 %v6371_v0 }
 0xa5d   :  { %5203 = vmatprep.subr.bf16.mxu0 %v6689_v52 }
 0xa60   :  { %5205 = vmatpush1.bf16.msra.mxu0 %v6694_v59 }
 0xa61   :  { %5207 = vmatprep.subr.bf16.mxu0 %v6698_v60 }
 0xa64   :  { %5209 = vmatpush1.bf16.msra.mxu0 %v6704_v2 }
 0xa65   :  { %5211 = vmatprep.subr.bf16.mxu0 %v6707_v4 }
 0xa68   :  { %5213 = vmatpush1.bf16.msra.mxu0 %v6712_v9 }
 0xa69   :  { %5215 = vmatprep.subr.bf16.mxu0 %v6575_v15 }
 0xa6a   :  { %v1775_v5 = vpop.permute.xlu1 %1774 }
 0xa6b   :  { %4853 = vmatmul.mubr.msk.f32.vlgmr.msra.gmra.mrb[28].mxu0 %vm441_vm2, %v1775_v5 }
 0xa6c   :  { %5217 = vmatpush1.bf16.msra.mxu0 %v6577_v21  ;;  %1943 = vmatprep.mubr.f32.mxu0 %v6371_v0 }
 0xa6d   :  { %5219 = vmatprep.subr.bf16.mxu0 %v6580_v22 }
 0xa70   :  { %5221 = vmatpush1.bf16.msra.mxu0 %v6585_v28 }
 0xa71   :  { %5223 = vmatprep.subr.bf16.mxu0 %v6588_v29 }
 0xa74   :  { %5225 = vmatpush1.bf16.msra.mxu0 %v6593_v35 }
 0xa75   :  { %5227 = vmatprep.subr.bf16.mxu0 %v6596_v36 }
 0xa78   :  { %5229 = vmatpush1.bf16.msra.mxu0 %v6601_v40 }
 0xa79   :  { %5263 = vmatprep.subr.bf16.mxu0 %v6575_v15 }
 0xa7b   :  { %4856 = vmatmul.mubr.msk.f32.vlgmr.msra.gmra.mrb[10].mxu0 %vm441_vm2, %v1699_v61 }
 0xa7c   :  { %5265 = vmatpush1.bf16.msra.mxu0 %v6577_v21  ;;  %2224 = vmatprep.mubr.f32.mxu0 %v6371_v0 }
 0xa7d   :  { %5267 = vmatprep.subr.bf16.mxu0 %v6580_v22 }
 0xa80   :  { %5269 = vmatpush1.bf16.msra.mxu0 %v6585_v28 }
 0xa81   :  { %5271 = vmatprep.subr.bf16.mxu0 %v6588_v29 }
 0xa84   :  { %5273 = vmatpush1.bf16.msra.mxu0 %v6593_v35 }
 0xa85   :  { %5275 = vmatprep.subr.bf16.mxu0 %v6596_v36 }
 0xa88   :  { %5277 = vmatpush1.bf16.msra.mxu0 %v6601_v40 }
 0xa89   :  { %5311 = vmatprep.subr.bf16.mxu0 %v6575_v15 }
 0xb3e   :  { %v1844_v55 = vpop.f32.mrb[28].mxu0 }
 0xb3f   :  { %v5694_v62 = vadd.f32 %v1844_v55, %v6736_v18  ;;  %v1846_v38 = vpop.f32.mrb[29].mxu0 }
 0xb40   :  { %v5695_v46 = vadd.f32 %v1846_v38, %v6742_v33  ;;  %v7035_v38 = vsel %vm1594_vm6, %v6957_v47, %v6954_v43 }
 0xb41   :  { %v4854_v16 = vmul.f32 -1.442695, %v5694_v62 }
 0xb43   :  { %5909 = vpow2.f32 %v4854_v16 }
 0xb44   :  { %5911 = vtanh.f32 %v5695_v46 }
 0xb4d   :  { %v5910_v12 = vpop.eup %5909 }
 0xb4e   :  { %v1857_v48 = vadd.f32 1.0, %v5910_v12  ;;  %v1945_v49 = vpop.f32.mrb[10].mxu0  ;;  %v5912_v45 = vpop.eup %5911 }
 0xb4f   :  { %v5668_v53 = vadd.f32 %v1945_v49, %v6638_v51  ;;  %v1947_v54 = vpop.f32.mrb[11].mxu0  ;;  %v4855_v51 = vmul.f32 -1.442695, %v5695_v46 }
 0xb50   :  { %5913 = vrcp.f32 %v1857_v48  ;;  %v5669_v34 = vadd.f32 %v1947_v54, %v6641_v56  ;;  %v7025_v56 = vsel %vm1313_vm5, %v6973_v27, %v6964_v19  ;;  %v7086_v54 = vld [vmem:[#allocation11] sm:$0xff] }
 0xb51   :  { %v4857_v17 = vmul.f32 -1.442695, %v5668_v53 }
 0xb52   :  { %v4858_v25 = vmul.f32 -1.442695, %v5669_v34 }
 0xb53   :  { %5915 = vpow2.f32 %v4857_v17 }
 0xb54   :  { %5917 = vtanh.f32 %v5669_v34  ;;  %v7089_v34 = vld [vmem:[#allocation11 + $0x8] sm:$0xff] }
 0xb5a   :  { %v5914_v58 = vpop.eup %5913 }
 0xb5b   :  { %v1865_v1 = vmul.f32 %v5914_v58, %v5912_v45  ;;  %v1864_v57 = vmul.f32 %v5914_v58, %v7025_v56 }
 0xb5d   :  { %v5916_v41 = vpop.eup %5915  ;;  %1867 = vrot.lane.b32.xlu1 %v1865_v1, %s6372_s9 }
 0xb5e   :  { %v1958_v6 = vadd.f32 1.0, %v5916_v41  ;;  %v5918_v10 = vpop.eup %5917 }
 0xb60   :  { %5919 = vrcp.f32 %v1958_v6 }
 0xb61   :  { %5921 = vpow2.f32 %v4855_v51 }
 0xb62   :  { %5923 = vpow2.f32 %v4858_v25 }
 0xb6a   :  { %v5920_v11 = vpop.eup %5919 }
 0xb6b   :  { %v1966_v39 = vmul.f32 %v5920_v11, %v5918_v10  ;;  %v5922_v44 = vpop.eup %5921  ;;  %v1965_v27 = vmul.f32 %v5920_v11, %v7035_v38 }
 0xb6c   :  { %v1858_v24 = vadd.f32 1.0, %v5922_v44  ;;  %v5924_v61 = vpop.eup %5923 }
 0xb6d   :  { %1968 = vrot.lane.b32.xlu0 %v1966_v39, %s6372_s9  ;;  %v1959_v62 = vadd.f32 1.0, %v5924_v61 }
 0xb6e   :  { %5925 = vrcp.f32 %v1858_v24 }
 0xb78   :  { %v5926_v5 = vpop.eup %5925 }
 0xbcf   :  { %v1868_v63 = vpop.permute.xlu1 %1867 }
 0xbd0   :  { %v7028_v32 = vadd.f32 %v1868_v63, %v1864_v57 }
 0xbd2   :  { %5927 = vtanh.f32 %v7028_v32 }
 0xbd3   :  { %5929 = vrcp.f32 %v1959_v62 }
 0xbdc   :  { %v5928_v55 = vpop.eup %5927 }
 0xbdd   :  { %v1872_v19 = vmul.f32 %v5928_v55, %v5926_v5  ;;  %v5930_v48 = vpop.eup %5929 }
 0xbdf   :  { %v1969_v16 = vpop.permute.xlu0 %1968  ;;  %v7041_v46 = vsel %vm1594_vm6, %v1872_v19, %v6981_v37 }
 0xbe0   :  { %v7043_v12 = vadd.f32 %v1969_v16, %v1965_v27  ;;  %2055 = vrot.lane.b32.xlu1 %v7041_v46, %s6372_s9 }
 0xbe2   :  { %5931 = vtanh.f32 %v7043_v12 }
 0xbec   :  { %v5932_v43 = vpop.eup %5931 }
 0xbed   :  { %v1973_v47 = vmul.f32 %v5932_v43, %v5930_v48 }
 0xbef   :  { %v7052_v49 = vsel %vm1875_vm7, %v1973_v47, %v6971_v26 }
 0xbf0   :  { %1979 = vrot.lane.b32.xlu0 %v7052_v49, %s6372_s9 }
 0xc52   :  { %v2056_v26 = vpop.permute.xlu1 %2055 }
 0xc62   :  { %v1980_v37 = vpop.permute.xlu0 %1979 }
 0xc63   :  { %4859 = vmatmul.mubr.msk.f32.vlgmr.msra.gmra.mrb[8].mxu1 %vm441_vm2, %v1980_v37  ;;  %4863 = vmatmul.mubr.msk.f32.vlgmr.msra.gmra.mrb[12].mxu0 %vm441_vm2, %v1980_v37 }
 0xc64   :  { %5249 = vmatpush1.bf16.msra.mxu1 %v6687_v50  ;;  %2123 = vmatprep.mubr.f32.mxu1 %v6371_v0 }
 0xc65   :  { %5251 = vmatprep.subr.bf16.mxu1 %v6689_v52  ;;  %5313 = vmatpush1.bf16.msra.mxu0 %v6577_v21 }
 0xc66   :  { %5315 = vmatprep.subr.bf16.mxu0 %v6580_v22  ;;  %2505 = vmatprep.mubr.f32.mxu0 %v6371_v0 }
 0xc68   :  { %5253 = vmatpush1.bf16.msra.mxu1 %v6694_v59 }
 0xc69   :  { %5255 = vmatprep.subr.bf16.mxu1 %v6698_v60  ;;  %5317 = vmatpush1.bf16.msra.mxu0 %v6585_v28 }
 0xc6a   :  { %5319 = vmatprep.subr.bf16.mxu0 %v6588_v29 }
 0xc6c   :  { %5257 = vmatpush1.bf16.msra.mxu1 %v6704_v2 }
 0xc6d   :  { %5259 = vmatprep.subr.bf16.mxu1 %v6707_v4  ;;  %5321 = vmatpush1.bf16.msra.mxu0 %v6593_v35 }
 0xc6e   :  { %5323 = vmatprep.subr.bf16.mxu0 %v6596_v36 }
 0xc70   :  { %5261 = vmatpush1.bf16.msra.mxu1 %v6712_v9 }
 0xc71   :  { %5279 = vmatprep.subr.bf16.mxu1 %v6645_v3  ;;  %5325 = vmatpush1.bf16.msra.mxu0 %v6601_v40 }
 0xc72   :  { %5359 = vmatprep.subr.bf16.mxu0 %v6575_v15 }
 0xc73   :  { %4860 = vmatmul.mubr.msk.f32.vlgmr.msra.gmra.mrb[8].mxu1 %vm441_vm2, %v2056_v26 }
 0xc74   :  { %5281 = vmatpush1.bf16.msra.mxu1 %v6647_v7  ;;  %2328 = vmatprep.mubr.f32.mxu1 %v6371_v0 }
 0xc75   :  { %5283 = vmatprep.subr.bf16.mxu1 %v6649_v8 }
 0xc78   :  { %5285 = vmatpush1.bf16.msra.mxu1 %v6653_v13 }
 0xc79   :  { %5287 = vmatprep.subr.bf16.mxu1 %v6656_v14 }
 0xc7c   :  { %5289 = vmatpush1.bf16.msra.mxu1 %v6659_v20 }
 0xc7d   :  { %5291 = vmatprep.subr.bf16.mxu1 %v6662_v23 }
 0xc80   :  { %5293 = vmatpush1.bf16.msra.mxu1 %v6665_v30 }
 0xc81   :  { %5295 = vmatprep.subr.bf16.mxu1 %v6668_v31 }
 0xd36   :  { %v2226_v53 = vpop.f32.mrb[12].mxu0 }
 0xd37   :  { %v5670_v17 = vadd.f32 %v7086_v54, %v2226_v53  ;;  %v2228_v45 = vpop.f32.mrb[13].mxu0 }
 0xd38   :  { %v5671_v1 = vadd.f32 %v7089_v34, %v2228_v45  ;;  %v7110_v45 = vsel %vm1594_vm6, %v7028_v32, %v7025_v56 }
 0xd39   :  { %v4864_v58 = vmul.f32 -1.442695, %v5670_v17 }
 0xd3b   :  { %5933 = vpow2.f32 %v4864_v58 }
 0xd3c   :  { %5935 = vtanh.f32 %v5671_v1 }
 0xd45   :  { %v5934_v41 = vpop.eup %5933 }
 0xd46   :  { %v2239_v6 = vadd.f32 1.0, %v5934_v41  ;;  %v2125_v10 = vpop.f32.mrb[8].mxu1  ;;  %v5936_v44 = vpop.eup %5935 }
 0xd47   :  { %v5696_v11 = vadd.f32 %v2125_v10, %v6736_v18  ;;  %v2127_v39 = vpop.f32.mrb[9].mxu1  ;;  %v4865_v18 = vmul.f32 -1.442695, %v5671_v1 }
 0xd48   :  { %5937 = vrcp.f32 %v2239_v6  ;;  %v5697_v24 = vadd.f32 %v2127_v39, %v6742_v33  ;;  %v7100_v33 = vsel %vm1875_vm7, %v7043_v12, %v7035_v38 }
 0xd49   :  { %v4861_v51 = vmul.f32 -1.442695, %v5696_v11 }
 0xd4a   :  { %v4862_v27 = vmul.f32 -1.442695, %v5697_v24 }
 0xd4b   :  { %5939 = vpow2.f32 %v4861_v51 }
 0xd4c   :  { %5941 = vtanh.f32 %v5697_v24 }
 0xd52   :  { %v5938_v25 = vpop.eup %5937 }
 0xd53   :  { %v2247_v57 = vmul.f32 %v5938_v25, %v5936_v44  ;;  %v2246_v48 = vmul.f32 %v5938_v25, %v7100_v33 }
 0xd55   :  { %v5940_v63 = vpop.eup %5939  ;;  %2249 = vrot.lane.b32.xlu0 %v2247_v57, %s6372_s9 }
 0xd56   :  { %v2138_v61 = vadd.f32 1.0, %v5940_v63  ;;  %v5942_v5 = vpop.eup %5941 }
 0xd58   :  { %5943 = vrcp.f32 %v2138_v61  ;;  %v7166_v61 = vld [vmem:[%s7715_s7] sm:$0xff] }
 0xd59   :  { %5945 = vpow2.f32 %v4865_v18 }
 0xd5a   :  { %5947 = vpow2.f32 %v4862_v27  ;;  %v7172_v27 = vld [vmem:[%s7715_s7 + $0x8] sm:$0xff] }
 0xd62   :  { %v5944_v55 = vpop.eup %5943 }
 0xd63   :  { %v2146_v62 = vmul.f32 %v5944_v55, %v5942_v5  ;;  %v5946_v19 = vpop.eup %5945  ;;  %v2145_v12 = vmul.f32 %v5944_v55, %v7110_v45 }
 0xd64   :  { %v2240_v16 = vadd.f32 1.0, %v5946_v19  ;;  %v5948_v37 = vpop.eup %5947 }
 0xd65   :  { %2148 = vrot.lane.b32.xlu1 %v2146_v62, %s6372_s9  ;;  %v2139_v17 = vadd.f32 1.0, %v5948_v37 }
 0xd66   :  { %5949 = vrcp.f32 %v2240_v16 }
 0xd70   :  { %v5950_v26 = vpop.eup %5949 }
 0xdc7   :  { %v2250_v43 = vpop.permute.xlu0 %2249 }
 0xdc8   :  { %v7103_v47 = vadd.f32 %v2250_v43, %v2246_v48 }
 0xdca   :  { %5951 = vtanh.f32 %v7103_v47 }
 0xdcb   :  { %5953 = vrcp.f32 %v2139_v17 }
 0xdd4   :  { %v5952_v53 = vpop.eup %5951 }
 0xdd5   :  { %v2254_v38 = vmul.f32 %v5952_v53, %v5950_v26  ;;  %v5954_v56 = vpop.eup %5953 }
 0xdd7   :  { %v2149_v58 = vpop.permute.xlu1 %2148  ;;  %v7117_v1 = vsel %vm2156_vm8, %v2254_v38, %v7052_v49 }
 0xdd8   :  { %v7119_v41 = vadd.f32 %v2149_v58, %v2145_v12  ;;  %2260 = vrot.lane.b32.xlu0 %v7117_v1, %s6372_s9 }
 0xdda   :  { %5955 = vtanh.f32 %v7119_v41 }
 0xde4   :  { %v5956_v32 = vpop.eup %5955 }
 0xde5   :  { %v2153_v6 = vmul.f32 %v5956_v32, %v5954_v56  ;;  %v7181_v32 = vsel %vm2156_vm8, %v7103_v47, %v7100_v33 }
 0xde7   :  { %v7127_v10 = vsel %vm1875_vm7, %v2153_v6, %v7041_v46 }
 0xde8   :  { %2336 = vrot.lane.b32.xlu1 %v7127_v10, %s6372_s9 }
 0xe4a   :  { %v2261_v49 = vpop.permute.xlu0 %2260 }
 0xe4b   :  { %4866 = vmatmul.mubr.msk.f32.vlgmr.msra.gmra.mrb[10].mxu1 %vm441_vm2, %v2261_v49  ;;  %4870 = vmatmul.mubr.msk.f32.vlgmr.msra.gmra.mrb[14].mxu0 %vm441_vm2, %v2261_v49 }
 0xe4c   :  { %5297 = vmatpush1.bf16.msra.mxu1 %v6687_v50  ;;  %2404 = vmatprep.mubr.f32.mxu1 %v6371_v0 }
 0xe4d   :  { %5299 = vmatprep.subr.bf16.mxu1 %v6689_v52  ;;  %5361 = vmatpush1.bf16.msra.mxu0 %v6577_v21 }
 0xe4e   :  { %5363 = vmatprep.subr.bf16.mxu0 %v6580_v22  ;;  %2786 = vmatprep.mubr.f32.mxu0 %v6371_v0 }
 0xe50   :  { %5301 = vmatpush1.bf16.msra.mxu1 %v6694_v59 }
 0xe51   :  { %5303 = vmatprep.subr.bf16.mxu1 %v6698_v60  ;;  %5365 = vmatpush1.bf16.msra.mxu0 %v6585_v28 }
 0xe52   :  { %5367 = vmatprep.subr.bf16.mxu0 %v6588_v29 }
 0xe54   :  { %5305 = vmatpush1.bf16.msra.mxu1 %v6704_v2 }
 0xe55   :  { %5307 = vmatprep.subr.bf16.mxu1 %v6707_v4  ;;  %5369 = vmatpush1.bf16.msra.mxu0 %v6593_v35 }
 0xe56   :  { %5371 = vmatprep.subr.bf16.mxu0 %v6596_v36 }
 0xe58   :  { %5309 = vmatpush1.bf16.msra.mxu1 %v6712_v9 }
 0xe59   :  { %5327 = vmatprep.subr.bf16.mxu1 %v6645_v3  ;;  %5373 = vmatpush1.bf16.msra.mxu0 %v6601_v40 }
 0xe5a   :  { %v2337_v46 = vpop.permute.xlu1 %2336  ;;  %5375 = vmatprep.subr.bf16.mxu0 %v6645_v3 }
 0xe5b   :  { %4867 = vmatmul.mubr.msk.f32.vlgmr.msra.gmra.mrb[10].mxu1 %vm441_vm2, %v2337_v46 }
 0xe5c   :  { %5329 = vmatpush1.bf16.msra.mxu1 %v6647_v7  ;;  %2609 = vmatprep.mubr.f32.mxu1 %v6371_v0 }
 0xe5d   :  { %5331 = vmatprep.subr.bf16.mxu1 %v6649_v8 }
 0xe60   :  { %5333 = vmatpush1.bf16.msra.mxu1 %v6653_v13 }
 0xe61   :  { %5335 = vmatprep.subr.bf16.mxu1 %v6656_v14 }
 0xe64   :  { %5337 = vmatpush1.bf16.msra.mxu1 %v6659_v20 }
 0xe65   :  { %5339 = vmatprep.subr.bf16.mxu1 %v6662_v23 }
 0xe68   :  { %5341 = vmatpush1.bf16.msra.mxu1 %v6665_v30 }
 0xe69   :  { %5343 = vmatprep.subr.bf16.mxu1 %v6668_v31 }
 0xf1e   :  { %v2507_v11 = vpop.f32.mrb[14].mxu0 }
 0xf1f   :  { %v5672_v39 = vadd.f32 %v7086_v54, %v2507_v11  ;;  %v2509_v51 = vpop.f32.mrb[15].mxu0 }
 0xf20   :  { %v5673_v25 = vadd.f32 %v7089_v34, %v2509_v51 }
 0xf21   :  { %v4871_v44 = vmul.f32 -1.442695, %v5672_v39 }
 0xf22   :  { %v4872_v38 = vmul.f32 -1.442695, %v5673_v25 }
 0xf23   :  { %5957 = vpow2.f32 %v4871_v44 }
 0xf24   :  { %5959 = vtanh.f32 %v5673_v25  ;;  %v7191_v25 = vsel %vm1875_vm7, %v7119_v41, %v7110_v45 }
 0xf2d   :  { %v5958_v24 = vpop.eup %5957 }
 0xf2e   :  { %v2520_v57 = vadd.f32 1.0, %v5958_v24  ;;  %v2406_v63 = vpop.f32.mrb[10].mxu1  ;;  %v5960_v18 = vpop.eup %5959 }
 0xf2f   :  { %v5698_v5 = vadd.f32 %v7166_v61, %v2406_v63  ;;  %v2408_v55 = vpop.f32.mrb[11].mxu1 }
 0xf30   :  { %5961 = vrcp.f32 %v2520_v57  ;;  %v5699_v16 = vadd.f32 %v7172_v27, %v2408_v55 }
 0xf31   :  { %v4868_v62 = vmul.f32 -1.442695, %v5698_v5 }
 0xf32   :  { %v4869_v58 = vmul.f32 -1.442695, %v5699_v16 }
 0xf33   :  { %5963 = vpow2.f32 %v4868_v62 }
 0xf34   :  { %5965 = vtanh.f32 %v5699_v16 }
 0xf3a   :  { %v5962_v19 = vpop.eup %5961 }
 0xf3b   :  { %v2528_v48 = vmul.f32 %v5962_v19, %v5960_v18  ;;  %v2527_v6 = vmul.f32 %v5962_v19, %v7181_v32 }
 0xf3d   :  { %v5964_v43 = vpop.eup %5963  ;;  %2530 = vrot.lane.b32.xlu0 %v2528_v48, %s6372_s9 }
 0xf3e   :  { %v2419_v37 = vadd.f32 1.0, %v5964_v43  ;;  %v5966_v26 = vpop.eup %5965 }
 0xf40   :  { %5967 = vrcp.f32 %v2419_v37 }
 0xf41   :  { %5969 = vpow2.f32 %v4872_v38 }
 0xf42   :  { %5971 = vpow2.f32 %v4869_v58 }
 0xf4a   :  { %v5968_v53 = vpop.eup %5967 }
 0xf4b   :  { %v2427_v17 = vmul.f32 %v5968_v53, %v5966_v26  ;;  %v5970_v12 = vpop.eup %5969  ;;  %v2426_v47 = vmul.f32 %v5968_v53, %v7191_v25 }
 0xf4c   :  { %v2521_v56 = vadd.f32 1.0, %v5970_v12  ;;  %v5972_v11 = vpop.eup %5971 }
 0xf4d   :  { %2429 = vrot.lane.b32.xlu1 %v2427_v17, %s6372_s9  ;;  %v2420_v44 = vadd.f32 1.0, %v5972_v11 }
 0xf4e   :  { %5973 = vrcp.f32 %v2521_v56 }
 0xf58   :  { %v5974_v39 = vpop.eup %5973 }
 0xfaf   :  { %v2531_v49 = vpop.permute.xlu0 %2530 }
 0xfb0   :  { %v7184_v46 = vadd.f32 %v2531_v49, %v2527_v6 }
 0xfb2   :  { %5975 = vtanh.f32 %v7184_v46 }
 0xfb3   :  { %5977 = vrcp.f32 %v2420_v44 }
 0xfbc   :  { %v5976_v51 = vpop.eup %5975 }
 0xfbd   :  { %v2535_v33 = vmul.f32 %v5976_v51, %v5974_v39  ;;  %v5978_v45 = vpop.eup %5977 }
 0xfbf   :  { %v2430_v24 = vpop.permute.xlu1 %2429  ;;  %v7198_v57 = vsel %vm2437_vm9, %v2535_v33, %v7117_v1 }
 0xfc0   :  { %v7200_v63 = vadd.f32 %v2430_v24, %v2426_v47  ;;  %2541 = vrot.lane.b32.xlu0 %v7198_v57, %s6372_s9 }
 0xfc2   :  { %5979 = vtanh.f32 %v7200_v63 }
 0xfcc   :  { %v5980_v41 = vpop.eup %5979 }
 0xfcd   :  { %v2434_v5 = vmul.f32 %v5980_v41, %v5978_v45  ;;  %v7252_v41 = vsel %vm2437_vm9, %v7184_v46, %v7181_v32 }
 0xfcf   :  { %v7208_v55 = vsel %vm2156_vm8, %v2434_v5, %v7127_v10 }
 0xfd0   :  { %2617 = vrot.lane.b32.xlu1 %v7208_v55, %s6372_s9 }
0x1032   :  { %v2542_v1 = vpop.permute.xlu0 %2541 }
0x1033   :  { %4873 = vmatmul.mubr.msk.f32.vlgmr.msra.gmra.mrb[12].mxu1 %vm441_vm2, %v2542_v1  ;;  %4877 = vmatmul.mubr.msk.f32.vlgmr.msra.gmra.mrb[16].mxu0 %vm441_vm2, %v2542_v1 }
0x1034   :  { %5345 = vmatpush1.bf16.msra.mxu1 %v6687_v50  ;;  %2685 = vmatprep.mubr.f32.mxu1 %v6371_v0 }
0x1035   :  { %5347 = vmatprep.subr.bf16.mxu1 %v6689_v52  ;;  %5377 = vmatpush1.bf16.msra.mxu0 %v6647_v7 }
0x1036   :  { %5379 = vmatprep.subr.bf16.mxu0 %v6649_v8  ;;  %2890 = vmatprep.mubr.f32.mxu0 %v6371_v0 }
0x1038   :  { %5349 = vmatpush1.bf16.msra.mxu1 %v6694_v59 }
0x1039   :  { %5351 = vmatprep.subr.bf16.mxu1 %v6698_v60  ;;  %5381 = vmatpush1.bf16.msra.mxu0 %v6653_v13 }
0x103a   :  { %5383 = vmatprep.subr.bf16.mxu0 %v6656_v14 }
0x103c   :  { %5353 = vmatpush1.bf16.msra.mxu1 %v6704_v2 }
0x103d   :  { %5355 = vmatprep.subr.bf16.mxu1 %v6707_v4  ;;  %5385 = vmatpush1.bf16.msra.mxu0 %v6659_v20 }
0x103e   :  { %5387 = vmatprep.subr.bf16.mxu0 %v6662_v23 }
0x1040   :  { %5357 = vmatpush1.bf16.msra.mxu1 %v6712_v9 }
0x1041   :  { %5389 = vmatpush1.bf16.msra.mxu0 %v6665_v30  ;;  %5423 = vmatprep.subr.bf16.mxu1 %v6645_v3 }
0x1042   :  { %v2618_v10 = vpop.permute.xlu1 %2617  ;;  %5391 = vmatprep.subr.bf16.mxu0 %v6668_v31 }
0x1043   :  { %4874 = vmatmul.mubr.msk.f32.vlgmr.msra.gmra.mrb[12].mxu1 %vm441_vm2, %v2618_v10 }
0x1044   :  { %5425 = vmatpush1.bf16.msra.mxu1 %v6647_v7  ;;  %3171 = vmatprep.mubr.f32.mxu1 %v6371_v0 }
0x1045   :  { %5427 = vmatprep.subr.bf16.mxu1 %v6649_v8 }
0x1048   :  { %5429 = vmatpush1.bf16.msra.mxu1 %v6653_v13 }
0x1049   :  { %5431 = vmatprep.subr.bf16.mxu1 %v6656_v14 }
0x104c   :  { %5433 = vmatpush1.bf16.msra.mxu1 %v6659_v20 }
0x104d   :  { %5435 = vmatprep.subr.bf16.mxu1 %v6662_v23 }
0x1050   :  { %5437 = vmatpush1.bf16.msra.mxu1 %v6665_v30 }
0x1051   :  { %5439 = vmatprep.subr.bf16.mxu1 %v6668_v31 }
0x1106   :  { %v2788_v62 = vpop.f32.mrb[16].mxu0 }
0x1107   :  { %v5674_v18 = vadd.f32 %v7086_v54, %v2788_v62  ;;  %v2790_v19 = vpop.f32.mrb[17].mxu0 }
0x1108   :  { %v5675_v48 = vadd.f32 %v7089_v34, %v2790_v19 }
0x1109   :  { %v4878_v16 = vmul.f32 -1.442695, %v5674_v18 }
0x110a   :  { %v4879_v33 = vmul.f32 -1.442695, %v5675_v48 }
0x110b   :  { %5981 = vpow2.f32 %v4878_v16 }
0x110c   :  { %5983 = vtanh.f32 %v5675_v48  ;;  %v7262_v48 = vsel %vm2156_vm8, %v7200_v63, %v7191_v25 }
0x1115   :  { %v5982_v43 = vpop.eup %5981 }
0x1116   :  { %v2801_v37 = vadd.f32 1.0, %v5982_v43  ;;  %v2687_v26 = vpop.f32.mrb[12].mxu1  ;;  %v5984_v12 = vpop.eup %5983 }
0x1117   :  { %v5700_v53 = vadd.f32 %v7166_v61, %v2687_v26  ;;  %v2689_v17 = vpop.f32.mrb[13].mxu1 }
0x1118   :  { %5985 = vrcp.f32 %v2801_v37  ;;  %v5701_v56 = vadd.f32 %v7172_v27, %v2689_v17 }
0x1119   :  { %v4875_v38 = vmul.f32 -1.442695, %v5700_v53 }
0x111a   :  { %v4876_v24 = vmul.f32 -1.442695, %v5701_v56 }
0x111b   :  { %5987 = vpow2.f32 %v4875_v38 }
0x111c   :  { %5989 = vtanh.f32 %v5701_v56 }
0x1122   :  { %v5986_v58 = vpop.eup %5985 }
0x1123   :  { %v2809_v6 = vmul.f32 %v5986_v58, %v5984_v12  ;;  %v2808_v5 = vmul.f32 %v5986_v58, %v7252_v41 }
0x1125   :  { %v5988_v49 = vpop.eup %5987  ;;  %2811 = vrot.lane.b32.xlu0 %v2809_v6, %s6372_s9 }
0x1126   :  { %v2700_v11 = vadd.f32 1.0, %v5988_v49  ;;  %v5990_v39 = vpop.eup %5989 }
0x1128   :  { %5991 = vrcp.f32 %v2700_v11 }
0x1129   :  { %5993 = vpow2.f32 %v4879_v33 }
0x112a   :  { %5995 = vpow2.f32 %v4876_v24 }
0x1132   :  { %v5992_v51 = vpop.eup %5991 }
0x1133   :  { %v2708_v44 = vmul.f32 %v5992_v51, %v5990_v39  ;;  %v5994_v47 = vpop.eup %5993  ;;  %v2707_v46 = vmul.f32 %v5992_v51, %v7262_v48 }
0x1134   :  { %v2802_v45 = vadd.f32 1.0, %v5994_v47  ;;  %v5996_v62 = vpop.eup %5995 }
0x1135   :  { %2710 = vrot.lane.b32.xlu1 %v2708_v44, %s6372_s9  ;;  %v2701_v16 = vadd.f32 1.0, %v5996_v62 }
0x1136   :  { %5997 = vrcp.f32 %v2802_v45 }
0x1140   :  { %v5998_v18 = vpop.eup %5997 }
0x1197   :  { %v2812_v1 = vpop.permute.xlu0 %2811 }
0x1198   :  { %v7255_v10 = vadd.f32 %v2812_v1, %v2808_v5 }
0x119a   :  { %5999 = vtanh.f32 %v7255_v10 }
0x119b   :  { %6001 = vrcp.f32 %v2701_v16 }
0x11a4   :  { %v6000_v19 = vpop.eup %5999 }
0x11a5   :  { %v2816_v32 = vmul.f32 %v6000_v19, %v5998_v18  ;;  %v6002_v25 = vpop.eup %6001 }
0x11a7   :  { %v2711_v43 = vpop.permute.xlu1 %2710  ;;  %v7269_v37 = vsel %vm2718_vm10, %v2816_v32, %v7198_v57 }
0x11a8   :  { %v7271_v26 = vadd.f32 %v2711_v43, %v2707_v46  ;;  %2822 = vrot.lane.b32.xlu0 %v7269_v37, %s6372_s9 }
0x11aa   :  { %6003 = vtanh.f32 %v7271_v26 }
0x11b4   :  { %v6004_v63 = vpop.eup %6003 }
0x11b5   :  { %v2715_v53 = vmul.f32 %v6004_v63, %v6002_v25  ;;  %v7323_v63 = vsel %vm2437_vm9, %v7271_v26, %v7262_v48 }
0x11b7   :  { %v7279_v17 = vsel %vm2437_vm9, %v2715_v53, %v7208_v55 }
0x11b8   :  { %2898 = vrot.lane.b32.xlu1 %v7279_v17, %s6372_s9 }
0x121a   :  { %v2823_v57 = vpop.permute.xlu0 %2822 }
0x121b   :  { %4880 = vmatmul.mubr.msk.f32.vlgmr.msra.gmra.mrb[30].mxu0 %vm441_vm2, %v2823_v57 }
0x121c   :  { %5393 = vmatpush1.bf16.msra.mxu0 %v6687_v50  ;;  %2966 = vmatprep.mubr.f32.mxu0 %v6371_v0 }
0x121d   :  { %5395 = vmatprep.subr.bf16.mxu0 %v6689_v52 }
0x1220   :  { %5397 = vmatpush1.bf16.msra.mxu0 %v6694_v59 }
0x1221   :  { %5399 = vmatprep.subr.bf16.mxu0 %v6698_v60 }
0x1224   :  { %5401 = vmatpush1.bf16.msra.mxu0 %v6704_v2 }
0x1225   :  { %5403 = vmatprep.subr.bf16.mxu0 %v6707_v4 }
0x1228   :  { %5405 = vmatpush1.bf16.msra.mxu0 %v6712_v9 }
0x1229   :  { %5407 = vmatprep.subr.bf16.mxu0 %v6575_v15 }
0x122a   :  { %v2899_v55 = vpop.permute.xlu1 %2898 }
0x122b   :  { %4881 = vmatmul.mubr.msk.f32.vlgmr.msra.gmra.mrb[30].mxu0 %vm441_vm2, %v2899_v55 }
0x122c   :  { %5409 = vmatpush1.bf16.msra.mxu0 %v6577_v21  ;;  %3067 = vmatprep.mubr.f32.mxu0 %v6371_v0 }
0x122d   :  { %5411 = vmatprep.subr.bf16.mxu0 %v6580_v22 }
0x1230   :  { %5413 = vmatpush1.bf16.msra.mxu0 %v6585_v28 }
0x1231   :  { %5415 = vmatprep.subr.bf16.mxu0 %v6588_v29 }
0x1234   :  { %5417 = vmatpush1.bf16.msra.mxu0 %v6593_v35 }
0x1235   :  { %5419 = vmatprep.subr.bf16.mxu0 %v6596_v36 }
0x1238   :  { %5421 = vmatpush1.bf16.msra.mxu0 %v6601_v40 }
0x1239   :  { %5455 = vmatprep.subr.bf16.mxu0 %v6575_v15 }
0x123b   :  { %4884 = vmatmul.mubr.msk.f32.vlgmr.msra.gmra.mrb[18].mxu0 %vm441_vm2, %v2823_v57 }
0x123c   :  { %5457 = vmatpush1.bf16.msra.mxu0 %v6577_v21  ;;  %3348 = vmatprep.mubr.f32.mxu0 %v6371_v0 }
0x123d   :  { %5459 = vmatprep.subr.bf16.mxu0 %v6580_v22 }
0x1240   :  { %5461 = vmatpush1.bf16.msra.mxu0 %v6585_v28 }
0x1241   :  { %5463 = vmatprep.subr.bf16.mxu0 %v6588_v29 }
0x1244   :  { %5465 = vmatpush1.bf16.msra.mxu0 %v6593_v35 }
0x1245   :  { %5467 = vmatprep.subr.bf16.mxu0 %v6596_v36 }
0x1248   :  { %5469 = vmatpush1.bf16.msra.mxu0 %v6601_v40 }
0x1249   :  { %5503 = vmatprep.subr.bf16.mxu0 %v6575_v15 }
0x12fe   :  { %v2968_v38 = vpop.f32.mrb[30].mxu0 }
0x12ff   :  { %v5702_v12 = vadd.f32 %v7166_v61, %v2968_v38  ;;  %v2970_v58 = vpop.f32.mrb[31].mxu0 }
0x1300   :  { %v5703_v6 = vadd.f32 %v7172_v27, %v2970_v58 }
0x1301   :  { %v4882_v56 = vmul.f32 -1.442695, %v5702_v12 }
0x1302   :  { %v4883_v32 = vmul.f32 -1.442695, %v5703_v6 }
0x1303   :  { %6005 = vpow2.f32 %v4882_v56 }
0x1304   :  { %6007 = vtanh.f32 %v5703_v6  ;;  %v7333_v6 = vsel %vm2718_vm10, %v7255_v10, %v7252_v41 }
0x130d   :  { %v6006_v49 = vpop.eup %6005 }
0x130e   :  { %v2981_v11 = vadd.f32 1.0, %v6006_v49  ;;  %v3069_v39 = vpop.f32.mrb[18].mxu0  ;;  %v6008_v47 = vpop.eup %6007 }
0x130f   :  { %v5676_v51 = vadd.f32 %v7086_v54, %v3069_v39  ;;  %v3071_v44 = vpop.f32.mrb[19].mxu0 }
0x1310   :  { %6009 = vrcp.f32 %v2981_v11  ;;  %v5677_v45 = vadd.f32 %v7089_v34, %v3071_v44 }
0x1311   :  { %v4885_v33 = vmul.f32 -1.442695, %v5676_v51 }
0x1312   :  { %v4886_v43 = vmul.f32 -1.442695, %v5677_v45 }
0x1313   :  { %6011 = vpow2.f32 %v4885_v33 }
0x1314   :  { %6013 = vtanh.f32 %v5677_v45 }
0x131a   :  { %v6010_v24 = vpop.eup %6009 }
0x131b   :  { %v2989_v5 = vmul.f32 %v6010_v24, %v6008_v47  ;;  %v2988_v53 = vmul.f32 %v6010_v24, %v7323_v63 }
0x131d   :  { %v6012_v1 = vpop.eup %6011  ;;  %2991 = vrot.lane.b32.xlu1 %v2989_v5, %s6372_s9 }
0x131e   :  { %v3082_v62 = vadd.f32 1.0, %v6012_v1  ;;  %v6014_v18 = vpop.eup %6013 }
0x1320   :  { %6015 = vrcp.f32 %v3082_v62 }
0x1321   :  { %6017 = vpow2.f32 %v4883_v32 }
0x1322   :  { %6019 = vpow2.f32 %v4886_v43 }
0x132a   :  { %v6016_v19 = vpop.eup %6015 }
0x132b   :  { %v3090_v16 = vmul.f32 %v6016_v19, %v6014_v18  ;;  %v6018_v46 = vpop.eup %6017  ;;  %v3089_v26 = vmul.f32 %v6016_v19, %v7333_v6 }
0x132c   :  { %v2982_v25 = vadd.f32 1.0, %v6018_v46  ;;  %v6020_v38 = vpop.eup %6019 }
0x132d   :  { %3092 = vrot.lane.b32.xlu0 %v3090_v16, %s6372_s9  ;;  %v3083_v56 = vadd.f32 1.0, %v6020_v38 }
0x132e   :  { %6021 = vrcp.f32 %v2982_v25 }
0x1338   :  { %v6022_v12 = vpop.eup %6021 }
0x138f   :  { %v2992_v57 = vpop.permute.xlu1 %2991 }
0x1390   :  { %v7326_v55 = vadd.f32 %v2992_v57, %v2988_v53 }
0x1392   :  { %6023 = vtanh.f32 %v7326_v55 }
0x1393   :  { %6025 = vrcp.f32 %v3083_v56 }
0x139c   :  { %v6024_v58 = vpop.eup %6023 }
0x139d   :  { %v2996_v48 = vmul.f32 %v6024_v58, %v6022_v12  ;;  %v6026_v51 = vpop.eup %6025 }
0x139f   :  { %v3093_v49 = vpop.permute.xlu0 %3092  ;;  %v7339_v11 = vsel %vm2718_vm10, %v2996_v48, %v7279_v17 }
0x13a0   :  { %v7341_v39 = vadd.f32 %v3093_v49, %v3089_v26  ;;  %3179 = vrot.lane.b32.xlu1 %v7339_v11, %s6372_s9 }
0x13a2   :  { %6027 = vtanh.f32 %v7341_v39 }
0x13ac   :  { %v6028_v41 = vpop.eup %6027 }
0x13ad   :  { %v3097_v10 = vmul.f32 %v6028_v41, %v6026_v51  ;;  %v7394_v41 = vsel %vm2999_vm11, %v7341_v39, %v7333_v6 }
0x13af   :  { %v7350_v44 = vsel %vm2999_vm11, %v3097_v10, %v7269_v37 }
0x13b0   :  { %3103 = vrot.lane.b32.xlu0 %v7350_v44, %s6372_s9 }
0x1412   :  { %v3180_v37 = vpop.permute.xlu1 %3179 }
0x1422   :  { %v3104_v17 = vpop.permute.xlu0 %3103 }
0x1423   :  { %4887 = vmatmul.mubr.msk.f32.vlgmr.msra.gmra.mrb[14].mxu1 %vm441_vm2, %v3104_v17  ;;  %4891 = vmatmul.mubr.msk.f32.vlgmr.msra.gmra.mrb[20].mxu0 %vm441_vm2, %v3104_v17 }
0x1424   :  { %5441 = vmatpush1.bf16.msra.mxu1 %v6687_v50  ;;  %3247 = vmatprep.mubr.f32.mxu1 %v6371_v0 }
0x1425   :  { %5443 = vmatprep.subr.bf16.mxu1 %v6689_v52  ;;  %5505 = vmatpush1.bf16.msra.mxu0 %v6577_v21 }
0x1426   :  { %5507 = vmatprep.subr.bf16.mxu0 %v6580_v22  ;;  %3629 = vmatprep.mubr.f32.mxu0 %v6371_v0 }
0x1428   :  { %5445 = vmatpush1.bf16.msra.mxu1 %v6694_v59 }
0x1429   :  { %5447 = vmatprep.subr.bf16.mxu1 %v6698_v60  ;;  %5509 = vmatpush1.bf16.msra.mxu0 %v6585_v28 }
0x142a   :  { %5511 = vmatprep.subr.bf16.mxu0 %v6588_v29 }
0x142c   :  { %5449 = vmatpush1.bf16.msra.mxu1 %v6704_v2 }
0x142d   :  { %5451 = vmatprep.subr.bf16.mxu1 %v6707_v4  ;;  %5513 = vmatpush1.bf16.msra.mxu0 %v6593_v35 }
0x142e   :  { %5515 = vmatprep.subr.bf16.mxu0 %v6596_v36 }
0x1430   :  { %5453 = vmatpush1.bf16.msra.mxu1 %v6712_v9 }
0x1431   :  { %5471 = vmatprep.subr.bf16.mxu1 %v6645_v3  ;;  %5517 = vmatpush1.bf16.msra.mxu0 %v6601_v40 }
0x1432   :  { %5551 = vmatprep.subr.bf16.mxu0 %v6575_v15 }
0x1433   :  { %4888 = vmatmul.mubr.msk.f32.vlgmr.msra.gmra.mrb[14].mxu1 %vm441_vm2, %v3180_v37 }
0x1434   :  { %5473 = vmatpush1.bf16.msra.mxu1 %v6647_v7  ;;  %3452 = vmatprep.mubr.f32.mxu1 %v6371_v0 }
0x1435   :  { %5475 = vmatprep.subr.bf16.mxu1 %v6649_v8 }
0x1438   :  { %5477 = vmatpush1.bf16.msra.mxu1 %v6653_v13 }
0x1439   :  { %5479 = vmatprep.subr.bf16.mxu1 %v6656_v14 }
0x143c   :  { %5481 = vmatpush1.bf16.msra.mxu1 %v6659_v20 }
0x143d   :  { %5483 = vmatprep.subr.bf16.mxu1 %v6662_v23 }
0x1440   :  { %5485 = vmatpush1.bf16.msra.mxu1 %v6665_v30 }
0x1441   :  { %5487 = vmatprep.subr.bf16.mxu1 %v6668_v31 }
0x14f6   :  { %v3350_v33 = vpop.f32.mrb[20].mxu0 }
0x14f7   :  { %v5678_v47 = vadd.f32 %v7086_v54, %v3350_v33  ;;  %v3352_v24 = vpop.f32.mrb[21].mxu0 }
0x14f8   :  { %v5679_v5 = vadd.f32 %v7089_v34, %v3352_v24 }
0x14f9   :  { %v4892_v45 = vmul.f32 -1.442695, %v5678_v47 }
0x14fa   :  { %v4893_v48 = vmul.f32 -1.442695, %v5679_v5 }
0x14fb   :  { %6029 = vpow2.f32 %v4892_v45 }
0x14fc   :  { %6031 = vtanh.f32 %v5679_v5  ;;  %v7404_v5 = vsel %vm2718_vm10, %v7326_v55, %v7323_v63 }
0x1505   :  { %v6030_v1 = vpop.eup %6029 }
0x1506   :  { %v3363_v62 = vadd.f32 1.0, %v6030_v1  ;;  %v3249_v18 = vpop.f32.mrb[14].mxu1  ;;  %v6032_v46 = vpop.eup %6031 }
0x1507   :  { %v5704_v19 = vadd.f32 %v7166_v61, %v3249_v18  ;;  %v3251_v16 = vpop.f32.mrb[15].mxu1 }
0x1508   :  { %6033 = vrcp.f32 %v3363_v62  ;;  %v5705_v25 = vadd.f32 %v7172_v27, %v3251_v16 }
0x1509   :  { %v4889_v32 = vmul.f32 -1.442695, %v5704_v19 }
0x150a   :  { %v4890_v49 = vmul.f32 -1.442695, %v5705_v25 }
0x150b   :  { %6035 = vpow2.f32 %v4889_v32 }
0x150c   :  { %6037 = vtanh.f32 %v5705_v25 }
0x1512   :  { %v6034_v43 = vpop.eup %6033 }
0x1513   :  { %v3371_v53 = vmul.f32 %v6034_v43, %v6032_v46  ;;  %v3370_v10 = vmul.f32 %v6034_v43, %v7394_v41 }
0x1515   :  { %v6036_v57 = vpop.eup %6035  ;;  %3373 = vrot.lane.b32.xlu0 %v3371_v53, %s6372_s9 }
0x1516   :  { %v3262_v38 = vadd.f32 1.0, %v6036_v57  ;;  %v6038_v12 = vpop.eup %6037 }
0x1518   :  { %6039 = vrcp.f32 %v3262_v38 }
0x1519   :  { %6041 = vpow2.f32 %v4893_v48 }
0x151a   :  { %6043 = vpow2.f32 %v4890_v49 }
0x1522   :  { %v6040_v58 = vpop.eup %6039 }
0x1523   :  { %v3270_v56 = vmul.f32 %v6040_v58, %v6038_v12  ;;  %v6042_v26 = vpop.eup %6041  ;;  %v3269_v39 = vmul.f32 %v6040_v58, %v7404_v5 }
0x1524   :  { %v3364_v51 = vadd.f32 1.0, %v6042_v26  ;;  %v6044_v33 = vpop.eup %6043 }
0x1525   :  { %3272 = vrot.lane.b32.xlu1 %v3270_v56, %s6372_s9  ;;  %v3263_v45 = vadd.f32 1.0, %v6044_v33 }
0x1526   :  { %6045 = vrcp.f32 %v3364_v51 }
0x1530   :  { %v6046_v47 = vpop.eup %6045 }
0x1587   :  { %v3374_v17 = vpop.permute.xlu0 %3373 }
0x1588   :  { %v7397_v37 = vadd.f32 %v3374_v17, %v3370_v10 }
0x158a   :  { %6047 = vtanh.f32 %v7397_v37 }
0x158b   :  { %6049 = vrcp.f32 %v3263_v45 }
0x1594   :  { %v6048_v24 = vpop.eup %6047 }
0x1595   :  { %v3378_v6 = vmul.f32 %v6048_v24, %v6046_v47  ;;  %v6050_v63 = vpop.eup %6049 }
0x1597   :  { %v3273_v1 = vpop.permute.xlu1 %3272  ;;  %v7411_v62 = vsel %vm3280_vm12, %v3378_v6, %v7350_v44 }
0x1598   :  { %v7413_v18 = vadd.f32 %v3273_v1, %v3269_v39  ;;  %3384 = vrot.lane.b32.xlu0 %v7411_v62, %s6372_s9  ;;  %v7465_v1 = vsel %vm3280_vm12, %v7397_v37, %v7394_v41 }
0x159a   :  { %6051 = vtanh.f32 %v7413_v18 }
0x15a4   :  { %v6052_v55 = vpop.eup %6051 }
0x15a5   :  { %v3277_v19 = vmul.f32 %v6052_v55, %v6050_v63 }
0x15a7   :  { %v7421_v16 = vsel %vm2999_vm11, %v3277_v19, %v7339_v11 }
0x15a8   :  { %3460 = vrot.lane.b32.xlu1 %v7421_v16, %s6372_s9 }
0x160a   :  { %v3385_v44 = vpop.permute.xlu0 %3384 }
0x160b   :  { %4894 = vmatmul.mubr.msk.f32.vlgmr.msra.gmra.mrb[16].mxu1 %vm441_vm2, %v3385_v44  ;;  %4898 = vmatmul.mubr.msk.f32.vlgmr.msra.gmra.mrb[22].mxu0 %vm441_vm2, %v3385_v44 }
0x160c   :  { %5489 = vmatpush1.bf16.msra.mxu1 %v6687_v50  ;;  %3528 = vmatprep.mubr.f32.mxu1 %v6371_v0 }
0x160d   :  { %5491 = vmatprep.subr.bf16.mxu1 %v6689_v52  ;;  %5553 = vmatpush1.bf16.msra.mxu0 %v6577_v21 }
0x160e   :  { %5555 = vmatprep.subr.bf16.mxu0 %v6580_v22  ;;  %3910 = vmatprep.mubr.f32.mxu0 %v6371_v0 }
0x1610   :  { %5493 = vmatpush1.bf16.msra.mxu1 %v6694_v59 }
0x1611   :  { %5495 = vmatprep.subr.bf16.mxu1 %v6698_v60  ;;  %5557 = vmatpush1.bf16.msra.mxu0 %v6585_v28 }
0x1612   :  { %5559 = vmatprep.subr.bf16.mxu0 %v6588_v29 }
0x1614   :  { %5497 = vmatpush1.bf16.msra.mxu1 %v6704_v2 }
0x1615   :  { %5499 = vmatprep.subr.bf16.mxu1 %v6707_v4  ;;  %5561 = vmatpush1.bf16.msra.mxu0 %v6593_v35 }
0x1616   :  { %5563 = vmatprep.subr.bf16.mxu0 %v6596_v36 }
0x1618   :  { %5501 = vmatpush1.bf16.msra.mxu1 %v6712_v9 }
0x1619   :  { %5519 = vmatprep.subr.bf16.mxu1 %v6645_v3  ;;  %5565 = vmatpush1.bf16.msra.mxu0 %v6601_v40 }
0x161a   :  { %v3461_v11 = vpop.permute.xlu1 %3460  ;;  %5567 = vmatprep.subr.bf16.mxu0 %v6645_v3 }
0x161b   :  { %4895 = vmatmul.mubr.msk.f32.vlgmr.msra.gmra.mrb[16].mxu1 %vm441_vm2, %v3461_v11 }
0x161c   :  { %5521 = vmatpush1.bf16.msra.mxu1 %v6647_v7  ;;  %3733 = vmatprep.mubr.f32.mxu1 %v6371_v0 }
0x161d   :  { %5523 = vmatprep.subr.bf16.mxu1 %v6649_v8 }
0x1620   :  { %5525 = vmatpush1.bf16.msra.mxu1 %v6653_v13 }
0x1621   :  { %5527 = vmatprep.subr.bf16.mxu1 %v6656_v14 }
0x1624   :  { %5529 = vmatpush1.bf16.msra.mxu1 %v6659_v20 }
0x1625   :  { %5531 = vmatprep.subr.bf16.mxu1 %v6662_v23 }
0x1628   :  { %5533 = vmatpush1.bf16.msra.mxu1 %v6665_v30 }
0x1629   :  { %5535 = vmatprep.subr.bf16.mxu1 %v6668_v31 }
0x16de   :  { %v3631_v32 = vpop.f32.mrb[22].mxu0 }
0x16df   :  { %v5680_v46 = vadd.f32 %v7086_v54, %v3631_v32  ;;  %v3633_v43 = vpop.f32.mrb[23].mxu0 }
0x16e0   :  { %v5681_v53 = vadd.f32 %v7089_v34, %v3633_v43  ;;  %v7475_v43 = vsel %vm2999_vm11, %v7413_v18, %v7404_v5  ;;  %vm6378_vm11 = vmmov 1  }
0x16e1   :  { %v4899_v25 = vmul.f32 -1.442695, %v5680_v46 }
0x16e2   :  { %v4900_v24 = vmul.f32 -1.442695, %v5681_v53 }
0x16e3   :  { %6053 = vpow2.f32 %v4899_v25 }
0x16e4   :  { %6055 = vtanh.f32 %v5681_v53 }
0x16ed   :  { %v6054_v57 = vpop.eup %6053 }
0x16ee   :  { %v3644_v38 = vadd.f32 1.0, %v6054_v57  ;;  %v3530_v12 = vpop.f32.mrb[16].mxu1  ;;  %v6056_v26 = vpop.eup %6055 }
0x16ef   :  { %v5706_v58 = vadd.f32 %v7166_v61, %v3530_v12  ;;  %v3532_v56 = vpop.f32.mrb[17].mxu1 }
0x16f0   :  { %6057 = vrcp.f32 %v3644_v38  ;;  %v5707_v51 = vadd.f32 %v7172_v27, %v3532_v56 }
0x16f1   :  { %v4896_v48 = vmul.f32 -1.442695, %v5706_v58  ;;  %v7526_v58 = vld [vmem:[#allocation11] sm:$0xff] }
0x16f2   :  { %v4897_v6 = vmul.f32 -1.442695, %v5707_v51 }
0x16f3   :  { %6059 = vpow2.f32 %v4896_v48 }
0x16f4   :  { %6061 = vtanh.f32 %v5707_v51 }
0x16fa   :  { %v6058_v49 = vpop.eup %6057 }
0x16fb   :  { %v3652_v54 = vmul.f32 %v6058_v49, %v6056_v26  ;;  %v3651_v63 = vmul.f32 %v6058_v49, %v7465_v1 }
0x16fd   :  { %v6060_v10 = vpop.eup %6059  ;;  %3654 = vrot.lane.b32.xlu0 %v3652_v54, %s6372_s9 }
0x16fe   :  { %v3543_v17 = vadd.f32 1.0, %v6060_v10  ;;  %v6062_v34 = vpop.eup %6061 }
0x1700   :  { %6063 = vrcp.f32 %v3543_v17 }
0x1701   :  { %6065 = vpow2.f32 %v4900_v24 }
0x1702   :  { %6067 = vpow2.f32 %v4897_v6 }
0x170a   :  { %v6064_v33 = vpop.eup %6063 }
0x170b   :  { %v3551_v47 = vmul.f32 %v6064_v33, %v6062_v34  ;;  %v6066_v45 = vpop.eup %6065  ;;  %v3550_v37 = vmul.f32 %v6064_v33, %v7475_v43 }
0x170c   :  { %v3645_v39 = vadd.f32 1.0, %v6066_v45  ;;  %v6068_v44 = vpop.eup %6067 }
0x170d   :  { %3553 = vrot.lane.b32.xlu1 %v3551_v47, %s6372_s9  ;;  %v3544_v46 = vadd.f32 1.0, %v6068_v44 }
0x170e   :  { %6069 = vrcp.f32 %v3645_v39 }
0x1718   :  { %v6070_v11 = vpop.eup %6069 }
0x176f   :  { %v3655_v55 = vpop.permute.xlu0 %3654 }
0x1770   :  { %v7468_v19 = vadd.f32 %v3655_v55, %v3651_v63 }
0x1772   :  { %6071 = vtanh.f32 %v7468_v19 }
0x1773   :  { %6073 = vrcp.f32 %v3544_v46 }
0x177c   :  { %v6072_v32 = vpop.eup %6071 }
0x177d   :  { %v3659_v41 = vmul.f32 %v6072_v32, %v6070_v11  ;;  %v6074_v5 = vpop.eup %6073 }
0x177f   :  { %v3554_v25 = vpop.permute.xlu1 %3553  ;;  %v7482_v53 = vsel %vm3561_vm13, %v3659_v41, %v7411_v62 }
0x1780   :  { %v7484_v57 = vadd.f32 %v3554_v25, %v3550_v37  ;;  %3665 = vrot.lane.b32.xlu0 %v7482_v53, %s6372_s9 }
0x1782   :  { %6075 = vtanh.f32 %v7484_v57  ;;  %v7550_v37 = vsel %vm3280_vm12, %v7484_v57, %v7475_v43 }
0x178c   :  { %v6076_v18 = vpop.eup %6075 }
0x178d   :  { %v3558_v38 = vmul.f32 %v6076_v18, %v6074_v5 }
0x178f   :  { %v7492_v12 = vsel %vm3280_vm12, %v3558_v38, %v7421_v16 }
0x1790   :  { %3741 = vrot.lane.b32.xlu1 %v7492_v12, %s6372_s9 }
0x17f2   :  { %v3666_v62 = vpop.permute.xlu0 %3665 }
0x17f3   :  { %4901 = vmatmul.mubr.msk.f32.vlgmr.msra.gmra.mrb[18].mxu1 %vm441_vm2, %v3666_v62  ;;  %4905 = vmatmul.mubr.msk.f32.vlgmr.msra.gmra.mrb[24].mxu0 %vm441_vm2, %v3666_v62 }
0x17f4   :  { %5537 = vmatpush1.bf16.msra.mxu1 %v6687_v50  ;;  %3809 = vmatprep.mubr.f32.mxu1 %v6371_v0 }
0x17f5   :  { %5539 = vmatprep.subr.bf16.mxu1 %v6689_v52  ;;  %5569 = vmatpush1.bf16.msra.mxu0 %v6647_v7 }
0x17f6   :  { %5571 = vmatprep.subr.bf16.mxu0 %v6649_v8  ;;  %4014 = vmatprep.mubr.f32.mxu0 %v6371_v0 }
0x17f8   :  { %5541 = vmatpush1.bf16.msra.mxu1 %v6694_v59 }
0x17f9   :  { %5543 = vmatprep.subr.bf16.mxu1 %v6698_v60  ;;  %5573 = vmatpush1.bf16.msra.mxu0 %v6653_v13 }
0x17fa   :  { %5575 = vmatprep.subr.bf16.mxu0 %v6656_v14 }
0x17fc   :  { %5545 = vmatpush1.bf16.msra.mxu1 %v6704_v2 }
0x17fd   :  { %5547 = vmatprep.subr.bf16.mxu1 %v6707_v4  ;;  %5577 = vmatpush1.bf16.msra.mxu0 %v6659_v20 }
0x17fe   :  { %5579 = vmatprep.subr.bf16.mxu0 %v6662_v23 }
0x1800   :  { %5549 = vmatpush1.bf16.msra.mxu1 %v6712_v9 }
0x1801   :  { %5581 = vmatpush1.bf16.msra.mxu0 %v6665_v30  ;;  %5615 = vmatprep.subr.bf16.mxu1 %v6645_v3 }
0x1802   :  { %v3742_v16 = vpop.permute.xlu1 %3741  ;;  %5583 = vmatprep.subr.bf16.mxu0 %v6668_v31 }
0x1803   :  { %4902 = vmatmul.mubr.msk.f32.vlgmr.msra.gmra.mrb[18].mxu1 %vm441_vm2, %v3742_v16 }
0x1804   :  { %5617 = vmatpush1.bf16.msra.mxu1 %v6647_v7  ;;  %4294 = vmatprep.mubr.f32.mxu1 %v6371_v0 }
0x1805   :  { %5619 = vmatprep.subr.bf16.mxu1 %v6649_v8  ;;  %v7529_v8 = vld [vmem:[#allocation11 + $0x8] sm:$0xff] }
0x1808   :  { %5621 = vmatpush1.bf16.msra.mxu1 %v6653_v13 }
0x1809   :  { %5623 = vmatprep.subr.bf16.mxu1 %v6656_v14 }
0x180c   :  { %5625 = vmatpush1.bf16.msra.mxu1 %v6659_v20 }
0x180d   :  { %5627 = vmatprep.subr.bf16.mxu1 %v6662_v23 }
0x1810   :  { %5629 = vmatpush1.bf16.msra.mxu1 %v6665_v30 }
0x1811   :  { %5631 = vmatprep.subr.bf16.mxu1 %v6668_v31 }
0x18c6   :  { %v3912_v3 = vpop.f32.mrb[24].mxu0 }
0x18c7   :  { %v5682_v7 = vadd.f32 %v7526_v58, %v3912_v3  ;;  %v3914_v56 = vpop.f32.mrb[25].mxu0 }
0x18c8   :  { %v5683_v13 = vadd.f32 %v7529_v8, %v3914_v56 }
0x18c9   :  { %v4906_v48 = vmul.f32 -1.442695, %v5682_v7 }
0x18cb   :  { %6077 = vpow2.f32 %v4906_v48 }
0x18cc   :  { %6079 = vtanh.f32 %v5683_v13 }
0x18d5   :  { %v6078_v14 = vpop.eup %6077 }
0x18d6   :  { %v3925_v20 = vadd.f32 1.0, %v6078_v14  ;;  %v3811_v26 = vpop.f32.mrb[18].mxu1  ;;  %v6080_v49 = vpop.eup %6079 }
0x18d7   :  { %v5708_v23 = vadd.f32 %v7166_v61, %v3811_v26  ;;  %v3813_v30 = vpop.f32.mrb[19].mxu1  ;;  %v4907_v61 = vmul.f32 -1.442695, %v5683_v13 }
0x18d8   :  { %6081 = vrcp.f32 %v3925_v20  ;;  %v5709_v54 = vadd.f32 %v7172_v27, %v3813_v30  ;;  %v7540_v27 = vsel %vm3561_vm13, %v7468_v19, %v7465_v1 }
0x18d9   :  { %v4903_v31 = vmul.f32 -1.442695, %v5708_v23 }
0x18da   :  { %v4904_v6 = vmul.f32 -1.442695, %v5709_v54 }
0x18db   :  { %6083 = vpow2.f32 %v4903_v31 }
0x18dc   :  { %6085 = vtanh.f32 %v5709_v54 }
0x18e2   :  { %v6082_v51 = vpop.eup %6081 }
0x18e3   :  { %v3933_v10 = vmul.f32 %v6082_v51, %v6080_v49  ;;  %v3932_v63 = vmul.f32 %v6082_v51, %v7540_v27 }
0x18e5   :  { %v6084_v17 = vpop.eup %6083  ;;  %3935 = vrot.lane.b32.xlu0 %v3933_v10, %s6372_s9 }
0x18e6   :  { %v3824_v34 = vadd.f32 1.0, %v6084_v17  ;;  %v6086_v33 = vpop.eup %6085 }
0x18e8   :  { %6087 = vrcp.f32 %v3824_v34 }
0x18e9   :  { %6089 = vpow2.f32 %v4907_v61 }
0x18ea   :  { %6091 = vpow2.f32 %v4904_v6 }
0x18f2   :  { %v6088_v47 = vpop.eup %6087 }
0x18f3   :  { %v3832_v24 = vmul.f32 %v6088_v47, %v6086_v33  ;;  %v6090_v45 = vpop.eup %6089  ;;  %v3831_v19 = vmul.f32 %v6088_v47, %v7550_v37 }
0x18f4   :  { %v3926_v39 = vadd.f32 1.0, %v6090_v45  ;;  %v6092_v11 = vpop.eup %6091 }
0x18f5   :  { %3834 = vrot.lane.b32.xlu1 %v3832_v24, %s6372_s9  ;;  %v3825_v41 = vadd.f32 1.0, %v6092_v11 }
0x18f6   :  { %6093 = vrcp.f32 %v3926_v39 }
0x1900   :  { %v6094_v32 = vpop.eup %6093 }
0x1957   :  { %v3936_v55 = vpop.permute.xlu0 %3935 }
0x1958   :  { %v7543_v44 = vadd.f32 %v3936_v55, %v3932_v63 }
0x195a   :  { %6095 = vtanh.f32 %v7543_v44 }
0x195b   :  { %6097 = vrcp.f32 %v3825_v41 }
0x1964   :  { %v6096_v46 = vpop.eup %6095 }
0x1965   :  { %v3940_v1 = vmul.f32 %v6096_v46, %v6094_v32  ;;  %v6098_v43 = vpop.eup %6097 }
0x1967   :  { %v3835_v25 = vpop.permute.xlu1 %3834  ;;  %v7557_v5 = vsel %vm3842_vm14, %v3940_v1, %v7482_v53 }
0x1968   :  { %v7559_v18 = vadd.f32 %v3835_v25, %v3831_v19  ;;  %3946 = vrot.lane.b32.xlu0 %v7557_v5, %s6372_s9 }
0x196a   :  { %6099 = vtanh.f32 %v7559_v18  ;;  %v3841_v33 = vsel %vm3561_vm13, %v7559_v18, %v7550_v37 }
0x1974   :  { %v6100_v57 = vpop.eup %6099 }
0x1975   :  { %v3839_v38 = vmul.f32 %v6100_v57, %v6098_v43 }
0x1977   :  { %v7567_v62 = vsel %vm3561_vm13, %v3839_v38, %v7492_v12 }
0x1978   :  { %4022 = vrot.lane.b32.xlu1 %v7567_v62, %s6372_s9 }
0x19da   :  { %v3947_v53 = vpop.permute.xlu0 %3946 }
0x19db   :  { %4908 = vmatmul.mubr.msk.f32.vlgmr.msra.gmra.mrb[32].mxu0 %vm441_vm2, %v3947_v53 }
0x19dc   :  { %5585 = vmatpush1.bf16.msra.mxu0 %v6687_v50  ;;  %4090 = vmatprep.mubr.f32.mxu0 %v6371_v0 }
0x19dd   :  { %5587 = vmatprep.subr.bf16.mxu0 %v6689_v52 }
0x19e0   :  { %5589 = vmatpush1.bf16.msra.mxu0 %v6694_v59 }
0x19e1   :  { %5591 = vmatprep.subr.bf16.mxu0 %v6698_v60 }
0x19e4   :  { %5593 = vmatpush1.bf16.msra.mxu0 %v6704_v2 }
0x19e5   :  { %5595 = vmatprep.subr.bf16.mxu0 %v6707_v4 }
0x19e8   :  { %5597 = vmatpush1.bf16.msra.mxu0 %v6712_v9 }
0x19e9   :  { %5599 = vmatprep.subr.bf16.mxu0 %v6575_v15 }
0x19ea   :  { %v4023_v12 = vpop.permute.xlu1 %4022 }
0x19eb   :  { %4909 = vmatmul.mubr.msk.f32.vlgmr.msra.gmra.mrb[32].mxu0 %vm441_vm2, %v4023_v12 }
0x19ec   :  { %5601 = vmatpush1.bf16.msra.mxu0 %v6577_v21  ;;  %4191 = vmatprep.mubr.f32.mxu0 %v6371_v0  ;;  %v7595_v21 = vld [vmem:[%s7715_s7] sm:$0xff] }
0x19ed   :  { %5603 = vmatprep.subr.bf16.mxu0 %v6580_v22 }
0x19f0   :  { %5605 = vmatpush1.bf16.msra.mxu0 %v6585_v28 }
0x19f1   :  { %5607 = vmatprep.subr.bf16.mxu0 %v6588_v29 }
0x19f4   :  { %5609 = vmatpush1.bf16.msra.mxu0 %v6593_v35  ;;  %v7601_v35 = vld [vmem:[%s7715_s7 + $0x8] sm:$0xff]  ;;  %s6375_s7 = smov 96  }
0x19f5   :  { %5611 = vmatprep.subr.bf16.mxu0 %v6596_v36 }
0x19f8   :  { %5613 = vmatpush1.bf16.msra.mxu0 %v6601_v40 }
0x19f9   :  { %4956 = vmatprep.subr.mxu0 %v6371_v0 }
0x19fb   :  { %4912 = vmatmul.mubr.msk.f32.vlgmr.msra.gmra.mrb[26].mxu0 %vm441_vm2, %v3947_v53 }
0x19fc   :  { %4958 = vmatprep.mubr.msk.f32.mxu0 %vm6374_vm0, %v6371_v0 }
0x1abe   :  { %v4092_v15 = vpop.f32.mrb[32].mxu0 }
0x1abf   :  { %v5710_v22 = vadd.f32 %v7595_v21, %v4092_v15  ;;  %v4094_v28 = vpop.f32.mrb[33].mxu0 }
0x1ac0   :  { %v5711_v36 = vadd.f32 %v7601_v35, %v4094_v28 }
0x1ac1   :  { %v4910_v29 = vmul.f32 -1.442695, %v5710_v22 }
0x1ac2   :  { %v4911_v10 = vmul.f32 -1.442695, %v5711_v36 }
0x1ac3   :  { %6101 = vpow2.f32 %v4910_v29 }
0x1ac4   :  { %6103 = vtanh.f32 %v5711_v36  ;;  %v4413_v36 = vld [vmem:[#allocation17 + $0x8] sm:$0xff] }
0x1acd   :  { %v6102_v40 = vpop.eup %6101 }
0x1ace   :  { %v4105_v16 = vadd.f32 1.0, %v6102_v40  ;;  %v4193_v3 = vpop.f32.mrb[26].mxu0  ;;  %v6104_v13 = vpop.eup %6103  ;;  %v4414_v40 = vld [vmem:[#allocation17 + $0x10] sm:$0xff] }
0x1acf   :  { %v5684_v7 = vadd.f32 %v7526_v58, %v4193_v3  ;;  %v4195_v56 = vpop.f32.mrb[27].mxu0  ;;  %v3944_v58 = vsel %vm3842_vm14, %v7543_v44, %v7540_v27 }
0x1ad0   :  { %6105 = vrcp.f32 %v4105_v16  ;;  %v5685_v20 = vadd.f32 %v7529_v8, %v4195_v56  ;;  %v6373_v16 = vmov 0.0|0.0  }
0x1ad1   :  { %v4913_v48 = vmul.f32 -1.442695, %v5684_v7  ;;  %v4415_v7 = vld [vmem:[#allocation17 + $0x18] sm:$0xff] }
0x1ad2   :  { %v4914_v17 = vmul.f32 -1.442695, %v5685_v20  ;;  %v5650_v56 = vpack.c.bf16 %v4415_v7, %v4414_v40 }
0x1ad3   :  { %6107 = vpow2.f32 %v4913_v48  ;;  %v4417_v48 = vld [vmem:[#allocation17 + $0x28] sm:$0xff] }
0x1ad4   :  { %6109 = vtanh.f32 %v5685_v20  ;;  %v4418_v20 = vld [vmem:[#allocation17 + $0x30] sm:$0xff] }
0x1ada   :  { %v6106_v14 = vpop.eup %6105 }
0x1adb   :  { %v4113_v26 = vmul.f32 %v6106_v14, %v6104_v13  ;;  %v4112_v47 = vmul.f32 %v6106_v14, %v3841_v33  ;;  %v5653_v13 = vpack.c.bf16 %v4417_v48, %v4416_v42 }
0x1add   :  { %v6108_v23 = vpop.eup %6107  ;;  %4115 = vrot.lane.b32.xlu1 %v4113_v26, %s6372_s9  ;;  %v4419_v26 = vld [vmem:[#allocation17 + $0x38] sm:$0xff] }
0x1ade   :  { %v4206_v30 = vadd.f32 1.0, %v6108_v23  ;;  %v6110_v31 = vpop.eup %6109 }
0x1ae0   :  { %6111 = vrcp.f32 %v4206_v30  ;;  %v5656_v30 = vpack.c.bf16 %v4419_v26, %v4418_v20 }
0x1ae1   :  { %6113 = vpow2.f32 %v4911_v10  ;;  %v146_v10 = vlaneseq }
0x1ae2   :  { %6115 = vpow2.f32 %v4914_v17  ;;  %v4502_v17 = vld [vmem:[%s7718_s10] sm:$0xff]  ;;  %s6377_s10 = smov 124  }
0x1aea   :  { %v6112_v49 = vpop.eup %6111 }
0x1aeb   :  { %v4214_v51 = vmul.f32 %v6112_v49, %v6110_v31  ;;  %v4213_v54 = vmul.f32 %v6112_v49, %v3944_v58  ;;  %v6114_v8 = vpop.eup %6113 }
0x1aec   :  { %v4106_v34 = vadd.f32 1.0, %v6114_v8  ;;  %v6116_v45 = vpop.eup %6115  ;;  %v7653_v8 = vshrl.u32 %v146_v10, 7 }
0x1aed   :  { %4216 = vrot.lane.b32.xlu0 %v4214_v51, %s6372_s9  ;;  %v4207_v27 = vadd.f32 1.0, %v6116_v45 }
0x1aee   :  { %6117 = vrcp.f32 %v4106_v34  ;;  %vm148_vm1 = vcmp.lt.s32.totalorder %v7653_v8, 4 }
0x1af8   :  { %v6118_v6 = vpop.eup %6117 }
0x1b4f   :  { %v4116_v24 = vpop.permute.xlu1 %4115 }
0x1b50   :  { %v4118_v61 = vadd.f32 %v4116_v24, %v4112_v47 }
0x1b52   :  { %6119 = vtanh.f32 %v4118_v61 }
0x1b53   :  { %6121 = vrcp.f32 %v4207_v27 }
0x1b5c   :  { %v6120_v39 = vpop.eup %6119 }
0x1b5d   :  { %v4120_v63 = vmul.f32 %v6120_v39, %v6118_v6  ;;  %v6122_v32 = vpop.eup %6121 }
0x1b5f   :  { %v4217_v55 = vpop.permute.xlu0 %4216  ;;  %v4121_v44 = vsel %vm3842_vm14, %v4120_v63, %v7567_v62 }
0x1b60   :  { %v4219_v11 = vadd.f32 %v4217_v55, %v4213_v54  ;;  %4302 = vrot.lane.b32.xlu1 %v4121_v44, %s6372_s9 }
0x1b62   :  { %6123 = vtanh.f32 %v4219_v11 }
0x1b6c   :  { %v6124_v46 = vpop.eup %6123 }
0x1b6d   :  { %v4221_v41 = vmul.f32 %v6124_v46, %v6122_v32 }
0x1b6f   :  { %v4224_v37 = vsel %vm4123_vm15, %v4221_v41, %v7557_v5 }
0x1b70   :  { %4226 = vrot.lane.b32.xlu0 %v4224_v37, %s6372_s9 }
0x1bd2   :  { %v4303_v19 = vpop.permute.xlu1 %4302 }
0x1be2   :  { %v4227_v1 = vpop.permute.xlu0 %4226 }
0x1be3   :  { %4915 = vmatmul.mubr.msk.f32.vlgmr.msra.gmra.mrb[20].mxu1 %vm441_vm2, %v4227_v1 }
0x1be4   :  { %5633 = vmatpush1.bf16.msra.mxu1 %v6687_v50  ;;  %4370 = vmatprep.mubr.f32.mxu1 %v6371_v0 }
0x1be5   :  { %5635 = vmatprep.subr.bf16.mxu1 %v6689_v52 }
0x1be8   :  { %5637 = vmatpush1.bf16.msra.mxu1 %v6694_v59 }
0x1be9   :  { %5639 = vmatprep.subr.bf16.mxu1 %v6698_v60 }
0x1bec   :  { %5641 = vmatpush1.bf16.msra.mxu1 %v6704_v2 }
0x1bed   :  { %5643 = vmatprep.subr.bf16.mxu1 %v6707_v4  ;;  %v4122_v4 = vsel %vm3842_vm14, %v4118_v61, %v3841_v33  ;;  %v4657_v61 = vld [vmem:[#allocation16 + $0x8] sm:$0xff]  ;;  %vm4629_vm14 = vcmask 64512  }
0x1bf0   :  { %5645 = vmatpush1.bf16.msra.mxu1 %v6712_v9 }
0x1bf1   :  { %5646 = vmatprep.subr.bf16.mxu1 %v6373_v16 }
0x1bf3   :  { %4916 = vmatmul.mubr.msk.f32.vlgmr.msra.gmra.mrb[20].mxu1 %vm441_vm2, %v4303_v19 }
0x1bf4   :  { %4953 = vmatprep.mubr.msk.f32.mxu1 %vm6374_vm0, %v6371_v0 }
0x1cc6   :  { %v4372_v25 = vpop.f32.mrb[20].mxu1 }
0x1cc7   :  { %v5712_v50 = vadd.f32 %v7595_v21, %v4372_v25  ;;  %v4374_v5 = vpop.f32.mrb[21].mxu1 }
0x1cc8   :  { %v5713_v52 = vadd.f32 %v7601_v35, %v4374_v5  ;;  %v4412_v35 = vld [vmem:[#allocation17] sm:$0xff] }
0x1cc9   :  { %v4917_v18 = vmul.f32 -1.442695, %v5712_v50  ;;  %v5647_v3 = vpack.c.bf16 %v4413_v36, %v4412_v35 }
0x1cca   :  { %v4918_v38 = vmul.f32 -1.442695, %v5713_v52 }
0x1ccb   :  { %6125 = vpow2.f32 %v4917_v18  ;;  %5648 = vmatpush3.bf16.msra.mxu1 %v5647_v3  ;;  %v4505_v18 = vand.u32 127, %v146_v10 }
0x1ccc   :  { %6127 = vtanh.f32 %v5713_v52  ;;  %5649 = vmatprep.subr.bf16.mxu1 %v6373_v16 }
0x1ccd   :  { %vm4513_vm5 = vcmp.lt.s32.totalorder %v4505_v18, 4  ;;  %vm4506_vm6 = vcmp.eq.s32.totalorder %v7653_v8, %v4505_v18 }
0x1cce   :  { %vm4514_vm8 = vmxor %vm148_vm1, %vm4513_vm5 }
0x1ccf   :  { %5651 = vmatpush3.bf16.msra.mxu1 %v5650_v56  ;;  %vm4515_vm12 = vmxor %vm4514_vm8, %vm6378_vm11 }
0x1cd0   :  { %5652 = vmatprep.subr.bf16.mxu1 %v6373_v16 }
0x1cd3   :  { %5654 = vmatpush3.bf16.msra.mxu1 %v5653_v13 }
0x1cd4   :  { %5655 = vmatprep.subr.bf16.mxu1 %v6373_v16 }
0x1cd5   :  { %v6126_v59 = vpop.eup %6125 }
0x1cd6   :  { %v4385_v43 = vadd.f32 1.0, %v6126_v59  ;;  %v6128_v60 = vpop.eup %6127 }
0x1cd7   :  { %5657 = vmatpush3.bf16.msra.mxu1 %v5656_v30 }
0x1cd8   :  { %6129 = vrcp.f32 %v4385_v43  ;;  %4961 = vmatprep.subr.mxu1 %v6371_v0  ;;  %v4507_v43 = vadd.s32 4, %v4505_v18 }
0x1cd9   :  { %6131 = vpow2.f32 %v4918_v38  ;;  %v6379_v38 = vmov 1.0  }
0x1cda   :  { %vm4508_vm7 = vcmp.eq.s32.totalorder %v7653_v8, %v4507_v43  ;;  %v4518_v10 = vsel %vm148_vm1, 0.1, %v6379_v38 }
0x1cdb   :  { %vm4509_vm9 = vmor %vm4506_vm6, %vm4508_vm7 }
0x1ce2   :  { %v6130_v2 = vpop.eup %6129 }
0x1ce3   :  { %v4393_v9 = vmul.f32 %v6130_v2, %v6128_v60  ;;  %v4392_v57 = vmul.f32 %v6130_v2, %v4122_v4  ;;  %v6132_v62 = vpop.eup %6131 }
0x1ce4   :  { %v4386_v53 = vadd.f32 1.0, %v6132_v62  ;;  %v4516_v62 = vsel %vm4515_vm12, 0.1, %v6379_v38 }
0x1ce5   :  { %4395 = vrot.lane.b32.xlu0 %v4393_v9, %s6372_s9 }
0x1ce6   :  { %6133 = vrcp.f32 %v4386_v53 }
0x1cf0   :  { %v6134_v21 = vpop.eup %6133 }
0x1d57   :  { %v4396_v12 = vpop.permute.xlu0 %4395 }
0x1d58   :  { %v4398_v15 = vadd.f32 %v4396_v12, %v4392_v57  ;;  %v4510_v57 = vadd.s32 4, %v7653_v8 }
0x1d5a   :  { %6135 = vtanh.f32 %v4398_v15  ;;  %vm4511_vm10 = vcmp.eq.s32.totalorder %v4505_v18, %v4510_v57 }
0x1d5b   :  { %vm4512_vm13 = vmor %vm4509_vm9, %vm4511_vm10 }
0x1d5c   :  { %v4517_v53 = vsel %vm4512_vm13, %v4516_v62, 0.0 }
0x1d64   :  { %v6136_v22 = vpop.eup %6135 }
0x1d65   :  { %v4400_v28 = vmul.f32 %v6136_v22, %v6134_v21 }
0x1d67   :  { %v4401_v29 = vsel %vm4123_vm15, %v4400_v28, %v4121_v44  ;;  %vm4644_vm15 = vcmask 7168  }
0x1d68   :  { %4403 = vrot.lane.b32.xlu1 %v4401_v29, %s6372_s9 }
0x1dda   :  { %v4404_v14 = vpop.permute.xlu1 %4403 }
0x1ddb   :  { %v4406_v23 = vrot.slane %v4404_v14, 4 }
0x1ddd   :  { %4408 = vrot.lane.b32.xlu0 %v4406_v23, %s6372_s9 }
0x1e4f   :  { %v4409_v31 = vpop.permute.xlu0 %4408 }
0x1e50   :  { %v4411_v49 = vadd.f32 %v4409_v31, %v4401_v29 }
0x1e52   :  { %4421 = vrot.lane.b32.xlu1 %v4411_v49, %s6372_s9 }
0x1ec4   :  { %v4422_v58 = vpop.permute.xlu1 %4421 }
0x1ec5   :  { %4954 = vmatmul.mubr.msk.f32.vlgmr.msra.gmra.mrb[22].mxu1 %vm441_vm2, %v4422_v58  ;;  %vm4521_vm2 = vcmask 130048  }
0x1ec6   :  { %4963 = vmatprep.mubr.msk.f32.mxu1 %vm6374_vm0, %v6371_v0  ;;  %v4520_v0 = vld [vmem:[#allocation16] sm:$0xff] }
0x1f98   :  { %v4491_v51 = vpop.f32.mrb[22].mxu1 }
0x1f99   :  { %4498 = vrot.lane.b32.xlu0 %v4491_v51, %s6375_s7  ;;  %v4955_v54 = vpop.f32.mrb[23].mxu1 }
0x200b   :  { %v4499_v34 = vpop.permute.xlu0 %4498 }
0x200c   :  { %v4501_v33 = vsel %vm148_vm1, %v4491_v51, %v4499_v34 }
0x200d   :  { %v4503_v47 = vadd.f32 %v4502_v17, %v4501_v33  ;;  %v6380_v17 = vmov 0.1  }
0x200e   :  { %v4519_v34 = vsel %vm148_vm1, 1.0, %v6380_v17 }
0x200f   :  { %4658 = vrot.lane.b32.xlu1 %v4503_v47, %s6376_s28  ;;  %4957 = vmatpush3.xpose.msk.msra.mxu0 %vm4521_vm2, %v4503_v47 }
0x2012   :  { %4959 = vmatmul.mubr.msk.f32.vlgmr.msra.gmra.mrb[34].mxu0 %vm4521_vm2, %v4520_v0 }
0x2081   :  { %v4659_v24 = vpop.permute.xlu1 %4658 }
0x2082   :  { %4962 = vmatpush3.xpose.msk.msra.mxu1 %vm4521_vm2, %v4659_v24 }
0x2085   :  { %4964 = vmatmul.mubr.msk.f32.vlgmr.msra.gmra.mrb[24].mxu1 %vm4521_vm2, %v4657_v61 }
0x20e5   :  { %v4594_v45 = vpop.f32.mrb[34].mxu0 }
0x20e6   :  { %v4603_v6 = vsel %vm4602_vm3, %v4594_v45, -inf  ;;  %v4960_v39 = vpop.f32.mrb[35].mxu0  ;;  %v4599_v27 = vsel %vm4598_vm4, %v4594_v45, -inf  ;;  %v4628_v22 = vmul.f32 %v4594_v45, %v4517_v53 }
0x20e7   :  { %4604 = vmax.xlane.f32.xlu0 %v4603_v6 }
0x20e8   :  { %v4630_v28 = vsel %vm4629_vm14, %v4628_v22, 0.0 }
0x20eb   :  { %4600 = vmax.xlane.f32.xlu0 %v4599_v27 }
0x2158   :  { %v4731_v63 = vpop.f32.mrb[24].mxu1 }
0x2159   :  { %v4965_v55 = vpop.f32.mrb[25].mxu1  ;;  %v4738_v44 = vsel %vm4602_vm3, %v4731_v63, -inf  ;;  %v4735_v11 = vsel %vm4598_vm4, %v4731_v63, -inf  ;;  %v4763_v29 = vmul.f32 %v4731_v63, %v4517_v53 }
0x215a   :  { %4739 = vmax.xlane.f32.xlu1 %v4738_v44  ;;  %4736 = vmax.xlane.f32.xlu0 %v4735_v11 }
0x215b   :  { %v4764_v35 = vsel %vm4629_vm14, %v4763_v29, 0.0 }
0x2174   :  { %v7663_v32 = vpop.xlane.xlu0 %4604 }
0x2175   :  { %v4615_v46 = vsub.f32 %v4594_v45, %v7663_v32 }
0x2177   :  { %v4616_v41 = vmul.f32 1.442695, %v4615_v46 }
0x2178   :  { %v7667_v1 = vpop.xlane.xlu0 %4600 }
0x2179   :  { %6137 = vpow2.f32 %v4616_v41  ;;  %v4606_v19 = vsub.f32 %v4594_v45, %v7667_v1 }
0x217b   :  { %v4607_v25 = vmul.f32 1.442695, %v4606_v19 }
0x217d   :  { %6139 = vpow2.f32 %v4607_v25 }
0x2183   :  { %v6138_v37 = vpop.eup %6137 }
0x2184   :  { %4619 = vrot.lane.b32.xlu1 %v6138_v37, %s6377_s10 }
0x2187   :  { %v6140_v50 = vpop.eup %6139 }
0x2188   :  { %v4609_v5 = vsel %vm4598_vm4, %v6140_v50, 0.0 }
0x21a8   :  { %4610 = vadd.xlane.f32.xlu1 %v4609_v5 }
0x21e7   :  { %v7671_v52 = vpop.xlane.xlu1 %4739  ;;  %v7673_v59 = vpop.xlane.xlu0 %4736 }
0x21e8   :  { %v4750_v60 = vsub.f32 %v4731_v63, %v7671_v52  ;;  %v4741_v2 = vsub.f32 %v4731_v63, %v7673_v59 }
0x21ea   :  { %v4751_v4 = vmul.f32 1.442695, %v4750_v60  ;;  %v4742_v9 = vmul.f32 1.442695, %v4741_v2 }
0x21ec   :  { %6141 = vpow2.f32 %v4751_v4 }
0x21ed   :  { %6143 = vpow2.f32 %v4742_v9 }
0x21f6   :  { %v6142_v12 = vpop.eup %6141  ;;  %v4620_v36 = vpop.permute.xlu1 %4619 }
0x21f7   :  { %v6144_v15 = vpop.eup %6143  ;;  %4754 = vrot.lane.b32.xlu0 %v6142_v12, %s6377_s10  ;;  %v4622_v40 = vsel %vm4598_vm4, %v4620_v36, 0.0 }
0x21f8   :  { %v4744_v21 = vsel %vm4598_vm4, %v6144_v15, 0.0 }
0x21f9   :  { %4745 = vadd.xlane.f32.xlu1 %v4744_v21 }
0x21fd   :  { %4631 = vadd.xlane.f32.xlu1 %v4630_v28 }
0x2201   :  { %4765 = vadd.xlane.f32.xlu1 %v4764_v35 }
0x2216   :  { %4623 = vadd.xlane.f32.xlu0 %v4622_v40 }
0x2235   :  { %v4611_v7 = vpop.xlane.xlu1 %4610 }
0x2236   :  { %6145 = vlog2.f32 %v4611_v7 }
0x2240   :  { %v6146_v31 = vpop.eup %6145 }
0x2241   :  { %v4613_v49 = vmul.f32 0.6931472, %v6146_v31 }
0x2243   :  { %v4614_v51 = vadd.f32 %v4613_v49, %v7667_v1 }
0x2245   :  { %v4641_v47 = vmul.f32 %v4614_v51, %v4518_v10 }
0x2269   :  { %v4755_v16 = vpop.permute.xlu0 %4754 }
0x226a   :  { %v4757_v3 = vsel %vm4598_vm4, %v4755_v16, 0.0 }
0x226b   :  { %4758 = vadd.xlane.f32.xlu0 %v4757_v3 }
0x2286   :  { %v4746_v56 = vpop.xlane.xlu1 %4745 }
0x228a   :  { %v4632_v42 = vpop.xlane.xlu1 %4631 }
0x228b   :  { %v4633_v48 = vrot.slane %v4632_v42, 4 }
0x228d   :  { %v4634_v13 = vadd.f32 %v4633_v48, %v4632_v42 }
0x228e   :  { %v4766_v41 = vpop.xlane.xlu1 %4765 }
0x228f   :  { %v4635_v14 = vrot.slane %v4634_v13, 2  ;;  %v4767_v37 = vrot.slane %v4766_v41, 4 }
0x2291   :  { %v4636_v20 = vadd.f32 %v4635_v14, %v4634_v13  ;;  %v4768_v1 = vadd.f32 %v4767_v37, %v4766_v41 }
0x2293   :  { %v4637_v26 = vrot.slane %v4636_v20, 1  ;;  %v4769_v19 = vrot.slane %v4768_v1, 2 }
0x2295   :  { %v4638_v23 = vadd.f32 %v4637_v26, %v4636_v20  ;;  %v4770_v18 = vadd.f32 %v4769_v19, %v4768_v1 }
0x2297   :  { %5770 = vpush %v4638_v23 }
0x22a3   :  { %v4624_v30 = vpop.xlane.xlu0 %4623 }
0x22a4   :  { %6147 = vlog2.f32 %v4624_v30 }
0x22a5   :  { %6149 = vlog2.f32 %v4746_v56 }
0x22ae   :  { %v6148_v58 = vpop.eup %6147 }
0x22af   :  { %v4626_v54 = vmul.f32 0.6931472, %v6148_v58  ;;  %v6150_v6 = vpop.eup %6149 }
0x22b0   :  { %v4748_v39 = vmul.f32 0.6931472, %v6150_v6 }
0x22b1   :  { %v4627_v33 = vadd.f32 %v4626_v54, %v7663_v32 }
0x22b2   :  { %v4749_v63 = vadd.f32 %v4748_v39, %v7673_v59  ;;  %v4771_v59 = vrot.slane %v4770_v18, 1 }
0x22b3   :  { %v4642_v0 = vmul.f32 %v4627_v33, %v4519_v34 }
0x22b4   :  { %v4775_v44 = vmul.f32 %v4749_v63, %v4518_v10 }
0x22b5   :  { %v4643_v24 = vadd.f32 %v4642_v0, %v4641_v47 }
0x22b7   :  { %v4645_v61 = vsel %vm4644_vm15, %v4643_v24, 0.0 }
0x22b8   :  { %4646 = vadd.xlane.f32.xlu0 %v4645_v61 }
0x22c8   :  { %s5771_s17 = spop %5770 }
0x22f8   :  { %v4759_v45 = vpop.xlane.xlu0 %4758 }
0x22f9   :  { %6151 = vlog2.f32 %v4759_v45 }
0x2303   :  { %v6152_v27 = vpop.eup %6151 }
0x2304   :  { %v4761_v55 = vmul.f32 0.6931472, %v6152_v27 }
0x2306   :  { %v4762_v8 = vadd.f32 %v4761_v55, %v7671_v52  ;;  %v4772_v52 = vadd.f32 %v4771_v59, %v4770_v18 }
0x2308   :  { %v4776_v11 = vmul.f32 %v4762_v8, %v4519_v34 }
0x230a   :  { %v4777_v32 = vadd.f32 %v4776_v11, %v4775_v44 }
0x230c   :  { %v4778_v46 = vsel %vm4644_vm15, %v4777_v32, 0.0 }
0x230d   :  { %4779 = vadd.xlane.f32.xlu0 %v4778_v46 }
0x2345   :  { %v4647_v25 = vpop.xlane.xlu0 %4646 }
0x2346   :  { %v4648_v50 = vrot.slane %v4647_v25, 4 }
0x2348   :  { %v4649_v5 = vadd.f32 %v4648_v50, %v4647_v25 }
0x234a   :  { %v4650_v43 = vrot.slane %v4649_v5, 2 }
0x234c   :  { %v4651_v60 = vadd.f32 %v4650_v43, %v4649_v5 }
0x234e   :  { %v4652_v2 = vrot.slane %v4651_v60, 1 }
0x2350   :  { %v4653_v4 = vadd.f32 %v4652_v2, %v4651_v60 }
0x2352   :  { %5772 = vpush %v4653_v4 }
0x2353   :  { %5774 = vpush %v4772_v52 }
0x2383   :  { %s5773_s26 = spop %5772 }
0x2384   :  { %s4655_s29 = ssub.f32 %s5771_s17, %s5773_s26  ;;  %s5775_s30 = spop %5774 }
0x2386   :  { %s4774_s12 = sadd.f32 %s5775_s30, %s4655_s29 }
0x239a   :  { %v4780_v9 = vpop.xlane.xlu0 %4779 }
0x239b   :  { %v4781_v57 = vrot.slane %v4780_v9, 4 }
0x239d   :  { %v4782_v38 = vadd.f32 %v4781_v57, %v4780_v9 }
0x239f   :  { %v4783_v62 = vrot.slane %v4782_v38, 2 }
0x23a1   :  { %v4784_v53 = vadd.f32 %v4783_v62, %v4782_v38 }
0x23a3   :  { %v4785_v12 = vrot.slane %v4784_v53, 1 }
0x23a5   :  { %v4786_v15 = vadd.f32 %v4785_v12, %v4784_v53 }
0x23a7   :  { %5776 = vpush %v4786_v15 }
0x23d8   :  { %s5777_s16 = spop %5776 }
0x23d9   :  { %s4788_s4 = ssub.f32 %s4774_s12, %s5777_s16 }
0x23db   :  { %4790 = sst [smem:[#allocation19]] %s4788_s4 }
0x23dc   :  { %6346 = shalt.err (!%p6343_p10)
}
0x23dd   :  { %s6381_s13 = smov [#allocation19]  }
0x23de   :  { %4798 = dma.smem_to_hbm %s6381_s13, 16, %s7719_s11, [#allocation7]  }
0x23df   :  { %6357 = dma.done.wait [#allocation7], 16  }
0x23e0   :  { %6358 = vsyncadd [#allocation7], 4294967280 }
0x23e1   :  { %4802 = sfence }
0x23e2   :  { %4803 = vsyncpa [#allocation6], 1 }
0x23e3   :  { %4804 = vsyncpa [#allocation9], 1 }
0x23e4   :  { %4805 = vsyncpa [#allocation12], 1 }
0x23e5   :  { %4806 = vsyncpa [#allocation15], 1 }
0x23e6   :  { %4807 = vsyncpa [#allocation18], 1 }
0x23e7   :  { %4808 = vsyncpa [#allocation7], 1 }

</bundles_post_ra>
